<compile_context>
chip_gen: v7x
topology: tpu7x:2x2x1
jax: 0.10.0
libtpu: 0.0.40
codegen_flags: <defaults>
</compile_context>

<pallas_src>
import functools

import jax
import jax.numpy as jnp
from jax.experimental import pallas as pl
from jax.experimental.pallas import tpu as pltpu


def _decoder_kernel(x_ref, w1_ref, b1_ref, w2_ref, b2_ref, w3_ref, b3_ref,
                    out_ref):
    """One fc3 output-column tile: full fused MLP, fc3 restricted to the tile."""
    x = x_ref[...].astype(jnp.bfloat16)                            # (Bp, E)

    h1 = jnp.dot(x, w1_ref[...], preferred_element_type=jnp.float32)
    h1 = jnp.maximum(h1 + b1_ref[...], 0.0)                        # (Bp, 512) f32

    h2 = jnp.dot(h1.astype(jnp.bfloat16), w2_ref[...],
                 preferred_element_type=jnp.float32)
    h2 = jnp.maximum(h2 + b2_ref[...], 0.0)                        # (Bp, 1024) f32

    out = jnp.dot(h2.astype(jnp.bfloat16), w3_ref[...],
                  preferred_element_type=jnp.float32)              # (Bp, TN)
    out_ref[...] = (out + b3_ref[...]).astype(out_ref.dtype)


def _round_up(x, m):
    return ((x + m - 1) // m) * m


def _pick_tile(out_pad):
    """Largest multiple of 128 that divides the padded output dim, <= 1024."""
    for cand in range(1024, 0, -128):
        if out_pad % cand == 0:
            return cand
    return 128


@functools.partial(jax.jit, static_argnums=(2,))
def point_cloud_decoder(embedding, params, n_pts):
    """embedding: (B, emb_dim) float32  ->  (B, n_pts, 3) float32."""
    w1, b1, w2, b2, w3, b3 = params
    B, emb_dim = embedding.shape
    out_dim = 3 * n_pts
    assert w3.shape == (1024, out_dim)

    # Padding for TPU-friendly layout: sublane-aligned batch, lane-dense output.
    b_pad = _round_up(max(B, 8), 8)
    out_pad = _round_up(out_dim, 128)
    tn = _pick_tile(out_pad)
    n_tiles = out_pad // tn

    x = jnp.pad(embedding, ((0, b_pad - B), (0, 0)))
    w3p = jnp.pad(w3, ((0, 0), (0, out_pad - out_dim)))
    b3p = jnp.pad(b3, ((0, 0), (0, out_pad - out_dim)))

    const = lambda shape: pl.BlockSpec(shape, lambda j: (0,) * len(shape))

    out_flat = pl.pallas_call(
        _decoder_kernel,
        out_shape=jax.ShapeDtypeStruct((b_pad, out_pad), jnp.float32),
        grid_spec=pltpu.PrefetchScalarGridSpec(
            num_scalar_prefetch=0,
            grid=(n_tiles,),
            in_specs=[
                const(x.shape),                                # embedding (resident)
                const(w1.shape), const(b1.shape),              # fc1 (resident)
                const(w2.shape), const(b2.shape),              # fc2 (resident)
                pl.BlockSpec((1024, tn), lambda j: (0, j)),    # fc3 weight tile (streamed)
                pl.BlockSpec((1, tn), lambda j: (0, j)),       # fc3 bias tile
            ],
            out_specs=pl.BlockSpec((b_pad, tn), lambda j: (0, j)),
        ),
        compiler_params=pltpu.CompilerParams(
            dimension_semantics=("parallel",),   # v7x: split w3 stream across TCs
            vmem_limit_bytes=16 << 20,           # right-sized (footprint ~5-8 MiB)
        ),
    )(x, w1, b1, w2, b2, w3p, b3p)

    out = out_flat[:B, :out_dim]
    return out.reshape(B, n_pts, 3).astype(jnp.float32)


def init_params(key, emb_dim, n_pts):
    """Deterministic synthetic parameters (shapes from the module __init__).

    Weights are kept in bf16 (streamed from HBM as bf16); biases stay f32.
    """
    k1, k2, k3, k4, k5, k6 = jax.random.split(key, 6)
    w1 = (jax.random.normal(k1, (emb_dim, 512), jnp.float32) * 0.05).astype(jnp.bfloat16)
    b1 = jax.random.normal(k2, (1, 512), jnp.float32) * 0.05
    w2 = (jax.random.normal(k3, (512, 1024), jnp.float32) * 0.05).astype(jnp.bfloat16)
    b2 = jax.random.normal(k4, (1, 1024), jnp.float32) * 0.05
    w3 = (jax.random.normal(k5, (1024, 3 * n_pts), jnp.float32) * 0.05).astype(jnp.bfloat16)
    b3 = jax.random.normal(k6, (1, 3 * n_pts), jnp.float32) * 0.05
    return (w1, b1, w2, b2, w3, b3)


def _reference_matched(embedding, params):
    """Plain-JAX reference with the kernel's exact numerics (bf16 MXU inputs, f32 acc)."""
    w1, b1, w2, b2, w3, b3 = params
    x = embedding.astype(jnp.bfloat16)
    h1 = jnp.maximum(jnp.dot(x, w1, preferred_element_type=jnp.float32) + b1, 0.0)
    h2 = jnp.maximum(jnp.dot(h1.astype(jnp.bfloat16), w2,
                             preferred_element_type=jnp.float32) + b2, 0.0)
    out = jnp.dot(h2.astype(jnp.bfloat16), w3,
                  preferred_element_type=jnp.float32) + b3
    return out.reshape(embedding.shape[0], -1, 3)


def _reference_f32(embedding, params):
    """Full-precision (PyTorch-equivalent) forward, weights upcast to f32."""
    w1, b1, w2, b2, w3, b3 = params
    h1 = jnp.maximum(embedding @ w1.astype(jnp.float32) + b1, 0.0)
    h2 = jnp.maximum(h1 @ w2.astype(jnp.float32) + b2, 0.0)
    out = h2 @ w3.astype(jnp.float32) + b3
    return out.reshape(embedding.shape[0], -1, 3)


if __name__ == "__main__":
    B = 2
    emb_dim = 32
    n_pts = 600          # 3*n_pts = 1800 -> pads to 1920, 3 column tiles of 640

    key = jax.random.PRNGKey(0)
    k_emb, k_par = jax.random.split(key)
    embedding = jax.random.normal(k_emb, (B, emb_dim), jnp.float32)
    params = init_params(k_par, emb_dim, n_pts)

    out_pc = point_cloud_decoder(embedding, params, n_pts)
    out_pc = jax.block_until_ready(out_pc)

    assert out_pc.shape == (B, n_pts, 3), out_pc.shape
    assert out_pc.dtype == jnp.float32

    # Tight check vs. a reference with identical numerics (bf16 weights, f32 acc).
    ref = _reference_matched(embedding, params)
    err = float(jnp.max(jnp.abs(out_pc - ref)))
    assert jnp.allclose(out_pc, ref, atol=1e-4, rtol=1e-4), f"mismatch vs matched ref: {err}"

    # Loose check vs. the full-f32 (PyTorch-semantics) forward to bound bf16 drift.
    ref32 = _reference_f32(embedding, params)
    err32 = float(jnp.max(jnp.abs(out_pc - ref32)))
    assert jnp.allclose(out_pc, ref32, atol=1e-1, rtol=1e-1), f"drift vs f32 ref: {err32}"

    print("KERNEL_OK")
</pallas_src>

<mosaic_0001>
module attributes {stable_mosaic.version = 11 : i64} {
  func.func @_decoder_kernel(%arg0: i32, %arg1: memref<8x32xf32, #tpu.memory_space<vmem>>, %arg2: memref<32x512xbf16, #tpu.memory_space<vmem>>, %arg3: memref<1x512xf32, #tpu.memory_space<vmem>>, %arg4: memref<512x1024xbf16, #tpu.memory_space<vmem>>, %arg5: memref<1x1024xf32, #tpu.memory_space<vmem>>, %arg6: memref<1024x640xbf16, #tpu.memory_space<vmem>>, %arg7: memref<1x640xf32, #tpu.memory_space<vmem>>, %arg8: memref<8x640xf32, #tpu.memory_space<vmem>>) attributes {dimension_semantics = [#tpu.dimension_semantics<parallel>], iteration_bounds = array<i64: 3>, scalar_prefetch = 0 : i64, scratch_operands = 0 : i64, tpu.core_type = #tpu.core_type<tc>, window_params = [{pipeline_mode = #tpu.pipeline_mode<synchronous>, transform_indices = @transform_0, window_bounds = array<i64: 8, 32>}, {pipeline_mode = #tpu.pipeline_mode<synchronous>, transform_indices = @transform_1, window_bounds = array<i64: 32, 512>}, {pipeline_mode = #tpu.pipeline_mode<synchronous>, transform_indices = @transform_2, window_bounds = array<i64: 1, 512>}, {pipeline_mode = #tpu.pipeline_mode<synchronous>, transform_indices = @transform_3, window_bounds = array<i64: 512, 1024>}, {pipeline_mode = #tpu.pipeline_mode<synchronous>, transform_indices = @transform_4, window_bounds = array<i64: 1, 1024>}, {transform_indices = @transform_5, window_bounds = array<i64: 1024, 640>}, {transform_indices = @transform_6, window_bounds = array<i64: 1, 640>}, {transform_indices = @transform_7, window_bounds = array<i64: 8, 640>}]} {
    %c0 = arith.constant 0 : index
    %c0_0 = arith.constant 0 : index
    %0 = vector.load %arg1[%c0, %c0_0] : memref<8x32xf32, #tpu.memory_space<vmem>>, vector<8x32xf32>
    %1 = arith.truncf %0 : vector<8x32xf32> to vector<8x32xbf16>
    %c0_1 = arith.constant 0 : index
    %c0_2 = arith.constant 0 : index
    %2 = vector.load %arg2[%c0_1, %c0_2] : memref<32x512xbf16, #tpu.memory_space<vmem>>, vector<32x512xbf16>
    %cst = arith.constant dense<0.000000e+00> : vector<8x512xf32>
    %3 = tpu.matmul %1, %2, %cst {dimension_numbers = #tpu.dot_dimension_numbers<[1], [0], [0], [1], [0, 0, 1, 1], [], []>} : vector<8x32xbf16>, vector<32x512xbf16>, vector<8x512xf32> -> vector<8x512xf32>
    %c0_3 = arith.constant 0 : index
    %c0_4 = arith.constant 0 : index
    %4 = vector.load %arg3[%c0_3, %c0_4] : memref<1x512xf32, #tpu.memory_space<vmem>>, vector<1x512xf32>
    %5 = vector.broadcast %4 : vector<1x512xf32> to vector<8x512xf32>
    %6 = arith.addf %3, %5 : vector<8x512xf32>
    %cst_5 = arith.constant 0.000000e+00 : f32
    %7 = vector.broadcast %cst_5 : f32 to vector<8x512xf32>
    %8 = arith.maximumf %6, %7 : vector<8x512xf32>
    %9 = arith.truncf %8 : vector<8x512xf32> to vector<8x512xbf16>
    %c0_6 = arith.constant 0 : index
    %c0_7 = arith.constant 0 : index
    %10 = vector.load %arg4[%c0_6, %c0_7] : memref<512x1024xbf16, #tpu.memory_space<vmem>>, vector<512x1024xbf16>
    %cst_8 = arith.constant dense<0.000000e+00> : vector<8x1024xf32>
    %11 = tpu.matmul %9, %10, %cst_8 {dimension_numbers = #tpu.dot_dimension_numbers<[1], [0], [0], [1], [0, 0, 1, 1], [], []>} : vector<8x512xbf16>, vector<512x1024xbf16>, vector<8x1024xf32> -> vector<8x1024xf32>
    %c0_9 = arith.constant 0 : index
    %c0_10 = arith.constant 0 : index
    %12 = vector.load %arg5[%c0_9, %c0_10] : memref<1x1024xf32, #tpu.memory_space<vmem>>, vector<1x1024xf32>
    %13 = vector.broadcast %12 : vector<1x1024xf32> to vector<8x1024xf32>
    %14 = arith.addf %11, %13 : vector<8x1024xf32>
    %cst_11 = arith.constant 0.000000e+00 : f32
    %15 = vector.broadcast %cst_11 : f32 to vector<8x1024xf32>
    %16 = arith.maximumf %14, %15 : vector<8x1024xf32>
    %17 = arith.truncf %16 : vector<8x1024xf32> to vector<8x1024xbf16>
    %c0_12 = arith.constant 0 : index
    %c0_13 = arith.constant 0 : index
    %18 = vector.load %arg6[%c0_12, %c0_13] : memref<1024x640xbf16, #tpu.memory_space<vmem>>, vector<1024x640xbf16>
    %cst_14 = arith.constant dense<0.000000e+00> : vector<8x640xf32>
    %19 = tpu.matmul %17, %18, %cst_14 {dimension_numbers = #tpu.dot_dimension_numbers<[1], [0], [0], [1], [0, 0, 1, 1], [], []>} : vector<8x1024xbf16>, vector<1024x640xbf16>, vector<8x640xf32> -> vector<8x640xf32>
    %c0_15 = arith.constant 0 : index
    %c0_16 = arith.constant 0 : index
    %20 = vector.load %arg7[%c0_15, %c0_16] : memref<1x640xf32, #tpu.memory_space<vmem>>, vector<1x640xf32>
    %21 = vector.broadcast %20 : vector<1x640xf32> to vector<8x640xf32>
    %22 = arith.addf %19, %21 : vector<8x640xf32>
    %c0_17 = arith.constant 0 : index
    %c0_18 = arith.constant 0 : index
    %23 = vector.load %arg8[%c0_17, %c0_18] : memref<8x640xf32, #tpu.memory_space<vmem>>, vector<8x640xf32>
    tpu.vector_store %arg8[%c0_17, %c0_18], %22 {strides = array<i32>} : memref<8x640xf32, #tpu.memory_space<vmem>>, vector<8x640xf32>,
    return
  }
  func.func @transform_0(%arg0: i32) -> (i32, i32) {
    %c0_i32 = arith.constant 0 : i32
    %c0_i32_0 = arith.constant 0 : i32
    %c0_i32_1 = arith.constant 0 : i32
    return %c0_i32, %c0_i32_0 : i32, i32
  }
  func.func @transform_1(%arg0: i32) -> (i32, i32) {
    %c0_i32 = arith.constant 0 : i32
    %c0_i32_0 = arith.constant 0 : i32
    %c0_i32_1 = arith.constant 0 : i32
    return %c0_i32, %c0_i32_0 : i32, i32
  }
  func.func @transform_2(%arg0: i32) -> (i32, i32) {
    %c0_i32 = arith.constant 0 : i32
    %c0_i32_0 = arith.constant 0 : i32
    %c0_i32_1 = arith.constant 0 : i32
    return %c0_i32, %c0_i32_0 : i32, i32
  }
  func.func @transform_3(%arg0: i32) -> (i32, i32) {
    %c0_i32 = arith.constant 0 : i32
    %c0_i32_0 = arith.constant 0 : i32
    %c0_i32_1 = arith.constant 0 : i32
    return %c0_i32, %c0_i32_0 : i32, i32
  }
  func.func @transform_4(%arg0: i32) -> (i32, i32) {
    %c0_i32 = arith.constant 0 : i32
    %c0_i32_0 = arith.constant 0 : i32
    %c0_i32_1 = arith.constant 0 : i32
    return %c0_i32, %c0_i32_0 : i32, i32
  }
  func.func @transform_5(%arg0: i32) -> (i32, i32) {
    %c0_i32 = arith.constant 0 : i32
    %c0_i32_0 = arith.constant 0 : i32
    return %c0_i32, %arg0 : i32, i32
  }
  func.func @transform_6(%arg0: i32) -> (i32, i32) {
    %c0_i32 = arith.constant 0 : i32
    %c0_i32_0 = arith.constant 0 : i32
    return %c0_i32, %arg0 : i32, i32
  }
  func.func @transform_7(%arg0: i32) -> (i32, i32) {
    %c0_i32 = arith.constant 0 : i32
    %c0_i32_0 = arith.constant 0 : i32
    return %c0_i32, %arg0 : i32, i32
  }
}

</mosaic_0001>

<bundles_post_ra>
// kernel: point_cloud_decoder.1
= control target key start
LH: loop header
LB: loop body
LE: loop exit
PB: predicated region body
PF: predicated region fallthrough
CT: control target
= control target key end

     0   :  { %s7371_s24 = smov 0   ;;  %s7373_s25 = smov 0   ;;  %s9453_s0 = inlined_call_operand.vmem [shape: f32[8,32], index: 0, kind: input, shape index: {}]   ;;  %s9454_s1 = inlined_call_operand.vmem [shape: bf16[32,512], index: 1, kind: input, shape index: {}]   ;;  %s9455_s2 = inlined_call_operand.vmem [shape: f32[1,512], index: 2, kind: input, shape index: {}]   ;;  %s9456_s3 = inlined_call_operand.vmem [shape: bf16[512,1024], index: 3, kind: input, shape index: {}]   ;;  %s9457_s4 = inlined_call_operand.vmem [shape: f32[1,1024], index: 4, kind: input, shape index: {}]   ;;  %s9458_s5 = inlined_call_operand.vmem [shape: bf16[1024,1920], index: 5, kind: input, shape index: {}]   ;;  %s9459_s6 = inlined_call_operand.vmem [shape: f32[1,1920], index: 6, kind: input, shape index: {}]   ;;  %s9460_s7 = inlined_call_operand.vmem [shape: f32[8,1920], index: 7, kind: output, shape index: {}]  }
   0x1   :  { %s7375_s26 = smov 0  }
   0x2 LB: > { %s5827_s27 = sadd.s32 4294967295, %s7328_s26   ;;  %s7388_s28 = sadd.s32 1, %s7328_s26   ;;  %s7328_s26 = sphi %s7375_s26, %s9463_s26   ;;  %s7324_s25 = sphi %s7373_s25, %s9462_s25   ;;  %s7320_s24 = sphi %s7371_s24, %s9461_s24  }
   0x3   : > { %s126_s29 = ssub.s32 %s7328_s26, %s7388_s28  ;;  %s129_s30 = sadd.s32 1, %s7324_s25 }
   0x4   : > { %p127_p0 = scmp.eq.s32.totalorder %s126_s29, 0  ;;  %p136_p1 = scmp.ne.s32.totalorder %s7324_s25, %s7320_s24 }
   0x5   : > { %p137_p2 = scmp.eq.s32.totalorder %s7328_s26, 0  ;;  %p5830_p4 = scmp.ge.s32.totalorder %s7328_s26, 3 }
   0x6   : > { %s7397_s8 = scalar_select %p127_p0, %s7324_s25, %s129_s30  }
   0x7   : > { %p138_p3 = por %p137_p2, %p136_p1  ;;  %229 = sbr.rel (%p5830_p4) target bundleno = 232 (0xe8), region = 36 }
   0xe   : > { %232 = sbr.rel (!%p138_p3) target bundleno = 232 (0xe8), region = 40  ;;  %s234_s9 = sand.u32 (%p138_p3), 1, %s7324_s25  }
   0xf   : > { %s6678_s10 = smul.u32 (%p138_p3), 20, %s7328_s26 }
  0x10   : > { %s6819_s11 = smul.u32 (%p138_p3), 2560, %s234_s9 }
  0x11   : > { %s7405_s14 = scalar_lea.vmem (%p138_p3), %s9458_s5, %s6678_s10 }
  0x12   : > { %v254_v0 = vld [vmem:[%s7405_s14] sm:$0xff] (%p138_p3)  ;;  %v256_v1 = vld [vmem:[%s7405_s14 + $0x8] sm:$0xff] (%p138_p3)  ;;  %s7410_s15 = scalar_lea.vmem (%p138_p3), [#allocation2], %s6819_s11  ;;  %v262_v4 = vld [vmem:[%s7405_s14 + $0x78] sm:$0xff] (%p138_p3) }
  0x13   : > { %v258_v2 = vld [vmem:[%s7405_s14 + $0x3c] sm:$0xff] (%p138_p3)  ;;  %255 = vst [vmem:[%s7410_s15] sm:$0xff] (%p138_p3), %v254_v0  ;;  %257 = vst [vmem:[%s7410_s15 + $0x8] sm:$0xff] (%p138_p3), %v256_v1  ;;  %v260_v3 = vld [vmem:[%s7405_s14 + $0x44] sm:$0xff] (%p138_p3) }
  0x14   : > { %259 = vst [vmem:[%s7410_s15 + $0x14] sm:$0xff] (%p138_p3), %v258_v2  ;;  %v264_v5 = vld [vmem:[%s7405_s14 + $0x80] sm:$0xff] (%p138_p3)  ;;  %261 = vst [vmem:[%s7410_s15 + $0x1c] sm:$0xff] (%p138_p3), %v260_v3  ;;  %v266_v6 = vld [vmem:[%s7405_s14 + $0xb4] sm:$0xff] (%p138_p3) }
  0x15   : > { %263 = vst [vmem:[%s7410_s15 + $0x28] sm:$0xff] %v262_v4  ;;  %265 = vst [vmem:[%s7410_s15 + $0x30] sm:$0xff] %v264_v5  ;;  %v268_v7 = vld [vmem:[%s7405_s14 + $0xbc] sm:$0xff]  ;;  %v270_v8 = vld [vmem:[%s7405_s14 + $0xf0] sm:$0xff] }
  0x16   : > { %267 = vst [vmem:[%s7410_s15 + $0x3c] sm:$0xff] %v266_v6  ;;  %269 = vst [vmem:[%s7410_s15 + $0x44] sm:$0xff] %v268_v7  ;;  %v272_v9 = vld [vmem:[%s7405_s14 + $0xf8] sm:$0xff]  ;;  %v274_v10 = vld [vmem:[%s7405_s14 + $0x12c] sm:$0xff] }
  0x17   : > { %271 = vst [vmem:[%s7410_s15 + $0x50] sm:$0xff] %v270_v8  ;;  %v276_v11 = vld [vmem:[%s7405_s14 + $0x134] sm:$0xff]  ;;  %273 = vst [vmem:[%s7410_s15 + $0x58] sm:$0xff] %v272_v9  ;;  %v278_v12 = vld [vmem:[%s7405_s14 + $0x168] sm:$0xff] }
  0x18   : > { %275 = vst [vmem:[%s7410_s15 + $0x64] sm:$0xff] %v274_v10  ;;  %277 = vst [vmem:[%s7410_s15 + $0x6c] sm:$0xff] %v276_v11  ;;  %v280_v13 = vld [vmem:[%s7405_s14 + $0x170] sm:$0xff]  ;;  %v282_v14 = vld [vmem:[%s7405_s14 + $0x1a4] sm:$0xff] }
  0x19   : > { %279 = vst [vmem:[%s7410_s15 + $0x78] sm:$0xff] %v278_v12  ;;  %281 = vst [vmem:[%s7410_s15 + $0x80] sm:$0xff] %v280_v13  ;;  %v284_v15 = vld [vmem:[%s7405_s14 + $0x1ac] sm:$0xff]  ;;  %v286_v16 = vld [vmem:[%s7405_s14 + $0x1e0] sm:$0xff] }
  0x1a   : > { %283 = vst [vmem:[%s7410_s15 + $0x8c] sm:$0xff] %v282_v14  ;;  %v288_v17 = vld [vmem:[%s7405_s14 + $0x1e8] sm:$0xff]  ;;  %285 = vst [vmem:[%s7410_s15 + $0x94] sm:$0xff] %v284_v15  ;;  %v290_v18 = vld [vmem:[%s7405_s14 + $0x21c] sm:$0xff] }
  0x1b   : > { %287 = vst [vmem:[%s7410_s15 + $0xa0] sm:$0xff] %v286_v16  ;;  %289 = vst [vmem:[%s7410_s15 + $0xa8] sm:$0xff] %v288_v17  ;;  %v292_v19 = vld [vmem:[%s7405_s14 + $0x224] sm:$0xff]  ;;  %v294_v20 = vld [vmem:[%s7405_s14 + $0x258] sm:$0xff] }
  0x1c   : > { %291 = vst [vmem:[%s7410_s15 + $0xb4] sm:$0xff] %v290_v18  ;;  %293 = vst [vmem:[%s7410_s15 + $0xbc] sm:$0xff] %v292_v19  ;;  %v296_v21 = vld [vmem:[%s7405_s14 + $0x260] sm:$0xff]  ;;  %v298_v22 = vld [vmem:[%s7405_s14 + $0x294] sm:$0xff] }
  0x1d   : > { %295 = vst [vmem:[%s7410_s15 + $0xc8] sm:$0xff] %v294_v20  ;;  %v300_v23 = vld [vmem:[%s7405_s14 + $0x29c] sm:$0xff]  ;;  %297 = vst [vmem:[%s7410_s15 + $0xd0] sm:$0xff] %v296_v21  ;;  %v302_v24 = vld [vmem:[%s7405_s14 + $0x2d0] sm:$0xff] }
  0x1e   : > { %299 = vst [vmem:[%s7410_s15 + $0xdc] sm:$0xff] %v298_v22  ;;  %301 = vst [vmem:[%s7410_s15 + $0xe4] sm:$0xff] %v300_v23  ;;  %v304_v25 = vld [vmem:[%s7405_s14 + $0x2d8] sm:$0xff]  ;;  %v306_v26 = vld [vmem:[%s7405_s14 + $0x30c] sm:$0xff] }
  0x1f   : > { %303 = vst [vmem:[%s7410_s15 + $0xf0] sm:$0xff] %v302_v24  ;;  %305 = vst [vmem:[%s7410_s15 + $0xf8] sm:$0xff] %v304_v25  ;;  %v308_v27 = vld [vmem:[%s7405_s14 + $0x314] sm:$0xff]  ;;  %v310_v28 = vld [vmem:[%s7405_s14 + $0x348] sm:$0xff] }
  0x20   : > { %307 = vst [vmem:[%s7410_s15 + $0x104] sm:$0xff] %v306_v26  ;;  %v312_v29 = vld [vmem:[%s7405_s14 + $0x350] sm:$0xff]  ;;  %309 = vst [vmem:[%s7410_s15 + $0x10c] sm:$0xff] %v308_v27  ;;  %v314_v30 = vld [vmem:[%s7405_s14 + $0x384] sm:$0xff] }
  0x21   : > { %311 = vst [vmem:[%s7410_s15 + $0x118] sm:$0xff] %v310_v28  ;;  %313 = vst [vmem:[%s7410_s15 + $0x120] sm:$0xff] %v312_v29  ;;  %v316_v31 = vld [vmem:[%s7405_s14 + $0x38c] sm:$0xff]  ;;  %v318_v32 = vld [vmem:[%s7405_s14 + $0x3c0] sm:$0xff] }
  0x22   : > { %315 = vst [vmem:[%s7410_s15 + $0x12c] sm:$0xff] %v314_v30  ;;  %317 = vst [vmem:[%s7410_s15 + $0x134] sm:$0xff] %v316_v31  ;;  %v320_v33 = vld [vmem:[%s7405_s14 + $0x3c8] sm:$0xff]  ;;  %v322_v34 = vld [vmem:[%s7405_s14 + $0x3fc] sm:$0xff] }
  0x23   : > { %319 = vst [vmem:[%s7410_s15 + $0x140] sm:$0xff] %v318_v32  ;;  %v324_v35 = vld [vmem:[%s7405_s14 + $0x404] sm:$0xff]  ;;  %321 = vst [vmem:[%s7410_s15 + $0x148] sm:$0xff] %v320_v33  ;;  %v326_v36 = vld [vmem:[%s7405_s14 + $0x438] sm:$0xff] }
  0x24   : > { %323 = vst [vmem:[%s7410_s15 + $0x154] sm:$0xff] %v322_v34  ;;  %325 = vst [vmem:[%s7410_s15 + $0x15c] sm:$0xff] %v324_v35  ;;  %v328_v37 = vld [vmem:[%s7405_s14 + $0x440] sm:$0xff]  ;;  %v330_v38 = vld [vmem:[%s7405_s14 + $0x474] sm:$0xff] }
  0x25   : > { %327 = vst [vmem:[%s7410_s15 + $0x168] sm:$0xff] %v326_v36  ;;  %329 = vst [vmem:[%s7410_s15 + $0x170] sm:$0xff] %v328_v37  ;;  %v332_v39 = vld [vmem:[%s7405_s14 + $0x47c] sm:$0xff]  ;;  %v334_v40 = vld [vmem:[%s7405_s14 + $0x4b0] sm:$0xff] }
  0x26   : > { %331 = vst [vmem:[%s7410_s15 + $0x17c] sm:$0xff] %v330_v38  ;;  %v336_v41 = vld [vmem:[%s7405_s14 + $0x4b8] sm:$0xff]  ;;  %333 = vst [vmem:[%s7410_s15 + $0x184] sm:$0xff] %v332_v39  ;;  %v338_v42 = vld [vmem:[%s7405_s14 + $0x4ec] sm:$0xff] }
  0x27   : > { %335 = vst [vmem:[%s7410_s15 + $0x190] sm:$0xff] %v334_v40  ;;  %337 = vst [vmem:[%s7410_s15 + $0x198] sm:$0xff] %v336_v41  ;;  %v340_v43 = vld [vmem:[%s7405_s14 + $0x4f4] sm:$0xff]  ;;  %v342_v44 = vld [vmem:[%s7405_s14 + $0x528] sm:$0xff] }
  0x28   : > { %339 = vst [vmem:[%s7410_s15 + $0x1a4] sm:$0xff] %v338_v42  ;;  %341 = vst [vmem:[%s7410_s15 + $0x1ac] sm:$0xff] %v340_v43  ;;  %v344_v45 = vld [vmem:[%s7405_s14 + $0x530] sm:$0xff]  ;;  %v346_v46 = vld [vmem:[%s7405_s14 + $0x564] sm:$0xff] }
  0x29   : > { %343 = vst [vmem:[%s7410_s15 + $0x1b8] sm:$0xff] %v342_v44  ;;  %v348_v47 = vld [vmem:[%s7405_s14 + $0x56c] sm:$0xff]  ;;  %345 = vst [vmem:[%s7410_s15 + $0x1c0] sm:$0xff] %v344_v45  ;;  %v350_v48 = vld [vmem:[%s7405_s14 + $0x5a0] sm:$0xff] }
  0x2a   : > { %347 = vst [vmem:[%s7410_s15 + $0x1cc] sm:$0xff] %v346_v46  ;;  %349 = vst [vmem:[%s7410_s15 + $0x1d4] sm:$0xff] %v348_v47  ;;  %v352_v49 = vld [vmem:[%s7405_s14 + $0x5a8] sm:$0xff]  ;;  %v354_v50 = vld [vmem:[%s7405_s14 + $0x5dc] sm:$0xff] }
  0x2b   : > { %351 = vst [vmem:[%s7410_s15 + $0x1e0] sm:$0xff] %v350_v48  ;;  %353 = vst [vmem:[%s7410_s15 + $0x1e8] sm:$0xff] %v352_v49  ;;  %v356_v51 = vld [vmem:[%s7405_s14 + $0x5e4] sm:$0xff]  ;;  %v358_v52 = vld [vmem:[%s7405_s14 + $0x618] sm:$0xff] }
  0x2c   : > { %355 = vst [vmem:[%s7410_s15 + $0x1f4] sm:$0xff] %v354_v50  ;;  %v360_v53 = vld [vmem:[%s7405_s14 + $0x620] sm:$0xff]  ;;  %357 = vst [vmem:[%s7410_s15 + $0x1fc] sm:$0xff] %v356_v51  ;;  %v362_v54 = vld [vmem:[%s7405_s14 + $0x654] sm:$0xff] }
  0x2d   : > { %359 = vst [vmem:[%s7410_s15 + $0x208] sm:$0xff] %v358_v52  ;;  %361 = vst [vmem:[%s7410_s15 + $0x210] sm:$0xff] %v360_v53  ;;  %v364_v55 = vld [vmem:[%s7405_s14 + $0x65c] sm:$0xff]  ;;  %v366_v56 = vld [vmem:[%s7405_s14 + $0x690] sm:$0xff] }
  0x2e   : > { %363 = vst [vmem:[%s7410_s15 + $0x21c] sm:$0xff] %v362_v54  ;;  %365 = vst [vmem:[%s7410_s15 + $0x224] sm:$0xff] %v364_v55  ;;  %v368_v57 = vld [vmem:[%s7405_s14 + $0x698] sm:$0xff]  ;;  %v370_v58 = vld [vmem:[%s7405_s14 + $0x6cc] sm:$0xff] }
  0x2f   : > { %367 = vst [vmem:[%s7410_s15 + $0x230] sm:$0xff] %v366_v56  ;;  %v372_v59 = vld [vmem:[%s7405_s14 + $0x6d4] sm:$0xff]  ;;  %369 = vst [vmem:[%s7410_s15 + $0x238] sm:$0xff] %v368_v57  ;;  %v374_v60 = vld [vmem:[%s7405_s14 + $0x708] sm:$0xff] }
  0x30   : > { %371 = vst [vmem:[%s7410_s15 + $0x244] sm:$0xff] %v370_v58  ;;  %373 = vst [vmem:[%s7410_s15 + $0x24c] sm:$0xff] %v372_v59  ;;  %v376_v61 = vld [vmem:[%s7405_s14 + $0x710] sm:$0xff]  ;;  %v378_v62 = vld [vmem:[%s7405_s14 + $0x744] sm:$0xff] }
  0x31   : > { %375 = vst [vmem:[%s7410_s15 + $0x258] sm:$0xff] %v374_v60  ;;  %377 = vst [vmem:[%s7410_s15 + $0x260] sm:$0xff] %v376_v61  ;;  %v380_v63 = vld [vmem:[%s7405_s14 + $0x74c] sm:$0xff]  ;;  %v382_v0 = vld [vmem:[%s7405_s14 + $0x780] sm:$0xff] }
  0x32   : > { %379 = vst [vmem:[%s7410_s15 + $0x26c] sm:$0xff] %v378_v62  ;;  %v384_v1 = vld [vmem:[%s7405_s14 + $0x788] sm:$0xff]  ;;  %381 = vst [vmem:[%s7410_s15 + $0x274] sm:$0xff] %v380_v63  ;;  %v386_v2 = vld [vmem:[%s7405_s14 + $0x7bc] sm:$0xff] }
  0x33   : > { %383 = vst [vmem:[%s7410_s15 + $0x280] sm:$0xff] %v382_v0  ;;  %385 = vst [vmem:[%s7410_s15 + $0x288] sm:$0xff] %v384_v1  ;;  %v388_v3 = vld [vmem:[%s7405_s14 + $0x7c4] sm:$0xff]  ;;  %v390_v4 = vld [vmem:[%s7405_s14 + $0x7f8] sm:$0xff] }
  0x34   : > { %387 = vst [vmem:[%s7410_s15 + $0x294] sm:$0xff] %v386_v2  ;;  %389 = vst [vmem:[%s7410_s15 + $0x29c] sm:$0xff] %v388_v3  ;;  %v392_v5 = vld [vmem:[%s7405_s14 + $0x800] sm:$0xff]  ;;  %v394_v6 = vld [vmem:[%s7405_s14 + $0x834] sm:$0xff] }
  0x35   : > { %391 = vst [vmem:[%s7410_s15 + $0x2a8] sm:$0xff] %v390_v4  ;;  %v396_v7 = vld [vmem:[%s7405_s14 + $0x83c] sm:$0xff]  ;;  %393 = vst [vmem:[%s7410_s15 + $0x2b0] sm:$0xff] %v392_v5  ;;  %v398_v8 = vld [vmem:[%s7405_s14 + $0x870] sm:$0xff] }
  0x36   : > { %395 = vst [vmem:[%s7410_s15 + $0x2bc] sm:$0xff] %v394_v6  ;;  %397 = vst [vmem:[%s7410_s15 + $0x2c4] sm:$0xff] %v396_v7  ;;  %v400_v9 = vld [vmem:[%s7405_s14 + $0x878] sm:$0xff]  ;;  %v402_v10 = vld [vmem:[%s7405_s14 + $0x8ac] sm:$0xff] }
  0x37   : > { %399 = vst [vmem:[%s7410_s15 + $0x2d0] sm:$0xff] %v398_v8  ;;  %401 = vst [vmem:[%s7410_s15 + $0x2d8] sm:$0xff] %v400_v9  ;;  %v404_v11 = vld [vmem:[%s7405_s14 + $0x8b4] sm:$0xff]  ;;  %v406_v12 = vld [vmem:[%s7405_s14 + $0x8e8] sm:$0xff] }
  0x38   : > { %403 = vst [vmem:[%s7410_s15 + $0x2e4] sm:$0xff] %v402_v10  ;;  %v408_v13 = vld [vmem:[%s7405_s14 + $0x8f0] sm:$0xff]  ;;  %405 = vst [vmem:[%s7410_s15 + $0x2ec] sm:$0xff] %v404_v11  ;;  %v410_v14 = vld [vmem:[%s7405_s14 + $0x924] sm:$0xff] }
  0x39   : > { %407 = vst [vmem:[%s7410_s15 + $0x2f8] sm:$0xff] %v406_v12  ;;  %409 = vst [vmem:[%s7410_s15 + $0x300] sm:$0xff] %v408_v13  ;;  %v412_v15 = vld [vmem:[%s7405_s14 + $0x92c] sm:$0xff]  ;;  %v414_v16 = vld [vmem:[%s7405_s14 + $0x960] sm:$0xff] }
  0x3a   : > { %411 = vst [vmem:[%s7410_s15 + $0x30c] sm:$0xff] %v410_v14  ;;  %413 = vst [vmem:[%s7410_s15 + $0x314] sm:$0xff] %v412_v15  ;;  %v416_v17 = vld [vmem:[%s7405_s14 + $0x968] sm:$0xff]  ;;  %v418_v18 = vld [vmem:[%s7405_s14 + $0x99c] sm:$0xff] }
  0x3b   : > { %415 = vst [vmem:[%s7410_s15 + $0x320] sm:$0xff] %v414_v16  ;;  %v420_v19 = vld [vmem:[%s7405_s14 + $0x9a4] sm:$0xff]  ;;  %417 = vst [vmem:[%s7410_s15 + $0x328] sm:$0xff] %v416_v17  ;;  %v422_v20 = vld [vmem:[%s7405_s14 + $0x9d8] sm:$0xff] }
  0x3c   : > { %419 = vst [vmem:[%s7410_s15 + $0x334] sm:$0xff] %v418_v18  ;;  %421 = vst [vmem:[%s7410_s15 + $0x33c] sm:$0xff] %v420_v19  ;;  %v424_v21 = vld [vmem:[%s7405_s14 + $0x9e0] sm:$0xff]  ;;  %v426_v22 = vld [vmem:[%s7405_s14 + $0xa14] sm:$0xff] }
  0x3d   : > { %423 = vst [vmem:[%s7410_s15 + $0x348] sm:$0xff] %v422_v20  ;;  %425 = vst [vmem:[%s7410_s15 + $0x350] sm:$0xff] %v424_v21  ;;  %v428_v23 = vld [vmem:[%s7405_s14 + $0xa1c] sm:$0xff]  ;;  %v430_v24 = vld [vmem:[%s7405_s14 + $0xa50] sm:$0xff] }
  0x3e   : > { %427 = vst [vmem:[%s7410_s15 + $0x35c] sm:$0xff] %v426_v22  ;;  %v432_v25 = vld [vmem:[%s7405_s14 + $0xa58] sm:$0xff]  ;;  %429 = vst [vmem:[%s7410_s15 + $0x364] sm:$0xff] %v428_v23  ;;  %v434_v26 = vld [vmem:[%s7405_s14 + $0xa8c] sm:$0xff] }
  0x3f   : > { %431 = vst [vmem:[%s7410_s15 + $0x370] sm:$0xff] %v430_v24  ;;  %433 = vst [vmem:[%s7410_s15 + $0x378] sm:$0xff] %v432_v25  ;;  %v436_v27 = vld [vmem:[%s7405_s14 + $0xa94] sm:$0xff]  ;;  %v438_v28 = vld [vmem:[%s7405_s14 + $0xac8] sm:$0xff] }
  0x40   : > { %435 = vst [vmem:[%s7410_s15 + $0x384] sm:$0xff] %v434_v26  ;;  %437 = vst [vmem:[%s7410_s15 + $0x38c] sm:$0xff] %v436_v27  ;;  %v440_v29 = vld [vmem:[%s7405_s14 + $0xad0] sm:$0xff]  ;;  %v442_v30 = vld [vmem:[%s7405_s14 + $0xb04] sm:$0xff] }
  0x41   : > { %439 = vst [vmem:[%s7410_s15 + $0x398] sm:$0xff] %v438_v28  ;;  %v444_v31 = vld [vmem:[%s7405_s14 + $0xb0c] sm:$0xff]  ;;  %441 = vst [vmem:[%s7410_s15 + $0x3a0] sm:$0xff] %v440_v29  ;;  %v446_v32 = vld [vmem:[%s7405_s14 + $0xb40] sm:$0xff] }
  0x42   : > { %443 = vst [vmem:[%s7410_s15 + $0x3ac] sm:$0xff] %v442_v30  ;;  %445 = vst [vmem:[%s7410_s15 + $0x3b4] sm:$0xff] %v444_v31  ;;  %v448_v33 = vld [vmem:[%s7405_s14 + $0xb48] sm:$0xff]  ;;  %v450_v34 = vld [vmem:[%s7405_s14 + $0xb7c] sm:$0xff] }
  0x43   : > { %447 = vst [vmem:[%s7410_s15 + $0x3c0] sm:$0xff] %v446_v32  ;;  %449 = vst [vmem:[%s7410_s15 + $0x3c8] sm:$0xff] %v448_v33  ;;  %v452_v35 = vld [vmem:[%s7405_s14 + $0xb84] sm:$0xff]  ;;  %v454_v36 = vld [vmem:[%s7405_s14 + $0xbb8] sm:$0xff] }
  0x44   : > { %451 = vst [vmem:[%s7410_s15 + $0x3d4] sm:$0xff] %v450_v34  ;;  %v456_v37 = vld [vmem:[%s7405_s14 + $0xbc0] sm:$0xff]  ;;  %453 = vst [vmem:[%s7410_s15 + $0x3dc] sm:$0xff] %v452_v35  ;;  %v458_v38 = vld [vmem:[%s7405_s14 + $0xbf4] sm:$0xff] }
  0x45   : > { %455 = vst [vmem:[%s7410_s15 + $0x3e8] sm:$0xff] %v454_v36  ;;  %457 = vst [vmem:[%s7410_s15 + $0x3f0] sm:$0xff] %v456_v37  ;;  %v460_v39 = vld [vmem:[%s7405_s14 + $0xbfc] sm:$0xff]  ;;  %v462_v40 = vld [vmem:[%s7405_s14 + $0xc30] sm:$0xff] }
  0x46   : > { %459 = vst [vmem:[%s7410_s15 + $0x3fc] sm:$0xff] %v458_v38  ;;  %461 = vst [vmem:[%s7410_s15 + $0x404] sm:$0xff] %v460_v39  ;;  %v464_v41 = vld [vmem:[%s7405_s14 + $0xc38] sm:$0xff]  ;;  %v466_v42 = vld [vmem:[%s7405_s14 + $0xc6c] sm:$0xff] }
  0x47   : > { %463 = vst [vmem:[%s7410_s15 + $0x410] sm:$0xff] %v462_v40  ;;  %v468_v43 = vld [vmem:[%s7405_s14 + $0xc74] sm:$0xff]  ;;  %465 = vst [vmem:[%s7410_s15 + $0x418] sm:$0xff] %v464_v41  ;;  %v470_v44 = vld [vmem:[%s7405_s14 + $0xca8] sm:$0xff] }
  0x48   : > { %467 = vst [vmem:[%s7410_s15 + $0x424] sm:$0xff] %v466_v42  ;;  %469 = vst [vmem:[%s7410_s15 + $0x42c] sm:$0xff] %v468_v43  ;;  %v472_v45 = vld [vmem:[%s7405_s14 + $0xcb0] sm:$0xff]  ;;  %v474_v46 = vld [vmem:[%s7405_s14 + $0xce4] sm:$0xff] }
  0x49   : > { %471 = vst [vmem:[%s7410_s15 + $0x438] sm:$0xff] %v470_v44  ;;  %473 = vst [vmem:[%s7410_s15 + $0x440] sm:$0xff] %v472_v45  ;;  %v476_v47 = vld [vmem:[%s7405_s14 + $0xcec] sm:$0xff]  ;;  %v478_v48 = vld [vmem:[%s7405_s14 + $0xd20] sm:$0xff] }
  0x4a   : > { %475 = vst [vmem:[%s7410_s15 + $0x44c] sm:$0xff] %v474_v46  ;;  %v480_v49 = vld [vmem:[%s7405_s14 + $0xd28] sm:$0xff]  ;;  %477 = vst [vmem:[%s7410_s15 + $0x454] sm:$0xff] %v476_v47  ;;  %v482_v50 = vld [vmem:[%s7405_s14 + $0xd5c] sm:$0xff] }
  0x4b   : > { %479 = vst [vmem:[%s7410_s15 + $0x460] sm:$0xff] %v478_v48  ;;  %481 = vst [vmem:[%s7410_s15 + $0x468] sm:$0xff] %v480_v49  ;;  %v484_v51 = vld [vmem:[%s7405_s14 + $0xd64] sm:$0xff]  ;;  %v486_v52 = vld [vmem:[%s7405_s14 + $0xd98] sm:$0xff] }
  0x4c   : > { %483 = vst [vmem:[%s7410_s15 + $0x474] sm:$0xff] %v482_v50  ;;  %485 = vst [vmem:[%s7410_s15 + $0x47c] sm:$0xff] %v484_v51  ;;  %v488_v53 = vld [vmem:[%s7405_s14 + $0xda0] sm:$0xff]  ;;  %v490_v54 = vld [vmem:[%s7405_s14 + $0xdd4] sm:$0xff] }
  0x4d   : > { %487 = vst [vmem:[%s7410_s15 + $0x488] sm:$0xff] %v486_v52  ;;  %v492_v55 = vld [vmem:[%s7405_s14 + $0xddc] sm:$0xff]  ;;  %489 = vst [vmem:[%s7410_s15 + $0x490] sm:$0xff] %v488_v53  ;;  %v494_v56 = vld [vmem:[%s7405_s14 + $0xe10] sm:$0xff] }
  0x4e   : > { %491 = vst [vmem:[%s7410_s15 + $0x49c] sm:$0xff] %v490_v54  ;;  %493 = vst [vmem:[%s7410_s15 + $0x4a4] sm:$0xff] %v492_v55  ;;  %v496_v57 = vld [vmem:[%s7405_s14 + $0xe18] sm:$0xff]  ;;  %v498_v58 = vld [vmem:[%s7405_s14 + $0xe4c] sm:$0xff] }
  0x4f   : > { %495 = vst [vmem:[%s7410_s15 + $0x4b0] sm:$0xff] %v494_v56  ;;  %497 = vst [vmem:[%s7410_s15 + $0x4b8] sm:$0xff] %v496_v57  ;;  %v500_v59 = vld [vmem:[%s7405_s14 + $0xe54] sm:$0xff]  ;;  %v502_v60 = vld [vmem:[%s7405_s14 + $0xe88] sm:$0xff] }
  0x50   : > { %499 = vst [vmem:[%s7410_s15 + $0x4c4] sm:$0xff] %v498_v58  ;;  %v504_v61 = vld [vmem:[%s7405_s14 + $0xe90] sm:$0xff]  ;;  %501 = vst [vmem:[%s7410_s15 + $0x4cc] sm:$0xff] %v500_v59  ;;  %v506_v62 = vld [vmem:[%s7405_s14 + $0xec4] sm:$0xff] }
  0x51   : > { %503 = vst [vmem:[%s7410_s15 + $0x4d8] sm:$0xff] %v502_v60  ;;  %505 = vst [vmem:[%s7410_s15 + $0x4e0] sm:$0xff] %v504_v61  ;;  %v508_v63 = vld [vmem:[%s7405_s14 + $0xecc] sm:$0xff]  ;;  %v510_v0 = vld [vmem:[%s7405_s14 + $0xf00] sm:$0xff] }
  0x52   : > { %507 = vst [vmem:[%s7410_s15 + $0x4ec] sm:$0xff] %v506_v62  ;;  %509 = vst [vmem:[%s7410_s15 + $0x4f4] sm:$0xff] %v508_v63  ;;  %v512_v1 = vld [vmem:[%s7405_s14 + $0xf08] sm:$0xff]  ;;  %v514_v2 = vld [vmem:[%s7405_s14 + $0xf3c] sm:$0xff] }
  0x53   : > { %511 = vst [vmem:[%s7410_s15 + $0x500] sm:$0xff] %v510_v0  ;;  %v516_v3 = vld [vmem:[%s7405_s14 + $0xf44] sm:$0xff]  ;;  %513 = vst [vmem:[%s7410_s15 + $0x508] sm:$0xff] %v512_v1  ;;  %v518_v4 = vld [vmem:[%s7405_s14 + $0xf78] sm:$0xff] }
  0x54   : > { %515 = vst [vmem:[%s7410_s15 + $0x514] sm:$0xff] %v514_v2  ;;  %517 = vst [vmem:[%s7410_s15 + $0x51c] sm:$0xff] %v516_v3  ;;  %v520_v5 = vld [vmem:[%s7405_s14 + $0xf80] sm:$0xff]  ;;  %v522_v6 = vld [vmem:[%s7405_s14 + $0xfb4] sm:$0xff] }
  0x55   : > { %519 = vst [vmem:[%s7410_s15 + $0x528] sm:$0xff] %v518_v4  ;;  %521 = vst [vmem:[%s7410_s15 + $0x530] sm:$0xff] %v520_v5  ;;  %v524_v7 = vld [vmem:[%s7405_s14 + $0xfbc] sm:$0xff]  ;;  %v526_v8 = vld [vmem:[%s7405_s14 + $0xff0] sm:$0xff] }
  0x56   : > { %523 = vst [vmem:[%s7410_s15 + $0x53c] sm:$0xff] %v522_v6  ;;  %v528_v9 = vld [vmem:[%s7405_s14 + $0xff8] sm:$0xff]  ;;  %525 = vst [vmem:[%s7410_s15 + $0x544] sm:$0xff] %v524_v7  ;;  %v530_v10 = vld [vmem:[%s7405_s14 + $0x102c] sm:$0xff] }
  0x57   : > { %527 = vst [vmem:[%s7410_s15 + $0x550] sm:$0xff] %v526_v8  ;;  %529 = vst [vmem:[%s7410_s15 + $0x558] sm:$0xff] %v528_v9  ;;  %v532_v11 = vld [vmem:[%s7405_s14 + $0x1034] sm:$0xff]  ;;  %v534_v12 = vld [vmem:[%s7405_s14 + $0x1068] sm:$0xff] }
  0x58   : > { %531 = vst [vmem:[%s7410_s15 + $0x564] sm:$0xff] %v530_v10  ;;  %533 = vst [vmem:[%s7410_s15 + $0x56c] sm:$0xff] %v532_v11  ;;  %v536_v13 = vld [vmem:[%s7405_s14 + $0x1070] sm:$0xff]  ;;  %v538_v14 = vld [vmem:[%s7405_s14 + $0x10a4] sm:$0xff] }
  0x59   : > { %535 = vst [vmem:[%s7410_s15 + $0x578] sm:$0xff] %v534_v12  ;;  %v540_v15 = vld [vmem:[%s7405_s14 + $0x10ac] sm:$0xff]  ;;  %537 = vst [vmem:[%s7410_s15 + $0x580] sm:$0xff] %v536_v13  ;;  %v542_v16 = vld [vmem:[%s7405_s14 + $0x10e0] sm:$0xff] }
  0x5a   : > { %539 = vst [vmem:[%s7410_s15 + $0x58c] sm:$0xff] %v538_v14  ;;  %541 = vst [vmem:[%s7410_s15 + $0x594] sm:$0xff] %v540_v15  ;;  %v544_v17 = vld [vmem:[%s7405_s14 + $0x10e8] sm:$0xff]  ;;  %v546_v18 = vld [vmem:[%s7405_s14 + $0x111c] sm:$0xff] }
  0x5b   : > { %543 = vst [vmem:[%s7410_s15 + $0x5a0] sm:$0xff] %v542_v16  ;;  %545 = vst [vmem:[%s7410_s15 + $0x5a8] sm:$0xff] %v544_v17  ;;  %v548_v19 = vld [vmem:[%s7405_s14 + $0x1124] sm:$0xff]  ;;  %v550_v20 = vld [vmem:[%s7405_s14 + $0x1158] sm:$0xff] }
  0x5c   : > { %547 = vst [vmem:[%s7410_s15 + $0x5b4] sm:$0xff] %v546_v18  ;;  %v552_v21 = vld [vmem:[%s7405_s14 + $0x1160] sm:$0xff]  ;;  %549 = vst [vmem:[%s7410_s15 + $0x5bc] sm:$0xff] %v548_v19  ;;  %v554_v22 = vld [vmem:[%s7405_s14 + $0x1194] sm:$0xff] }
  0x5d   : > { %551 = vst [vmem:[%s7410_s15 + $0x5c8] sm:$0xff] %v550_v20  ;;  %553 = vst [vmem:[%s7410_s15 + $0x5d0] sm:$0xff] %v552_v21  ;;  %v556_v23 = vld [vmem:[%s7405_s14 + $0x119c] sm:$0xff]  ;;  %v558_v24 = vld [vmem:[%s7405_s14 + $0x11d0] sm:$0xff] }
  0x5e   : > { %555 = vst [vmem:[%s7410_s15 + $0x5dc] sm:$0xff] %v554_v22  ;;  %557 = vst [vmem:[%s7410_s15 + $0x5e4] sm:$0xff] %v556_v23  ;;  %v560_v25 = vld [vmem:[%s7405_s14 + $0x11d8] sm:$0xff]  ;;  %v562_v26 = vld [vmem:[%s7405_s14 + $0x120c] sm:$0xff] }
  0x5f   : > { %559 = vst [vmem:[%s7410_s15 + $0x5f0] sm:$0xff] %v558_v24  ;;  %v564_v27 = vld [vmem:[%s7405_s14 + $0x1214] sm:$0xff]  ;;  %561 = vst [vmem:[%s7410_s15 + $0x5f8] sm:$0xff] %v560_v25  ;;  %v566_v28 = vld [vmem:[%s7405_s14 + $0x1248] sm:$0xff] }
  0x60   : > { %563 = vst [vmem:[%s7410_s15 + $0x604] sm:$0xff] %v562_v26  ;;  %565 = vst [vmem:[%s7410_s15 + $0x60c] sm:$0xff] %v564_v27  ;;  %v568_v29 = vld [vmem:[%s7405_s14 + $0x1250] sm:$0xff]  ;;  %v570_v30 = vld [vmem:[%s7405_s14 + $0x1284] sm:$0xff] }
  0x61   : > { %567 = vst [vmem:[%s7410_s15 + $0x618] sm:$0xff] %v566_v28  ;;  %569 = vst [vmem:[%s7410_s15 + $0x620] sm:$0xff] %v568_v29  ;;  %v572_v31 = vld [vmem:[%s7405_s14 + $0x128c] sm:$0xff]  ;;  %v574_v32 = vld [vmem:[%s7405_s14 + $0x12c0] sm:$0xff] }
  0x62   : > { %571 = vst [vmem:[%s7410_s15 + $0x62c] sm:$0xff] %v570_v30  ;;  %v576_v33 = vld [vmem:[%s7405_s14 + $0x12c8] sm:$0xff]  ;;  %573 = vst [vmem:[%s7410_s15 + $0x634] sm:$0xff] %v572_v31  ;;  %v578_v34 = vld [vmem:[%s7405_s14 + $0x12fc] sm:$0xff] }
  0x63   : > { %575 = vst [vmem:[%s7410_s15 + $0x640] sm:$0xff] %v574_v32  ;;  %577 = vst [vmem:[%s7410_s15 + $0x648] sm:$0xff] %v576_v33  ;;  %v580_v35 = vld [vmem:[%s7405_s14 + $0x1304] sm:$0xff]  ;;  %v582_v36 = vld [vmem:[%s7405_s14 + $0x1338] sm:$0xff] }
  0x64   : > { %579 = vst [vmem:[%s7410_s15 + $0x654] sm:$0xff] %v578_v34  ;;  %581 = vst [vmem:[%s7410_s15 + $0x65c] sm:$0xff] %v580_v35  ;;  %v584_v37 = vld [vmem:[%s7405_s14 + $0x1340] sm:$0xff]  ;;  %v586_v38 = vld [vmem:[%s7405_s14 + $0x1374] sm:$0xff] }
  0x65   : > { %583 = vst [vmem:[%s7410_s15 + $0x668] sm:$0xff] %v582_v36  ;;  %v588_v39 = vld [vmem:[%s7405_s14 + $0x137c] sm:$0xff]  ;;  %585 = vst [vmem:[%s7410_s15 + $0x670] sm:$0xff] %v584_v37  ;;  %v590_v40 = vld [vmem:[%s7405_s14 + $0x13b0] sm:$0xff] }
  0x66   : > { %587 = vst [vmem:[%s7410_s15 + $0x67c] sm:$0xff] %v586_v38  ;;  %589 = vst [vmem:[%s7410_s15 + $0x684] sm:$0xff] %v588_v39  ;;  %v592_v41 = vld [vmem:[%s7405_s14 + $0x13b8] sm:$0xff]  ;;  %v594_v42 = vld [vmem:[%s7405_s14 + $0x13ec] sm:$0xff] }
  0x67   : > { %591 = vst [vmem:[%s7410_s15 + $0x690] sm:$0xff] %v590_v40  ;;  %593 = vst [vmem:[%s7410_s15 + $0x698] sm:$0xff] %v592_v41  ;;  %v596_v43 = vld [vmem:[%s7405_s14 + $0x13f4] sm:$0xff]  ;;  %v598_v44 = vld [vmem:[%s7405_s14 + $0x1428] sm:$0xff] }
  0x68   : > { %595 = vst [vmem:[%s7410_s15 + $0x6a4] sm:$0xff] %v594_v42  ;;  %v600_v45 = vld [vmem:[%s7405_s14 + $0x1430] sm:$0xff]  ;;  %597 = vst [vmem:[%s7410_s15 + $0x6ac] sm:$0xff] %v596_v43  ;;  %v602_v46 = vld [vmem:[%s7405_s14 + $0x1464] sm:$0xff] }
  0x69   : > { %599 = vst [vmem:[%s7410_s15 + $0x6b8] sm:$0xff] %v598_v44  ;;  %601 = vst [vmem:[%s7410_s15 + $0x6c0] sm:$0xff] %v600_v45  ;;  %v604_v47 = vld [vmem:[%s7405_s14 + $0x146c] sm:$0xff]  ;;  %v606_v48 = vld [vmem:[%s7405_s14 + $0x14a0] sm:$0xff] }
  0x6a   : > { %603 = vst [vmem:[%s7410_s15 + $0x6cc] sm:$0xff] %v602_v46  ;;  %605 = vst [vmem:[%s7410_s15 + $0x6d4] sm:$0xff] %v604_v47  ;;  %v608_v49 = vld [vmem:[%s7405_s14 + $0x14a8] sm:$0xff]  ;;  %v610_v50 = vld [vmem:[%s7405_s14 + $0x14dc] sm:$0xff] }
  0x6b   : > { %607 = vst [vmem:[%s7410_s15 + $0x6e0] sm:$0xff] %v606_v48  ;;  %v612_v51 = vld [vmem:[%s7405_s14 + $0x14e4] sm:$0xff]  ;;  %609 = vst [vmem:[%s7410_s15 + $0x6e8] sm:$0xff] %v608_v49  ;;  %v614_v52 = vld [vmem:[%s7405_s14 + $0x1518] sm:$0xff] }
  0x6c   : > { %611 = vst [vmem:[%s7410_s15 + $0x6f4] sm:$0xff] %v610_v50  ;;  %613 = vst [vmem:[%s7410_s15 + $0x6fc] sm:$0xff] %v612_v51  ;;  %v616_v53 = vld [vmem:[%s7405_s14 + $0x1520] sm:$0xff]  ;;  %v618_v54 = vld [vmem:[%s7405_s14 + $0x1554] sm:$0xff] }
  0x6d   : > { %615 = vst [vmem:[%s7410_s15 + $0x708] sm:$0xff] %v614_v52  ;;  %617 = vst [vmem:[%s7410_s15 + $0x710] sm:$0xff] %v616_v53  ;;  %v620_v55 = vld [vmem:[%s7405_s14 + $0x155c] sm:$0xff]  ;;  %v622_v56 = vld [vmem:[%s7405_s14 + $0x1590] sm:$0xff] }
  0x6e   : > { %619 = vst [vmem:[%s7410_s15 + $0x71c] sm:$0xff] %v618_v54  ;;  %v624_v57 = vld [vmem:[%s7405_s14 + $0x1598] sm:$0xff]  ;;  %621 = vst [vmem:[%s7410_s15 + $0x724] sm:$0xff] %v620_v55  ;;  %v626_v58 = vld [vmem:[%s7405_s14 + $0x15cc] sm:$0xff] }
  0x6f   : > { %623 = vst [vmem:[%s7410_s15 + $0x730] sm:$0xff] %v622_v56  ;;  %625 = vst [vmem:[%s7410_s15 + $0x738] sm:$0xff] %v624_v57  ;;  %v628_v59 = vld [vmem:[%s7405_s14 + $0x15d4] sm:$0xff]  ;;  %v630_v60 = vld [vmem:[%s7405_s14 + $0x1608] sm:$0xff] }
  0x70   : > { %627 = vst [vmem:[%s7410_s15 + $0x744] sm:$0xff] %v626_v58  ;;  %629 = vst [vmem:[%s7410_s15 + $0x74c] sm:$0xff] %v628_v59  ;;  %v632_v61 = vld [vmem:[%s7405_s14 + $0x1610] sm:$0xff]  ;;  %v634_v62 = vld [vmem:[%s7405_s14 + $0x1644] sm:$0xff] }
  0x71   : > { %631 = vst [vmem:[%s7410_s15 + $0x758] sm:$0xff] %v630_v60  ;;  %v636_v63 = vld [vmem:[%s7405_s14 + $0x164c] sm:$0xff]  ;;  %633 = vst [vmem:[%s7410_s15 + $0x760] sm:$0xff] %v632_v61  ;;  %v638_v0 = vld [vmem:[%s7405_s14 + $0x1680] sm:$0xff] }
  0x72   : > { %635 = vst [vmem:[%s7410_s15 + $0x76c] sm:$0xff] %v634_v62  ;;  %637 = vst [vmem:[%s7410_s15 + $0x774] sm:$0xff] %v636_v63  ;;  %v640_v1 = vld [vmem:[%s7405_s14 + $0x1688] sm:$0xff]  ;;  %v642_v2 = vld [vmem:[%s7405_s14 + $0x16bc] sm:$0xff] }
  0x73   : > { %639 = vst [vmem:[%s7410_s15 + $0x780] sm:$0xff] %v638_v0  ;;  %641 = vst [vmem:[%s7410_s15 + $0x788] sm:$0xff] %v640_v1  ;;  %v644_v3 = vld [vmem:[%s7405_s14 + $0x16c4] sm:$0xff]  ;;  %v646_v4 = vld [vmem:[%s7405_s14 + $0x16f8] sm:$0xff] }
  0x74   : > { %643 = vst [vmem:[%s7410_s15 + $0x794] sm:$0xff] %v642_v2  ;;  %v648_v5 = vld [vmem:[%s7405_s14 + $0x1700] sm:$0xff]  ;;  %645 = vst [vmem:[%s7410_s15 + $0x79c] sm:$0xff] %v644_v3  ;;  %v650_v6 = vld [vmem:[%s7405_s14 + $0x1734] sm:$0xff] }
  0x75   : > { %647 = vst [vmem:[%s7410_s15 + $0x7a8] sm:$0xff] %v646_v4  ;;  %649 = vst [vmem:[%s7410_s15 + $0x7b0] sm:$0xff] %v648_v5  ;;  %v652_v7 = vld [vmem:[%s7405_s14 + $0x173c] sm:$0xff]  ;;  %v654_v8 = vld [vmem:[%s7405_s14 + $0x1770] sm:$0xff] }
  0x76   : > { %651 = vst [vmem:[%s7410_s15 + $0x7bc] sm:$0xff] %v650_v6  ;;  %653 = vst [vmem:[%s7410_s15 + $0x7c4] sm:$0xff] %v652_v7  ;;  %v656_v9 = vld [vmem:[%s7405_s14 + $0x1778] sm:$0xff]  ;;  %v658_v10 = vld [vmem:[%s7405_s14 + $0x17ac] sm:$0xff] }
  0x77   : > { %655 = vst [vmem:[%s7410_s15 + $0x7d0] sm:$0xff] %v654_v8  ;;  %v660_v11 = vld [vmem:[%s7405_s14 + $0x17b4] sm:$0xff]  ;;  %657 = vst [vmem:[%s7410_s15 + $0x7d8] sm:$0xff] %v656_v9  ;;  %v662_v12 = vld [vmem:[%s7405_s14 + $0x17e8] sm:$0xff] }
  0x78   : > { %659 = vst [vmem:[%s7410_s15 + $0x7e4] sm:$0xff] %v658_v10  ;;  %661 = vst [vmem:[%s7410_s15 + $0x7ec] sm:$0xff] %v660_v11  ;;  %v664_v13 = vld [vmem:[%s7405_s14 + $0x17f0] sm:$0xff]  ;;  %v666_v14 = vld [vmem:[%s7405_s14 + $0x1824] sm:$0xff] }
  0x79   : > { %663 = vst [vmem:[%s7410_s15 + $0x7f8] sm:$0xff] %v662_v12  ;;  %665 = vst [vmem:[%s7410_s15 + $0x800] sm:$0xff] %v664_v13  ;;  %v668_v15 = vld [vmem:[%s7405_s14 + $0x182c] sm:$0xff]  ;;  %v670_v16 = vld [vmem:[%s7405_s14 + $0x1860] sm:$0xff] }
  0x7a   : > { %667 = vst [vmem:[%s7410_s15 + $0x80c] sm:$0xff] %v666_v14  ;;  %v672_v17 = vld [vmem:[%s7405_s14 + $0x1868] sm:$0xff]  ;;  %669 = vst [vmem:[%s7410_s15 + $0x814] sm:$0xff] %v668_v15  ;;  %v674_v18 = vld [vmem:[%s7405_s14 + $0x189c] sm:$0xff] }
  0x7b   : > { %671 = vst [vmem:[%s7410_s15 + $0x820] sm:$0xff] %v670_v16  ;;  %673 = vst [vmem:[%s7410_s15 + $0x828] sm:$0xff] %v672_v17  ;;  %v676_v19 = vld [vmem:[%s7405_s14 + $0x18a4] sm:$0xff]  ;;  %v678_v20 = vld [vmem:[%s7405_s14 + $0x18d8] sm:$0xff] }
  0x7c   : > { %675 = vst [vmem:[%s7410_s15 + $0x834] sm:$0xff] %v674_v18  ;;  %677 = vst [vmem:[%s7410_s15 + $0x83c] sm:$0xff] %v676_v19  ;;  %v680_v21 = vld [vmem:[%s7405_s14 + $0x18e0] sm:$0xff]  ;;  %v682_v22 = vld [vmem:[%s7405_s14 + $0x1914] sm:$0xff] }
  0x7d   : > { %679 = vst [vmem:[%s7410_s15 + $0x848] sm:$0xff] %v678_v20  ;;  %v684_v23 = vld [vmem:[%s7405_s14 + $0x191c] sm:$0xff]  ;;  %681 = vst [vmem:[%s7410_s15 + $0x850] sm:$0xff] %v680_v21  ;;  %v686_v24 = vld [vmem:[%s7405_s14 + $0x1950] sm:$0xff] }
  0x7e   : > { %683 = vst [vmem:[%s7410_s15 + $0x85c] sm:$0xff] %v682_v22  ;;  %685 = vst [vmem:[%s7410_s15 + $0x864] sm:$0xff] %v684_v23  ;;  %v688_v25 = vld [vmem:[%s7405_s14 + $0x1958] sm:$0xff]  ;;  %v690_v26 = vld [vmem:[%s7405_s14 + $0x198c] sm:$0xff] }
  0x7f   : > { %687 = vst [vmem:[%s7410_s15 + $0x870] sm:$0xff] %v686_v24  ;;  %689 = vst [vmem:[%s7410_s15 + $0x878] sm:$0xff] %v688_v25  ;;  %v692_v27 = vld [vmem:[%s7405_s14 + $0x1994] sm:$0xff]  ;;  %v694_v28 = vld [vmem:[%s7405_s14 + $0x19c8] sm:$0xff] }
  0x80   : > { %691 = vst [vmem:[%s7410_s15 + $0x884] sm:$0xff] %v690_v26  ;;  %v696_v29 = vld [vmem:[%s7405_s14 + $0x19d0] sm:$0xff]  ;;  %693 = vst [vmem:[%s7410_s15 + $0x88c] sm:$0xff] %v692_v27  ;;  %v698_v30 = vld [vmem:[%s7405_s14 + $0x1a04] sm:$0xff] }
  0x81   : > { %695 = vst [vmem:[%s7410_s15 + $0x898] sm:$0xff] %v694_v28  ;;  %697 = vst [vmem:[%s7410_s15 + $0x8a0] sm:$0xff] %v696_v29  ;;  %v700_v31 = vld [vmem:[%s7405_s14 + $0x1a0c] sm:$0xff]  ;;  %v702_v32 = vld [vmem:[%s7405_s14 + $0x1a40] sm:$0xff] }
  0x82   : > { %699 = vst [vmem:[%s7410_s15 + $0x8ac] sm:$0xff] %v698_v30  ;;  %701 = vst [vmem:[%s7410_s15 + $0x8b4] sm:$0xff] %v700_v31  ;;  %v704_v33 = vld [vmem:[%s7405_s14 + $0x1a48] sm:$0xff]  ;;  %v706_v34 = vld [vmem:[%s7405_s14 + $0x1a7c] sm:$0xff] }
  0x83   : > { %703 = vst [vmem:[%s7410_s15 + $0x8c0] sm:$0xff] %v702_v32  ;;  %v708_v35 = vld [vmem:[%s7405_s14 + $0x1a84] sm:$0xff]  ;;  %705 = vst [vmem:[%s7410_s15 + $0x8c8] sm:$0xff] %v704_v33  ;;  %v710_v36 = vld [vmem:[%s7405_s14 + $0x1ab8] sm:$0xff] }
  0x84   : > { %707 = vst [vmem:[%s7410_s15 + $0x8d4] sm:$0xff] %v706_v34  ;;  %709 = vst [vmem:[%s7410_s15 + $0x8dc] sm:$0xff] %v708_v35  ;;  %v712_v37 = vld [vmem:[%s7405_s14 + $0x1ac0] sm:$0xff]  ;;  %v714_v38 = vld [vmem:[%s7405_s14 + $0x1af4] sm:$0xff] }
  0x85   : > { %711 = vst [vmem:[%s7410_s15 + $0x8e8] sm:$0xff] %v710_v36  ;;  %713 = vst [vmem:[%s7410_s15 + $0x8f0] sm:$0xff] %v712_v37  ;;  %v716_v39 = vld [vmem:[%s7405_s14 + $0x1afc] sm:$0xff]  ;;  %v718_v40 = vld [vmem:[%s7405_s14 + $0x1b30] sm:$0xff] }
  0x86   : > { %715 = vst [vmem:[%s7410_s15 + $0x8fc] sm:$0xff] %v714_v38  ;;  %v720_v41 = vld [vmem:[%s7405_s14 + $0x1b38] sm:$0xff]  ;;  %717 = vst [vmem:[%s7410_s15 + $0x904] sm:$0xff] %v716_v39  ;;  %v722_v42 = vld [vmem:[%s7405_s14 + $0x1b6c] sm:$0xff] }
  0x87   : > { %719 = vst [vmem:[%s7410_s15 + $0x910] sm:$0xff] %v718_v40  ;;  %721 = vst [vmem:[%s7410_s15 + $0x918] sm:$0xff] %v720_v41  ;;  %v724_v43 = vld [vmem:[%s7405_s14 + $0x1b74] sm:$0xff]  ;;  %v726_v44 = vld [vmem:[%s7405_s14 + $0x1ba8] sm:$0xff] }
  0x88   : > { %723 = vst [vmem:[%s7410_s15 + $0x924] sm:$0xff] %v722_v42  ;;  %725 = vst [vmem:[%s7410_s15 + $0x92c] sm:$0xff] %v724_v43  ;;  %v728_v45 = vld [vmem:[%s7405_s14 + $0x1bb0] sm:$0xff]  ;;  %v730_v46 = vld [vmem:[%s7405_s14 + $0x1be4] sm:$0xff] }
  0x89   : > { %727 = vst [vmem:[%s7410_s15 + $0x938] sm:$0xff] %v726_v44  ;;  %v732_v47 = vld [vmem:[%s7405_s14 + $0x1bec] sm:$0xff]  ;;  %729 = vst [vmem:[%s7410_s15 + $0x940] sm:$0xff] %v728_v45  ;;  %v734_v48 = vld [vmem:[%s7405_s14 + $0x1c20] sm:$0xff] }
  0x8a   : > { %731 = vst [vmem:[%s7410_s15 + $0x94c] sm:$0xff] %v730_v46  ;;  %733 = vst [vmem:[%s7410_s15 + $0x954] sm:$0xff] %v732_v47  ;;  %v736_v49 = vld [vmem:[%s7405_s14 + $0x1c28] sm:$0xff]  ;;  %v738_v50 = vld [vmem:[%s7405_s14 + $0x1c5c] sm:$0xff] }
  0x8b   : > { %735 = vst [vmem:[%s7410_s15 + $0x960] sm:$0xff] %v734_v48  ;;  %737 = vst [vmem:[%s7410_s15 + $0x968] sm:$0xff] %v736_v49  ;;  %v740_v51 = vld [vmem:[%s7405_s14 + $0x1c64] sm:$0xff]  ;;  %v742_v52 = vld [vmem:[%s7405_s14 + $0x1c98] sm:$0xff] }
  0x8c   : > { %739 = vst [vmem:[%s7410_s15 + $0x974] sm:$0xff] %v738_v50  ;;  %v744_v53 = vld [vmem:[%s7405_s14 + $0x1ca0] sm:$0xff]  ;;  %741 = vst [vmem:[%s7410_s15 + $0x97c] sm:$0xff] %v740_v51  ;;  %v746_v54 = vld [vmem:[%s7405_s14 + $0x1cd4] sm:$0xff] }
  0x8d   : > { %743 = vst [vmem:[%s7410_s15 + $0x988] sm:$0xff] %v742_v52  ;;  %745 = vst [vmem:[%s7410_s15 + $0x990] sm:$0xff] %v744_v53  ;;  %v748_v55 = vld [vmem:[%s7405_s14 + $0x1cdc] sm:$0xff]  ;;  %v750_v56 = vld [vmem:[%s7405_s14 + $0x1d10] sm:$0xff] }
  0x8e   : > { %747 = vst [vmem:[%s7410_s15 + $0x99c] sm:$0xff] %v746_v54  ;;  %749 = vst [vmem:[%s7410_s15 + $0x9a4] sm:$0xff] %v748_v55  ;;  %v752_v57 = vld [vmem:[%s7405_s14 + $0x1d18] sm:$0xff]  ;;  %v754_v58 = vld [vmem:[%s7405_s14 + $0x1d4c] sm:$0xff] }
  0x8f   : > { %751 = vst [vmem:[%s7410_s15 + $0x9b0] sm:$0xff] %v750_v56  ;;  %v756_v59 = vld [vmem:[%s7405_s14 + $0x1d54] sm:$0xff]  ;;  %753 = vst [vmem:[%s7410_s15 + $0x9b8] sm:$0xff] %v752_v57  ;;  %v758_v60 = vld [vmem:[%s7405_s14 + $0x1d88] sm:$0xff] }
  0x90   : > { %755 = vst [vmem:[%s7410_s15 + $0x9c4] sm:$0xff] %v754_v58  ;;  %757 = vst [vmem:[%s7410_s15 + $0x9cc] sm:$0xff] %v756_v59  ;;  %v760_v61 = vld [vmem:[%s7405_s14 + $0x1d90] sm:$0xff]  ;;  %v762_v62 = vld [vmem:[%s7405_s14 + $0x1dc4] sm:$0xff] }
  0x91   : > { %759 = vst [vmem:[%s7410_s15 + $0x9d8] sm:$0xff] %v758_v60  ;;  %761 = vst [vmem:[%s7410_s15 + $0x9e0] sm:$0xff] %v760_v61  ;;  %v764_v63 = vld [vmem:[%s7405_s14 + $0x1dcc] sm:$0xff]  ;;  %v5836_v2 = vld [vmem:[%s7405_s14 + $0x88] sm:$0xf] }
  0x92   : > { %763 = vst [vmem:[%s7410_s15 + $0x9ec] sm:$0xff] %v762_v62  ;;  %v5832_v0 = vld [vmem:[%s7405_s14 + $0x10] sm:$0xf]  ;;  %v5834_v1 = vld [vmem:[%s7405_s14 + $0x4c] sm:$0xf]  ;;  %765 = vst [vmem:[%s7410_s15 + $0x9f4] sm:$0xff] %v764_v63 }
  0x93   : > { %5833 = vst [vmem:[%s7410_s15 + $0x10] sm:$0xf] %v5832_v0  ;;  %5835 = vst [vmem:[%s7410_s15 + $0x24] sm:$0xf] %v5834_v1  ;;  %v5838_v3 = vld [vmem:[%s7405_s14 + $0xc4] sm:$0xf] }
  0x94   : > { %v5840_v4 = vld [vmem:[%s7405_s14 + $0x100] sm:$0xf]  ;;  %5837 = vst [vmem:[%s7410_s15 + $0x38] sm:$0xf] %v5836_v2  ;;  %5839 = vst [vmem:[%s7410_s15 + $0x4c] sm:$0xf] %v5838_v3 }
  0x95   : > { %5841 = vst [vmem:[%s7410_s15 + $0x60] sm:$0xf] %v5840_v4  ;;  %v5842_v5 = vld [vmem:[%s7405_s14 + $0x13c] sm:$0xf]  ;;  %v5844_v6 = vld [vmem:[%s7405_s14 + $0x178] sm:$0xf] }
  0x96   : > { %v5846_v7 = vld [vmem:[%s7405_s14 + $0x1b4] sm:$0xf]  ;;  %5843 = vst [vmem:[%s7410_s15 + $0x74] sm:$0xf] %v5842_v5  ;;  %5845 = vst [vmem:[%s7410_s15 + $0x88] sm:$0xf] %v5844_v6 }
  0x97   : > { %5847 = vst [vmem:[%s7410_s15 + $0x9c] sm:$0xf] %v5846_v7  ;;  %v5848_v8 = vld [vmem:[%s7405_s14 + $0x1f0] sm:$0xf]  ;;  %v5850_v9 = vld [vmem:[%s7405_s14 + $0x22c] sm:$0xf] }
  0x98   : > { %v5852_v10 = vld [vmem:[%s7405_s14 + $0x268] sm:$0xf]  ;;  %5849 = vst [vmem:[%s7410_s15 + $0xb0] sm:$0xf] %v5848_v8  ;;  %5851 = vst [vmem:[%s7410_s15 + $0xc4] sm:$0xf] %v5850_v9 }
  0x99   : > { %5853 = vst [vmem:[%s7410_s15 + $0xd8] sm:$0xf] %v5852_v10  ;;  %v5854_v11 = vld [vmem:[%s7405_s14 + $0x2a4] sm:$0xf]  ;;  %v5856_v12 = vld [vmem:[%s7405_s14 + $0x2e0] sm:$0xf] }
  0x9a   : > { %v5858_v13 = vld [vmem:[%s7405_s14 + $0x31c] sm:$0xf]  ;;  %5855 = vst [vmem:[%s7410_s15 + $0xec] sm:$0xf] %v5854_v11  ;;  %5857 = vst [vmem:[%s7410_s15 + $0x100] sm:$0xf] %v5856_v12 }
  0x9b   : > { %5859 = vst [vmem:[%s7410_s15 + $0x114] sm:$0xf] %v5858_v13  ;;  %v5860_v14 = vld [vmem:[%s7405_s14 + $0x358] sm:$0xf]  ;;  %v5862_v15 = vld [vmem:[%s7405_s14 + $0x394] sm:$0xf] }
  0x9c   : > { %v5864_v16 = vld [vmem:[%s7405_s14 + $0x3d0] sm:$0xf]  ;;  %5861 = vst [vmem:[%s7410_s15 + $0x128] sm:$0xf] %v5860_v14  ;;  %5863 = vst [vmem:[%s7410_s15 + $0x13c] sm:$0xf] %v5862_v15 }
  0x9d   : > { %5865 = vst [vmem:[%s7410_s15 + $0x150] sm:$0xf] %v5864_v16  ;;  %v5866_v17 = vld [vmem:[%s7405_s14 + $0x40c] sm:$0xf]  ;;  %v5868_v18 = vld [vmem:[%s7405_s14 + $0x448] sm:$0xf] }
  0x9e   : > { %v5870_v19 = vld [vmem:[%s7405_s14 + $0x484] sm:$0xf]  ;;  %5867 = vst [vmem:[%s7410_s15 + $0x164] sm:$0xf] %v5866_v17  ;;  %5869 = vst [vmem:[%s7410_s15 + $0x178] sm:$0xf] %v5868_v18 }
  0x9f   : > { %5871 = vst [vmem:[%s7410_s15 + $0x18c] sm:$0xf] %v5870_v19  ;;  %v5872_v20 = vld [vmem:[%s7405_s14 + $0x4c0] sm:$0xf]  ;;  %v5874_v21 = vld [vmem:[%s7405_s14 + $0x4fc] sm:$0xf] }
  0xa0   : > { %v5876_v22 = vld [vmem:[%s7405_s14 + $0x538] sm:$0xf]  ;;  %5873 = vst [vmem:[%s7410_s15 + $0x1a0] sm:$0xf] %v5872_v20  ;;  %5875 = vst [vmem:[%s7410_s15 + $0x1b4] sm:$0xf] %v5874_v21 }
  0xa1   : > { %5877 = vst [vmem:[%s7410_s15 + $0x1c8] sm:$0xf] %v5876_v22  ;;  %v5878_v23 = vld [vmem:[%s7405_s14 + $0x574] sm:$0xf]  ;;  %v5880_v24 = vld [vmem:[%s7405_s14 + $0x5b0] sm:$0xf] }
  0xa2   : > { %v5882_v25 = vld [vmem:[%s7405_s14 + $0x5ec] sm:$0xf]  ;;  %5879 = vst [vmem:[%s7410_s15 + $0x1dc] sm:$0xf] %v5878_v23  ;;  %5881 = vst [vmem:[%s7410_s15 + $0x1f0] sm:$0xf] %v5880_v24 }
  0xa3   : > { %5883 = vst [vmem:[%s7410_s15 + $0x204] sm:$0xf] %v5882_v25  ;;  %v5884_v26 = vld [vmem:[%s7405_s14 + $0x628] sm:$0xf]  ;;  %v5886_v27 = vld [vmem:[%s7405_s14 + $0x664] sm:$0xf] }
  0xa4   : > { %v5888_v28 = vld [vmem:[%s7405_s14 + $0x6a0] sm:$0xf]  ;;  %5885 = vst [vmem:[%s7410_s15 + $0x218] sm:$0xf] %v5884_v26  ;;  %5887 = vst [vmem:[%s7410_s15 + $0x22c] sm:$0xf] %v5886_v27 }
  0xa5   : > { %5889 = vst [vmem:[%s7410_s15 + $0x240] sm:$0xf] %v5888_v28  ;;  %v5890_v29 = vld [vmem:[%s7405_s14 + $0x6dc] sm:$0xf]  ;;  %v5892_v30 = vld [vmem:[%s7405_s14 + $0x718] sm:$0xf] }
  0xa6   : > { %v5894_v31 = vld [vmem:[%s7405_s14 + $0x754] sm:$0xf]  ;;  %5891 = vst [vmem:[%s7410_s15 + $0x254] sm:$0xf] %v5890_v29  ;;  %5893 = vst [vmem:[%s7410_s15 + $0x268] sm:$0xf] %v5892_v30 }
  0xa7   : > { %5895 = vst [vmem:[%s7410_s15 + $0x27c] sm:$0xf] %v5894_v31  ;;  %v5896_v32 = vld [vmem:[%s7405_s14 + $0x790] sm:$0xf]  ;;  %v5898_v33 = vld [vmem:[%s7405_s14 + $0x7cc] sm:$0xf] }
  0xa8   : > { %v5900_v34 = vld [vmem:[%s7405_s14 + $0x808] sm:$0xf]  ;;  %5897 = vst [vmem:[%s7410_s15 + $0x290] sm:$0xf] %v5896_v32  ;;  %5899 = vst [vmem:[%s7410_s15 + $0x2a4] sm:$0xf] %v5898_v33 }
  0xa9   : > { %5901 = vst [vmem:[%s7410_s15 + $0x2b8] sm:$0xf] %v5900_v34  ;;  %v5902_v35 = vld [vmem:[%s7405_s14 + $0x844] sm:$0xf]  ;;  %v5904_v36 = vld [vmem:[%s7405_s14 + $0x880] sm:$0xf] }
  0xaa   : > { %v5906_v37 = vld [vmem:[%s7405_s14 + $0x8bc] sm:$0xf]  ;;  %5903 = vst [vmem:[%s7410_s15 + $0x2cc] sm:$0xf] %v5902_v35  ;;  %5905 = vst [vmem:[%s7410_s15 + $0x2e0] sm:$0xf] %v5904_v36 }
  0xab   : > { %5907 = vst [vmem:[%s7410_s15 + $0x2f4] sm:$0xf] %v5906_v37  ;;  %v5908_v38 = vld [vmem:[%s7405_s14 + $0x8f8] sm:$0xf]  ;;  %v5910_v39 = vld [vmem:[%s7405_s14 + $0x934] sm:$0xf] }
  0xac   : > { %v5912_v40 = vld [vmem:[%s7405_s14 + $0x970] sm:$0xf]  ;;  %5909 = vst [vmem:[%s7410_s15 + $0x308] sm:$0xf] %v5908_v38  ;;  %5911 = vst [vmem:[%s7410_s15 + $0x31c] sm:$0xf] %v5910_v39 }
  0xad   : > { %5913 = vst [vmem:[%s7410_s15 + $0x330] sm:$0xf] %v5912_v40  ;;  %v5914_v41 = vld [vmem:[%s7405_s14 + $0x9ac] sm:$0xf]  ;;  %v5916_v42 = vld [vmem:[%s7405_s14 + $0x9e8] sm:$0xf] }
  0xae   : > { %v5918_v43 = vld [vmem:[%s7405_s14 + $0xa24] sm:$0xf]  ;;  %5915 = vst [vmem:[%s7410_s15 + $0x344] sm:$0xf] %v5914_v41  ;;  %5917 = vst [vmem:[%s7410_s15 + $0x358] sm:$0xf] %v5916_v42 }
  0xaf   : > { %5919 = vst [vmem:[%s7410_s15 + $0x36c] sm:$0xf] %v5918_v43  ;;  %v5920_v44 = vld [vmem:[%s7405_s14 + $0xa60] sm:$0xf]  ;;  %v5922_v45 = vld [vmem:[%s7405_s14 + $0xa9c] sm:$0xf] }
  0xb0   : > { %v5924_v46 = vld [vmem:[%s7405_s14 + $0xad8] sm:$0xf]  ;;  %5921 = vst [vmem:[%s7410_s15 + $0x380] sm:$0xf] %v5920_v44  ;;  %5923 = vst [vmem:[%s7410_s15 + $0x394] sm:$0xf] %v5922_v45 }
  0xb1   : > { %5925 = vst [vmem:[%s7410_s15 + $0x3a8] sm:$0xf] %v5924_v46  ;;  %v5926_v47 = vld [vmem:[%s7405_s14 + $0xb14] sm:$0xf]  ;;  %v5928_v48 = vld [vmem:[%s7405_s14 + $0xb50] sm:$0xf] }
  0xb2   : > { %v5930_v49 = vld [vmem:[%s7405_s14 + $0xb8c] sm:$0xf]  ;;  %5927 = vst [vmem:[%s7410_s15 + $0x3bc] sm:$0xf] %v5926_v47  ;;  %5929 = vst [vmem:[%s7410_s15 + $0x3d0] sm:$0xf] %v5928_v48 }
  0xb3   : > { %5931 = vst [vmem:[%s7410_s15 + $0x3e4] sm:$0xf] %v5930_v49  ;;  %v5932_v50 = vld [vmem:[%s7405_s14 + $0xbc8] sm:$0xf]  ;;  %v5934_v51 = vld [vmem:[%s7405_s14 + $0xc04] sm:$0xf] }
  0xb4   : > { %v5936_v52 = vld [vmem:[%s7405_s14 + $0xc40] sm:$0xf]  ;;  %5933 = vst [vmem:[%s7410_s15 + $0x3f8] sm:$0xf] %v5932_v50  ;;  %5935 = vst [vmem:[%s7410_s15 + $0x40c] sm:$0xf] %v5934_v51 }
  0xb5   : > { %5937 = vst [vmem:[%s7410_s15 + $0x420] sm:$0xf] %v5936_v52  ;;  %v5938_v53 = vld [vmem:[%s7405_s14 + $0xc7c] sm:$0xf]  ;;  %v5940_v54 = vld [vmem:[%s7405_s14 + $0xcb8] sm:$0xf] }
  0xb6   : > { %v5942_v55 = vld [vmem:[%s7405_s14 + $0xcf4] sm:$0xf]  ;;  %5939 = vst [vmem:[%s7410_s15 + $0x434] sm:$0xf] %v5938_v53  ;;  %5941 = vst [vmem:[%s7410_s15 + $0x448] sm:$0xf] %v5940_v54 }
  0xb7   : > { %5943 = vst [vmem:[%s7410_s15 + $0x45c] sm:$0xf] %v5942_v55  ;;  %v5944_v56 = vld [vmem:[%s7405_s14 + $0xd30] sm:$0xf]  ;;  %v5946_v57 = vld [vmem:[%s7405_s14 + $0xd6c] sm:$0xf] }
  0xb8   : > { %v5948_v58 = vld [vmem:[%s7405_s14 + $0xda8] sm:$0xf]  ;;  %5945 = vst [vmem:[%s7410_s15 + $0x470] sm:$0xf] %v5944_v56  ;;  %5947 = vst [vmem:[%s7410_s15 + $0x484] sm:$0xf] %v5946_v57 }
  0xb9   : > { %5949 = vst [vmem:[%s7410_s15 + $0x498] sm:$0xf] %v5948_v58  ;;  %v5950_v59 = vld [vmem:[%s7405_s14 + $0xde4] sm:$0xf]  ;;  %v5952_v60 = vld [vmem:[%s7405_s14 + $0xe20] sm:$0xf] }
  0xba   : > { %v5954_v61 = vld [vmem:[%s7405_s14 + $0xe5c] sm:$0xf]  ;;  %5951 = vst [vmem:[%s7410_s15 + $0x4ac] sm:$0xf] %v5950_v59  ;;  %5953 = vst [vmem:[%s7410_s15 + $0x4c0] sm:$0xf] %v5952_v60 }
  0xbb   : > { %5955 = vst [vmem:[%s7410_s15 + $0x4d4] sm:$0xf] %v5954_v61  ;;  %v5956_v62 = vld [vmem:[%s7405_s14 + $0xe98] sm:$0xf]  ;;  %v5958_v63 = vld [vmem:[%s7405_s14 + $0xed4] sm:$0xf] }
  0xbc   : > { %v5960_v0 = vld [vmem:[%s7405_s14 + $0xf10] sm:$0xf]  ;;  %5957 = vst [vmem:[%s7410_s15 + $0x4e8] sm:$0xf] %v5956_v62  ;;  %5959 = vst [vmem:[%s7410_s15 + $0x4fc] sm:$0xf] %v5958_v63 }
  0xbd   : > { %5961 = vst [vmem:[%s7410_s15 + $0x510] sm:$0xf] %v5960_v0  ;;  %v5962_v1 = vld [vmem:[%s7405_s14 + $0xf4c] sm:$0xf]  ;;  %v5964_v2 = vld [vmem:[%s7405_s14 + $0xf88] sm:$0xf] }
  0xbe   : > { %v5966_v3 = vld [vmem:[%s7405_s14 + $0xfc4] sm:$0xf]  ;;  %5963 = vst [vmem:[%s7410_s15 + $0x524] sm:$0xf] %v5962_v1  ;;  %5965 = vst [vmem:[%s7410_s15 + $0x538] sm:$0xf] %v5964_v2 }
  0xbf   : > { %5967 = vst [vmem:[%s7410_s15 + $0x54c] sm:$0xf] %v5966_v3  ;;  %v5968_v4 = vld [vmem:[%s7405_s14 + $0x1000] sm:$0xf]  ;;  %v5970_v5 = vld [vmem:[%s7405_s14 + $0x103c] sm:$0xf] }
  0xc0   : > { %v5972_v6 = vld [vmem:[%s7405_s14 + $0x1078] sm:$0xf]  ;;  %5969 = vst [vmem:[%s7410_s15 + $0x560] sm:$0xf] %v5968_v4  ;;  %5971 = vst [vmem:[%s7410_s15 + $0x574] sm:$0xf] %v5970_v5 }
  0xc1   : > { %5973 = vst [vmem:[%s7410_s15 + $0x588] sm:$0xf] %v5972_v6  ;;  %v5974_v7 = vld [vmem:[%s7405_s14 + $0x10b4] sm:$0xf]  ;;  %v5976_v8 = vld [vmem:[%s7405_s14 + $0x10f0] sm:$0xf] }
  0xc2   : > { %v5978_v9 = vld [vmem:[%s7405_s14 + $0x112c] sm:$0xf]  ;;  %5975 = vst [vmem:[%s7410_s15 + $0x59c] sm:$0xf] %v5974_v7  ;;  %5977 = vst [vmem:[%s7410_s15 + $0x5b0] sm:$0xf] %v5976_v8 }
  0xc3   : > { %5979 = vst [vmem:[%s7410_s15 + $0x5c4] sm:$0xf] %v5978_v9  ;;  %v5980_v10 = vld [vmem:[%s7405_s14 + $0x1168] sm:$0xf]  ;;  %v5982_v11 = vld [vmem:[%s7405_s14 + $0x11a4] sm:$0xf] }
  0xc4   : > { %v5984_v12 = vld [vmem:[%s7405_s14 + $0x11e0] sm:$0xf]  ;;  %5981 = vst [vmem:[%s7410_s15 + $0x5d8] sm:$0xf] %v5980_v10  ;;  %5983 = vst [vmem:[%s7410_s15 + $0x5ec] sm:$0xf] %v5982_v11 }
  0xc5   : > { %5985 = vst [vmem:[%s7410_s15 + $0x600] sm:$0xf] %v5984_v12  ;;  %v5986_v13 = vld [vmem:[%s7405_s14 + $0x121c] sm:$0xf]  ;;  %v5988_v14 = vld [vmem:[%s7405_s14 + $0x1258] sm:$0xf] }
  0xc6   : > { %v5990_v15 = vld [vmem:[%s7405_s14 + $0x1294] sm:$0xf]  ;;  %5987 = vst [vmem:[%s7410_s15 + $0x614] sm:$0xf] %v5986_v13  ;;  %5989 = vst [vmem:[%s7410_s15 + $0x628] sm:$0xf] %v5988_v14 }
  0xc7   : > { %5991 = vst [vmem:[%s7410_s15 + $0x63c] sm:$0xf] %v5990_v15  ;;  %v5992_v16 = vld [vmem:[%s7405_s14 + $0x12d0] sm:$0xf]  ;;  %v5994_v17 = vld [vmem:[%s7405_s14 + $0x130c] sm:$0xf] }
  0xc8   : > { %v5996_v18 = vld [vmem:[%s7405_s14 + $0x1348] sm:$0xf]  ;;  %5993 = vst [vmem:[%s7410_s15 + $0x650] sm:$0xf] %v5992_v16  ;;  %5995 = vst [vmem:[%s7410_s15 + $0x664] sm:$0xf] %v5994_v17 }
  0xc9   : > { %5997 = vst [vmem:[%s7410_s15 + $0x678] sm:$0xf] %v5996_v18  ;;  %v5998_v19 = vld [vmem:[%s7405_s14 + $0x1384] sm:$0xf]  ;;  %v6000_v20 = vld [vmem:[%s7405_s14 + $0x13c0] sm:$0xf] }
  0xca   : > { %v6002_v21 = vld [vmem:[%s7405_s14 + $0x13fc] sm:$0xf]  ;;  %5999 = vst [vmem:[%s7410_s15 + $0x68c] sm:$0xf] %v5998_v19  ;;  %6001 = vst [vmem:[%s7410_s15 + $0x6a0] sm:$0xf] %v6000_v20 }
  0xcb   : > { %6003 = vst [vmem:[%s7410_s15 + $0x6b4] sm:$0xf] %v6002_v21  ;;  %v6004_v22 = vld [vmem:[%s7405_s14 + $0x1438] sm:$0xf]  ;;  %v6006_v23 = vld [vmem:[%s7405_s14 + $0x1474] sm:$0xf] }
  0xcc   : > { %v6008_v24 = vld [vmem:[%s7405_s14 + $0x14b0] sm:$0xf]  ;;  %6005 = vst [vmem:[%s7410_s15 + $0x6c8] sm:$0xf] %v6004_v22  ;;  %6007 = vst [vmem:[%s7410_s15 + $0x6dc] sm:$0xf] %v6006_v23 }
  0xcd   : > { %6009 = vst [vmem:[%s7410_s15 + $0x6f0] sm:$0xf] %v6008_v24  ;;  %v6010_v25 = vld [vmem:[%s7405_s14 + $0x14ec] sm:$0xf]  ;;  %v6012_v26 = vld [vmem:[%s7405_s14 + $0x1528] sm:$0xf] }
  0xce   : > { %v6014_v27 = vld [vmem:[%s7405_s14 + $0x1564] sm:$0xf]  ;;  %6011 = vst [vmem:[%s7410_s15 + $0x704] sm:$0xf] %v6010_v25  ;;  %6013 = vst [vmem:[%s7410_s15 + $0x718] sm:$0xf] %v6012_v26 }
  0xcf   : > { %6015 = vst [vmem:[%s7410_s15 + $0x72c] sm:$0xf] %v6014_v27  ;;  %v6016_v28 = vld [vmem:[%s7405_s14 + $0x15a0] sm:$0xf]  ;;  %v6018_v29 = vld [vmem:[%s7405_s14 + $0x15dc] sm:$0xf] }
  0xd0   : > { %v6020_v30 = vld [vmem:[%s7405_s14 + $0x1618] sm:$0xf]  ;;  %6017 = vst [vmem:[%s7410_s15 + $0x740] sm:$0xf] %v6016_v28  ;;  %6019 = vst [vmem:[%s7410_s15 + $0x754] sm:$0xf] %v6018_v29 }
  0xd1   : > { %6021 = vst [vmem:[%s7410_s15 + $0x768] sm:$0xf] %v6020_v30  ;;  %v6022_v31 = vld [vmem:[%s7405_s14 + $0x1654] sm:$0xf]  ;;  %v6024_v32 = vld [vmem:[%s7405_s14 + $0x1690] sm:$0xf] }
  0xd2   : > { %v6026_v33 = vld [vmem:[%s7405_s14 + $0x16cc] sm:$0xf]  ;;  %6023 = vst [vmem:[%s7410_s15 + $0x77c] sm:$0xf] %v6022_v31  ;;  %6025 = vst [vmem:[%s7410_s15 + $0x790] sm:$0xf] %v6024_v32 }
  0xd3   : > { %6027 = vst [vmem:[%s7410_s15 + $0x7a4] sm:$0xf] %v6026_v33  ;;  %v6028_v34 = vld [vmem:[%s7405_s14 + $0x1708] sm:$0xf]  ;;  %v6030_v35 = vld [vmem:[%s7405_s14 + $0x1744] sm:$0xf] }
  0xd4   : > { %v6032_v36 = vld [vmem:[%s7405_s14 + $0x1780] sm:$0xf]  ;;  %6029 = vst [vmem:[%s7410_s15 + $0x7b8] sm:$0xf] %v6028_v34  ;;  %6031 = vst [vmem:[%s7410_s15 + $0x7cc] sm:$0xf] %v6030_v35 }
  0xd5   : > { %6033 = vst [vmem:[%s7410_s15 + $0x7e0] sm:$0xf] %v6032_v36  ;;  %v6034_v37 = vld [vmem:[%s7405_s14 + $0x17bc] sm:$0xf]  ;;  %v6036_v38 = vld [vmem:[%s7405_s14 + $0x17f8] sm:$0xf] }
  0xd6   : > { %v6038_v39 = vld [vmem:[%s7405_s14 + $0x1834] sm:$0xf]  ;;  %6035 = vst [vmem:[%s7410_s15 + $0x7f4] sm:$0xf] %v6034_v37  ;;  %6037 = vst [vmem:[%s7410_s15 + $0x808] sm:$0xf] %v6036_v38 }
  0xd7   : > { %6039 = vst [vmem:[%s7410_s15 + $0x81c] sm:$0xf] %v6038_v39  ;;  %v6040_v40 = vld [vmem:[%s7405_s14 + $0x1870] sm:$0xf]  ;;  %v6042_v41 = vld [vmem:[%s7405_s14 + $0x18ac] sm:$0xf] }
  0xd8   : > { %v6044_v42 = vld [vmem:[%s7405_s14 + $0x18e8] sm:$0xf]  ;;  %6041 = vst [vmem:[%s7410_s15 + $0x830] sm:$0xf] %v6040_v40  ;;  %6043 = vst [vmem:[%s7410_s15 + $0x844] sm:$0xf] %v6042_v41 }
  0xd9   : > { %6045 = vst [vmem:[%s7410_s15 + $0x858] sm:$0xf] %v6044_v42  ;;  %v6046_v43 = vld [vmem:[%s7405_s14 + $0x1924] sm:$0xf]  ;;  %v6048_v44 = vld [vmem:[%s7405_s14 + $0x1960] sm:$0xf] }
  0xda   : > { %v6050_v45 = vld [vmem:[%s7405_s14 + $0x199c] sm:$0xf]  ;;  %6047 = vst [vmem:[%s7410_s15 + $0x86c] sm:$0xf] %v6046_v43  ;;  %6049 = vst [vmem:[%s7410_s15 + $0x880] sm:$0xf] %v6048_v44 }
  0xdb   : > { %6051 = vst [vmem:[%s7410_s15 + $0x894] sm:$0xf] %v6050_v45  ;;  %v6052_v46 = vld [vmem:[%s7405_s14 + $0x19d8] sm:$0xf]  ;;  %v6054_v47 = vld [vmem:[%s7405_s14 + $0x1a14] sm:$0xf] }
  0xdc   : > { %v6056_v48 = vld [vmem:[%s7405_s14 + $0x1a50] sm:$0xf]  ;;  %6053 = vst [vmem:[%s7410_s15 + $0x8a8] sm:$0xf] %v6052_v46  ;;  %6055 = vst [vmem:[%s7410_s15 + $0x8bc] sm:$0xf] %v6054_v47 }
  0xdd   : > { %6057 = vst [vmem:[%s7410_s15 + $0x8d0] sm:$0xf] %v6056_v48  ;;  %v6058_v49 = vld [vmem:[%s7405_s14 + $0x1a8c] sm:$0xf]  ;;  %v6060_v50 = vld [vmem:[%s7405_s14 + $0x1ac8] sm:$0xf] }
  0xde   : > { %v6062_v51 = vld [vmem:[%s7405_s14 + $0x1b04] sm:$0xf]  ;;  %6059 = vst [vmem:[%s7410_s15 + $0x8e4] sm:$0xf] %v6058_v49  ;;  %6061 = vst [vmem:[%s7410_s15 + $0x8f8] sm:$0xf] %v6060_v50 }
  0xdf   : > { %6063 = vst [vmem:[%s7410_s15 + $0x90c] sm:$0xf] %v6062_v51  ;;  %v6064_v52 = vld [vmem:[%s7405_s14 + $0x1b40] sm:$0xf]  ;;  %v6066_v53 = vld [vmem:[%s7405_s14 + $0x1b7c] sm:$0xf] }
  0xe0   : > { %v6068_v54 = vld [vmem:[%s7405_s14 + $0x1bb8] sm:$0xf]  ;;  %6065 = vst [vmem:[%s7410_s15 + $0x920] sm:$0xf] %v6064_v52  ;;  %6067 = vst [vmem:[%s7410_s15 + $0x934] sm:$0xf] %v6066_v53 }
  0xe1   : > { %6069 = vst [vmem:[%s7410_s15 + $0x948] sm:$0xf] %v6068_v54  ;;  %v6070_v55 = vld [vmem:[%s7405_s14 + $0x1bf4] sm:$0xf]  ;;  %v6072_v56 = vld [vmem:[%s7405_s14 + $0x1c30] sm:$0xf] }
  0xe2   : > { %v6074_v57 = vld [vmem:[%s7405_s14 + $0x1c6c] sm:$0xf]  ;;  %6071 = vst [vmem:[%s7410_s15 + $0x95c] sm:$0xf] %v6070_v55  ;;  %6073 = vst [vmem:[%s7410_s15 + $0x970] sm:$0xf] %v6072_v56 }
  0xe3   : > { %6075 = vst [vmem:[%s7410_s15 + $0x984] sm:$0xf] %v6074_v57  ;;  %v6076_v58 = vld [vmem:[%s7405_s14 + $0x1ca8] sm:$0xf]  ;;  %v6078_v59 = vld [vmem:[%s7405_s14 + $0x1ce4] sm:$0xf] }
  0xe4   : > { %v6080_v60 = vld [vmem:[%s7405_s14 + $0x1d20] sm:$0xf]  ;;  %6077 = vst [vmem:[%s7410_s15 + $0x998] sm:$0xf] %v6076_v58  ;;  %6079 = vst [vmem:[%s7410_s15 + $0x9ac] sm:$0xf] %v6078_v59 }
  0xe5   : > { %6081 = vst [vmem:[%s7410_s15 + $0x9c0] sm:$0xf] %v6080_v60  ;;  %v6082_v61 = vld [vmem:[%s7405_s14 + $0x1d5c] sm:$0xf]  ;;  %v6084_v62 = vld [vmem:[%s7405_s14 + $0x1d98] sm:$0xf] }
  0xe6   : > { %v6086_v63 = vld [vmem:[%s7405_s14 + $0x1dd4] sm:$0xf]  ;;  %6083 = vst [vmem:[%s7410_s15 + $0x9d4] sm:$0xf] %v6082_v61  ;;  %6085 = vst [vmem:[%s7410_s15 + $0x9e8] sm:$0xf] %v6084_v62 }
  0xe7   : > { %6087 = vst [vmem:[%s7410_s15 + $0x9fc] sm:$0xf] %v6086_v63 }
  0xe8 PF: > { %p6088_p5 = scmp.ge.s32.totalorder %s7328_s26, 1  ;;  %p1041_p6 = scmp.lt.s32.totalorder %s7328_s26, 4 }
  0xea   : > { %p1042_p7 = pnand %p6088_p5, %p1041_p6 }
  0xeb   : > { %v6846_v0 = vld [vmem:[%s9454_s1 + $0x4] ss:$16 sps:$4 sm:$0xff] (!%p1042_p7)   ;;  %v6848_v1 = vld [vmem:[%s9454_s1] ss:$16 sps:$4 sm:$0xff] (!%p1042_p7)   ;;  %v7330_v2 = vmov (!%p1042_p7), 0   ;;  %v1263_v13 = vld [vmem:[%s9456_s3 + $0x8] sm:$0xff] (!%p1042_p7) }
  0xec   : > { %1045 = sbr.rel (%p1042_p7) target bundleno = 1225 (0x4c9), region = 70  ;;  %1204 = vmatprep.mubr.bf16.mxu0 (!%p1042_p7), %v7330_v2  ;;  %1245 = vmatprep.mubr.bf16.mxu1 (!%p1042_p7), %v7330_v2  ;;  %v6849_v3 = vld [vmem:[%s9454_s1 + $0x24] ss:$16 sps:$4 sm:$0xff] (!%p1042_p7)   ;;  %v6851_v4 = vld [vmem:[%s9454_s1 + $0x20] ss:$16 sps:$4 sm:$0xff] (!%p1042_p7)   ;;  %v1267_v14 = vld [vmem:[%s9456_s3 + $0x28] sm:$0xff] (!%p1042_p7) }
  0xed   : > { %1172 = vmatprep.subr.bf16.mxu0 (!%p1042_p7), %v6846_v0  ;;  %v1096_v5 = vld [vmem:[%s9453_s0] sm:$0xff] (!%p1042_p7)  ;;  %v6852_v6 = vld [vmem:[%s9454_s1 + $0xc] ss:$16 sps:$4 sm:$0xff] (!%p1042_p7)   ;;  %v6854_v7 = vld [vmem:[%s9454_s1 + $0x8] ss:$16 sps:$4 sm:$0xff] (!%p1042_p7)   ;;  %vm1168_vm0 = vcmask (!%p1042_p7), 261120   ;;  %v6103_v19 = vcombine.high (!%p1042_p7), %v1263_v13, %v1267_v14  ;;  %v6102_v25 = vcombine.low (!%p1042_p7), %v1263_v13, %v1267_v14 }
  0xee   : > { %1173 = vmatpush1.bf16.msra.mxu0 (!%p1042_p7), %v6848_v1  ;;  %1213 = vmatprep.subr.bf16.mxu1 (!%p1042_p7), %v6852_v6  ;;  %v6855_v8 = vld [vmem:[%s9454_s1 + $0x2c] ss:$16 sps:$4 sm:$0xff] (!%p1042_p7)   ;;  %v6857_v9 = vld [vmem:[%s9454_s1 + $0x28] ss:$16 sps:$4 sm:$0xff] (!%p1042_p7)   ;;  %v1262_v10 = vld [vmem:[%s9456_s3] sm:$0xff] (!%p1042_p7)  ;;  %v1097_v11 = vpack.c.bf16 (!%p1042_p7), %v1096_v5, %v1096_v5  ;;  %s1048_s10 = sand.u32 (!%p1042_p7), 1, %s7320_s24  }
  0xef   : > { %1174 = vmatprep.subr.bf16.mxu0 (!%p1042_p7), %v6849_v3  ;;  %1214 = vmatpush1.bf16.msra.mxu1 (!%p1042_p7), %v6854_v7  ;;  %v1266_v12 = vld [vmem:[%s9456_s3 + $0x20] sm:$0xff] (!%p1042_p7)  ;;  %v1271_v21 = vld [vmem:[%s9456_s3 + $0x48] sm:$0xff] (!%p1042_p7)  ;;  %s6820_s11 = smul.u32 (!%p1042_p7), 2560, %s1048_s10 }
  0xf0   : > { %1215 = vmatprep.subr.bf16.mxu1 (!%p1042_p7), %v6855_v8  ;;  %v6100_v15 = vcombine.low (!%p1042_p7), %v1262_v10, %v1266_v12  ;;  %v6101_v16 = vcombine.high (!%p1042_p7), %v1262_v10, %v1266_v12  ;;  %v1270_v17 = vld [vmem:[%s9456_s3 + $0x40] sm:$0xff] (!%p1042_p7)  ;;  %v1275_v22 = vld [vmem:[%s9456_s3 + $0x68] sm:$0xff] (!%p1042_p7)  ;;  %s1084_s30 = smul.u32 (!%p1042_p7), 5, %s5827_s27 }
  0xf1   : > { %v1274_v18 = vld [vmem:[%s9456_s3 + $0x60] sm:$0xff] (!%p1042_p7)  ;;  %v6111_v27 = vcombine.high (!%p1042_p7), %v1271_v21, %v1275_v22  ;;  %v1279_v29 = vld [vmem:[%s9456_s3 + $0x88] sm:$0xff] (!%p1042_p7)  ;;  %v6110_v33 = vcombine.low (!%p1042_p7), %v1271_v21, %v1275_v22  ;;  %s8689_s19 = scalar_lea.vmem (!%p1042_p7), [#allocation2], %s6820_s11 }
  0xf2   : > { %1175 = vmatpush1.bf16.msra.mxu0 (!%p1042_p7), %v6851_v4  ;;  %v6109_v20 = vcombine.high (!%p1042_p7), %v1270_v17, %v1274_v18  ;;  %v1278_v23 = vld [vmem:[%s9456_s3 + $0x80] sm:$0xff] (!%p1042_p7)  ;;  %v6108_v26 = vcombine.low (!%p1042_p7), %v1270_v17, %v1274_v18  ;;  %v1283_v30 = vld [vmem:[%s9456_s3 + $0xa8] sm:$0xff] (!%p1042_p7)  ;;  %p1085_p8 = scmp.lt.s32.totalorder (!%p1042_p7), %s1084_s30, 14 }
  0xf3   : > { %2840 = vmatprep.subr.bf16.mxu0 %v6101_v16  ;;  %v1282_v24 = vld [vmem:[%s9456_s3 + $0xa0] sm:$0xff]  ;;  %1216 = vmatpush1.bf16.msra.mxu1 %v6857_v9  ;;  %v6119_v35 = vcombine.high %v1279_v29, %v1283_v30  ;;  %v1287_v37 = vld [vmem:[%s9456_s3 + $0xc8] sm:$0xff]  ;;  %v6118_v41 = vcombine.low %v1279_v29, %v1283_v30 }
  0xf4   : > { %2922 = vmatprep.subr.bf16.mxu1 %v6103_v19  ;;  %v6117_v28 = vcombine.high %v1278_v23, %v1282_v24  ;;  %v1286_v31 = vld [vmem:[%s9456_s3 + $0xc0] sm:$0xff]  ;;  %v6116_v34 = vcombine.low %v1278_v23, %v1282_v24  ;;  %v1291_v38 = vld [vmem:[%s9456_s3 + $0xe8] sm:$0xff]  ;;  %s9465_s30 = smov (!%p1085_p8, %s1084_s30), 14 }
  0xf5   : > { %6098 = vmatmul.mubr.msk.bf16.vlgmr.msra.gmra.mrb[0].mxu0 %vm1168_vm0, %v1097_v11  ;;  %v1290_v32 = vld [vmem:[%s9456_s3 + $0xe0] sm:$0xff]  ;;  %v6127_v43 = vcombine.high %v1287_v37, %v1291_v38  ;;  %v1295_v45 = vld [vmem:[%s9456_s3 + $0x108] sm:$0xff]  ;;  %v6126_v49 = vcombine.low %v1287_v37, %v1291_v38  ;;  %s1087_s11 = scalar_lea.vmem %s9459_s6, %s9465_s30  ;;  %s6089_s12 = sshll.u32 %s9465_s30, 3 }
  0xf6   : > { %2841 = vmatpush1.bf16.msra.mxu0 %v6100_v15  ;;  %6099 = vmatmul.mubr.msk.bf16.vlgmr.msra.gmra.mrb[0].mxu1 %vm1168_vm0, %v1097_v11  ;;  %v6125_v36 = vcombine.high %v1286_v31, %v1290_v32  ;;  %v1294_v39 = vld [vmem:[%s9456_s3 + $0x100] sm:$0xff]  ;;  %v6124_v42 = vcombine.low %v1286_v31, %v1290_v32  ;;  %v1299_v46 = vld [vmem:[%s9456_s3 + $0x128] sm:$0xff]  ;;  %s9434_s26 = scalar_lea.vmem %s9460_s7, %s6089_s12 }
  0xf7   : > { %2842 = vmatprep.subr.bf16.mxu0 %v6109_v20  ;;  %2923 = vmatpush1.bf16.msra.mxu1 %v6102_v25  ;;  %v1298_v40 = vld [vmem:[%s9456_s3 + $0x120] sm:$0xff]  ;;  %v6135_v51 = vcombine.high %v1295_v45, %v1299_v46  ;;  %v1303_v53 = vld [vmem:[%s9456_s3 + $0x148] sm:$0xff]  ;;  %v6134_v57 = vcombine.low %v1295_v45, %v1299_v46 }
  0xf8   : > { %2924 = vmatprep.subr.bf16.mxu1 %v6111_v27  ;;  %v6133_v44 = vcombine.high %v1294_v39, %v1298_v40  ;;  %v1302_v47 = vld [vmem:[%s9456_s3 + $0x140] sm:$0xff]  ;;  %v6132_v50 = vcombine.low %v1294_v39, %v1298_v40  ;;  %v1307_v54 = vld [vmem:[%s9456_s3 + $0x168] sm:$0xff] }
  0xf9   : > { %v1306_v48 = vld [vmem:[%s9456_s3 + $0x160] sm:$0xff]  ;;  %v6143_v59 = vcombine.high %v1303_v53, %v1307_v54  ;;  %v1311_v61 = vld [vmem:[%s9456_s3 + $0x188] sm:$0xff]  ;;  %v6142_v1 = vcombine.low %v1303_v53, %v1307_v54 }
  0xfa   : > { %2843 = vmatpush1.bf16.msra.mxu0 %v6108_v26  ;;  %v6141_v52 = vcombine.high %v1302_v47, %v1306_v48  ;;  %v1310_v55 = vld [vmem:[%s9456_s3 + $0x180] sm:$0xff]  ;;  %v6140_v58 = vcombine.low %v1302_v47, %v1306_v48  ;;  %v1315_v62 = vld [vmem:[%s9456_s3 + $0x1a8] sm:$0xff] }
  0xfb   : > { %2844 = vmatprep.subr.bf16.mxu0 %v6117_v28  ;;  %2925 = vmatpush1.bf16.msra.mxu1 %v6110_v33  ;;  %v1314_v56 = vld [vmem:[%s9456_s3 + $0x1a0] sm:$0xff]  ;;  %v6151_v3 = vcombine.high %v1311_v61, %v1315_v62  ;;  %v1319_v5 = vld [vmem:[%s9456_s3 + $0x1c8] sm:$0xff]  ;;  %v6150_v9 = vcombine.low %v1311_v61, %v1315_v62 }
  0xfc   : > { %2926 = vmatprep.subr.bf16.mxu1 %v6119_v35  ;;  %v6149_v60 = vcombine.high %v1310_v55, %v1314_v56  ;;  %v1318_v63 = vld [vmem:[%s9456_s3 + $0x1c0] sm:$0xff]  ;;  %v6148_v2 = vcombine.low %v1310_v55, %v1314_v56  ;;  %v1323_v6 = vld [vmem:[%s9456_s3 + $0x1e8] sm:$0xff] }
  0xfd   : > { %v1322_v0 = vld [vmem:[%s9456_s3 + $0x1e0] sm:$0xff]  ;;  %v6159_v11 = vcombine.high %v1319_v5, %v1323_v6  ;;  %v1327_v13 = vld [vmem:[%s9456_s3 + $0x208] sm:$0xff]  ;;  %v6158_v17 = vcombine.low %v1319_v5, %v1323_v6 }
  0xfe   : > { %2845 = vmatpush1.bf16.msra.mxu0 %v6116_v34  ;;  %v6157_v4 = vcombine.high %v1318_v63, %v1322_v0  ;;  %v1326_v7 = vld [vmem:[%s9456_s3 + $0x200] sm:$0xff]  ;;  %v6156_v10 = vcombine.low %v1318_v63, %v1322_v0  ;;  %v1331_v14 = vld [vmem:[%s9456_s3 + $0x228] sm:$0xff] }
  0xff   : > { %2846 = vmatprep.subr.bf16.mxu0 %v6125_v36  ;;  %2927 = vmatpush1.bf16.msra.mxu1 %v6118_v41  ;;  %v1330_v8 = vld [vmem:[%s9456_s3 + $0x220] sm:$0xff]  ;;  %v6167_v19 = vcombine.high %v1327_v13, %v1331_v14  ;;  %v1335_v21 = vld [vmem:[%s9456_s3 + $0x248] sm:$0xff]  ;;  %v6166_v25 = vcombine.low %v1327_v13, %v1331_v14 }
 0x100   : > { %2928 = vmatprep.subr.bf16.mxu1 %v6127_v43  ;;  %v6165_v12 = vcombine.high %v1326_v7, %v1330_v8  ;;  %v1334_v15 = vld [vmem:[%s9456_s3 + $0x240] sm:$0xff]  ;;  %v6164_v18 = vcombine.low %v1326_v7, %v1330_v8  ;;  %v1339_v22 = vld [vmem:[%s9456_s3 + $0x268] sm:$0xff] }
 0x101   : > { %v1338_v16 = vld [vmem:[%s9456_s3 + $0x260] sm:$0xff]  ;;  %v6175_v27 = vcombine.high %v1335_v21, %v1339_v22  ;;  %v1343_v29 = vld [vmem:[%s9456_s3 + $0x288] sm:$0xff]  ;;  %v6174_v33 = vcombine.low %v1335_v21, %v1339_v22 }
 0x102   : > { %2847 = vmatpush1.bf16.msra.mxu0 %v6124_v42  ;;  %v6173_v20 = vcombine.high %v1334_v15, %v1338_v16  ;;  %v1342_v23 = vld [vmem:[%s9456_s3 + $0x280] sm:$0xff]  ;;  %v6172_v26 = vcombine.low %v1334_v15, %v1338_v16  ;;  %v1347_v30 = vld [vmem:[%s9456_s3 + $0x2a8] sm:$0xff] }
 0x103   : > { %2848 = vmatprep.subr.bf16.mxu0 %v6133_v44  ;;  %2929 = vmatpush1.bf16.msra.mxu1 %v6126_v49  ;;  %v1346_v24 = vld [vmem:[%s9456_s3 + $0x2a0] sm:$0xff]  ;;  %v6183_v35 = vcombine.high %v1343_v29, %v1347_v30  ;;  %v1351_v37 = vld [vmem:[%s9456_s3 + $0x2c8] sm:$0xff]  ;;  %v6182_v41 = vcombine.low %v1343_v29, %v1347_v30 }
 0x104   : > { %2930 = vmatprep.subr.bf16.mxu1 %v6135_v51  ;;  %v6181_v28 = vcombine.high %v1342_v23, %v1346_v24  ;;  %v1350_v31 = vld [vmem:[%s9456_s3 + $0x2c0] sm:$0xff]  ;;  %v6180_v34 = vcombine.low %v1342_v23, %v1346_v24  ;;  %v1355_v38 = vld [vmem:[%s9456_s3 + $0x2e8] sm:$0xff] }
 0x105   : > { %v1354_v32 = vld [vmem:[%s9456_s3 + $0x2e0] sm:$0xff]  ;;  %v6191_v43 = vcombine.high %v1351_v37, %v1355_v38  ;;  %v1359_v45 = vld [vmem:[%s9456_s3 + $0x308] sm:$0xff]  ;;  %v6190_v49 = vcombine.low %v1351_v37, %v1355_v38 }
 0x106   : > { %2849 = vmatpush1.bf16.msra.mxu0 %v6132_v50  ;;  %v6189_v36 = vcombine.high %v1350_v31, %v1354_v32  ;;  %v1358_v39 = vld [vmem:[%s9456_s3 + $0x300] sm:$0xff]  ;;  %v6188_v42 = vcombine.low %v1350_v31, %v1354_v32  ;;  %v1363_v46 = vld [vmem:[%s9456_s3 + $0x328] sm:$0xff] }
 0x107   : > { %2850 = vmatprep.subr.bf16.mxu0 %v6141_v52  ;;  %2931 = vmatpush1.bf16.msra.mxu1 %v6134_v57  ;;  %v1362_v40 = vld [vmem:[%s9456_s3 + $0x320] sm:$0xff]  ;;  %v6199_v51 = vcombine.high %v1359_v45, %v1363_v46  ;;  %v1367_v53 = vld [vmem:[%s9456_s3 + $0x348] sm:$0xff]  ;;  %v6198_v55 = vcombine.low %v1359_v45, %v1363_v46 }
 0x108   : > { %2932 = vmatprep.subr.bf16.mxu1 %v6143_v59  ;;  %v6197_v44 = vcombine.high %v1358_v39, %v1362_v40  ;;  %v1366_v47 = vld [vmem:[%s9456_s3 + $0x340] sm:$0xff]  ;;  %v6196_v50 = vcombine.low %v1358_v39, %v1362_v40  ;;  %v1371_v54 = vld [vmem:[%s9456_s3 + $0x368] sm:$0xff] }
 0x109   : > { %v1370_v48 = vld [vmem:[%s9456_s3 + $0x360] sm:$0xff]  ;;  %v6207_v57 = vcombine.high %v1367_v53, %v1371_v54  ;;  %v1375_v61 = vld [vmem:[%s9456_s3 + $0x388] sm:$0xff] }
 0x10a   : > { %2851 = vmatpush1.bf16.msra.mxu0 %v6140_v58  ;;  %v6205_v52 = vcombine.high %v1366_v47, %v1370_v48  ;;  %v6204_v56 = vcombine.low %v1366_v47, %v1370_v48  ;;  %v6206_v58 = vcombine.low %v1367_v53, %v1371_v54  ;;  %v1374_v59 = vld [vmem:[%s9456_s3 + $0x380] sm:$0xff]  ;;  %v1379_v63 = vld [vmem:[%s9456_s3 + $0x3a8] sm:$0xff] }
 0x10b   : > { %2852 = vmatprep.subr.bf16.mxu0 %v6149_v60  ;;  %2933 = vmatpush1.bf16.msra.mxu1 %v6142_v1  ;;  %v1378_v60 = vld [vmem:[%s9456_s3 + $0x3a0] sm:$0xff]  ;;  %v6214_v1 = vcombine.low %v1375_v61, %v1379_v63  ;;  %v1383_v5 = vld [vmem:[%s9456_s3 + $0x3c8] sm:$0xff] }
 0x10c   : > { %2934 = vmatprep.subr.bf16.mxu1 %v6151_v3  ;;  %v6213_v62 = vcombine.high %v1374_v59, %v1378_v60  ;;  %v6212_v0 = vcombine.low %v1374_v59, %v1378_v60  ;;  %v1382_v3 = vld [vmem:[%s9456_s3 + $0x3c0] sm:$0xff]  ;;  %v1387_v7 = vld [vmem:[%s9456_s3 + $0x3e8] sm:$0xff] }
 0x10d   : > { %v1391_v13 = vld [vmem:[%s9456_s3 + $0x408] sm:$0xff]  ;;  %v8420_v22 = vld [vmem:[%s9455_s2] sm:$0xf] }
 0x10e   : > { %2853 = vmatpush1.bf16.msra.mxu0 %v6148_v2  ;;  %v6215_v2 = vcombine.high %v1375_v61, %v1379_v63  ;;  %v1395_v15 = vld [vmem:[%s9456_s3 + $0x428] sm:$0xff]  ;;  %v1402_v38 = vld [vmem:[%s9456_s3 + $0x460] sm:$0xff] }
 0x10f   : > { %2854 = vmatprep.subr.bf16.mxu0 %v6157_v4  ;;  %2935 = vmatpush1.bf16.msra.mxu1 %v6150_v9  ;;  %v1386_v4 = vld [vmem:[%s9456_s3 + $0x3e0] sm:$0xff]  ;;  %v6222_v9 = vcombine.low %v1383_v5, %v1387_v7  ;;  %v1399_v39 = vld [vmem:[%s9456_s3 + $0x448] sm:$0xff] }
 0x110   : > { %2936 = vmatprep.subr.bf16.mxu1 %v6159_v11  ;;  %v6221_v6 = vcombine.high %v1382_v3, %v1386_v4  ;;  %v6220_v8 = vcombine.low %v1382_v3, %v1386_v4  ;;  %v1390_v11 = vld [vmem:[%s9456_s3 + $0x400] sm:$0xff]  ;;  %v1403_v40 = vld [vmem:[%s9456_s3 + $0x468] sm:$0xff] }
 0x111   : > { %v6239_v48 = vcombine.high %v1399_v39, %v1403_v40  ;;  %v1411_v53 = vld [vmem:[%s9456_s3 + $0x4a8] sm:$0xff]  ;;  %v1414_v59 = vld [vmem:[%s9456_s3 + $0x4c0] sm:$0xff] }
 0x112   : > { %2855 = vmatpush1.bf16.msra.mxu0 %v6156_v10  ;;  %v6223_v10 = vcombine.high %v1383_v5, %v1387_v7  ;;  %v1418_v60 = vld [vmem:[%s9456_s3 + $0x4e0] sm:$0xff]  ;;  %v1415_v61 = vld [vmem:[%s9456_s3 + $0x4c8] sm:$0xff] }
 0x113   : > { %2856 = vmatprep.subr.bf16.mxu0 %v6165_v12  ;;  %2937 = vmatpush1.bf16.msra.mxu1 %v6158_v17  ;;  %v1394_v12 = vld [vmem:[%s9456_s3 + $0x420] sm:$0xff]  ;;  %v6230_v17 = vcombine.low %v1391_v13, %v1395_v15  ;;  %v1423_v5 = vld [vmem:[%s9456_s3 + $0x508] sm:$0xff]  ;;  %v6252_v7 = vcombine.low %v1414_v59, %v1418_v60 }
 0x114   : > { %2938 = vmatprep.subr.bf16.mxu1 %v6167_v19  ;;  %v6229_v14 = vcombine.high %v1390_v11, %v1394_v12  ;;  %v6228_v16 = vcombine.low %v1390_v11, %v1394_v12  ;;  %v1108_v19 = vlaneseq  ;;  %v1422_v3 = vld [vmem:[%s9456_s3 + $0x500] sm:$0xff] }
 0x115   : > { %v1426_v4 = vld [vmem:[%s9456_s3 + $0x520] sm:$0xff] }
 0x116   : > { %2857 = vmatpush1.bf16.msra.mxu0 %v6164_v18  ;;  %v6231_v18 = vcombine.high %v1391_v13, %v1395_v15  ;;  %v1430_v11 = vld [vmem:[%s9456_s3 + $0x540] sm:$0xff]  ;;  %v1431_v13 = vld [vmem:[%s9456_s3 + $0x548] sm:$0xff]  ;;  %v6260_v15 = vcombine.low %v1422_v3, %v1426_v4 }
 0x117   : > { %2858 = vmatprep.subr.bf16.mxu0 %v6173_v20  ;;  %2939 = vmatpush1.bf16.msra.mxu1 %v6166_v25  ;;  %v8412_v20 = vshrl.u32 %v1108_v19, 7  ;;  %v1434_v12 = vld [vmem:[%s9456_s3 + $0x560] sm:$0xff] }
 0x118   : > { %2940 = vmatprep.subr.bf16.mxu1 %v6175_v27  ;;  %v1438_v19 = vld [vmem:[%s9456_s3 + $0x580] sm:$0xff] }
 0x119   : > { %v8415_v21 = vsub.s32 0, %v8412_v20  ;;  %v8423_v23 = vsub.s32 1, %v8412_v20  ;;  %v8428_v25 = vsub.s32 3, %v8412_v20 }
 0x11a   : > { %2859 = vmatpush1.bf16.msra.mxu0 %v6172_v26 }
 0x11b   : > { %2860 = vmatprep.subr.bf16.mxu0 %v6181_v28  ;;  %2941 = vmatpush1.bf16.msra.mxu1 %v6174_v33  ;;  %v1111_v24 = vrot.slane %v8420_v22, %v8415_v21  ;;  %v1115_v26 = vrot.slane %v8420_v22, %v8423_v23  ;;  %v1123_v30 = vrot.slane %v8420_v22, %v8428_v25 }
 0x11c   : > { %2942 = vmatprep.subr.bf16.mxu1 %v6183_v35  ;;  %v1398_v35 = vld [vmem:[%s9456_s3 + $0x440] sm:$0xff] }
 0x11d   : > { %v6237_v47 = vcombine.high %v1398_v35, %v1402_v38 }
 0x11e   : > { %2861 = vmatpush1.bf16.msra.mxu0 %v6180_v34 }
 0x11f   : > { %2862 = vmatprep.subr.bf16.mxu0 %v6189_v36  ;;  %2943 = vmatpush1.bf16.msra.mxu1 %v6182_v41 }
 0x120   : > { %2944 = vmatprep.subr.bf16.mxu1 %v6191_v43 }
 0x122   : > { %2863 = vmatpush1.bf16.msra.mxu0 %v6188_v42 }
 0x123   : > { %2864 = vmatprep.subr.bf16.mxu0 %v6197_v44  ;;  %2945 = vmatpush1.bf16.msra.mxu1 %v6190_v49  ;;  %v1406_v49 = vld [vmem:[%s9456_s3 + $0x480] sm:$0xff] }
 0x124   : > { %2946 = vmatprep.subr.bf16.mxu1 %v6199_v51  ;;  %v1410_v51 = vld [vmem:[%s9456_s3 + $0x4a0] sm:$0xff] }
 0x125   : > { %v6244_v63 = vcombine.low %v1406_v49, %v1410_v51 }
 0x126   : > { %2865 = vmatpush1.bf16.msra.mxu0 %v6196_v50 }
 0x127   : > { %2866 = vmatprep.subr.bf16.mxu0 %v6205_v52  ;;  %2947 = vmatpush1.bf16.msra.mxu1 %v6198_v55  ;;  %v1407_v52 = vld [vmem:[%s9456_s3 + $0x488] sm:$0xff]  ;;  %v6236_v55 = vcombine.low %v1398_v35, %v1402_v38 }
 0x128   : > { %2948 = vmatprep.subr.bf16.mxu1 %v6207_v57  ;;  %v6245_v57 = vcombine.high %v1406_v49, %v1410_v51  ;;  %v1451_v35 = vld [vmem:[%s9456_s3 + $0x5e8] sm:$0xff]  ;;  %v1462_v51 = vld [vmem:[%s9456_s3 + $0x640] sm:$0xff] }
 0x12a   : > { %2867 = vmatpush1.bf16.msra.mxu0 %v6204_v56  ;;  %v6238_v56 = vcombine.low %v1399_v39, %v1403_v40 }
 0x12b   : > { %2949 = vmatpush1.bf16.msra.mxu1 %v6206_v58  ;;  %2868 = vmatprep.subr.bf16.mxu0 %v6213_v62  ;;  %v6247_v58 = vcombine.high %v1407_v52, %v1411_v53  ;;  %v1419_v62 = vld [vmem:[%s9456_s3 + $0x4e8] sm:$0xff] }
 0x12c   : > { %2950 = vmatprep.subr.bf16.mxu1 %v6215_v2  ;;  %v6255_v2 = vcombine.high %v1415_v61, %v1419_v62 }
 0x12e   : > { %2869 = vmatpush1.bf16.msra.mxu0 %v6212_v0  ;;  %v6246_v0 = vcombine.low %v1407_v52, %v1411_v53  ;;  %v1466_v52 = vld [vmem:[%s9456_s3 + $0x660] sm:$0xff]  ;;  %v1463_v53 = vld [vmem:[%s9456_s3 + $0x648] sm:$0xff] }
 0x12f   : > { %2951 = vmatpush1.bf16.msra.mxu1 %v6214_v1  ;;  %2870 = vmatprep.subr.bf16.mxu0 %v6221_v6  ;;  %v6253_v1 = vcombine.high %v1414_v59, %v1418_v60  ;;  %v1427_v6 = vld [vmem:[%s9456_s3 + $0x528] sm:$0xff]  ;;  %v1470_v60 = vld [vmem:[%s9456_s3 + $0x680] sm:$0xff] }
 0x130   : > { %2952 = vmatprep.subr.bf16.mxu1 %v6223_v10  ;;  %v6263_v10 = vcombine.high %v1423_v5, %v1427_v6 }
 0x132   : > { %2871 = vmatpush1.bf16.msra.mxu0 %v6220_v8  ;;  %v6254_v8 = vcombine.low %v1415_v61, %v1419_v62  ;;  %v1474_v61 = vld [vmem:[%s9456_s3 + $0x6a0] sm:$0xff]  ;;  %v1471_v62 = vld [vmem:[%s9456_s3 + $0x688] sm:$0xff] }
 0x133   : > { %2953 = vmatpush1.bf16.msra.mxu1 %v6222_v9  ;;  %2881 = vmatprep.subr.bf16.mxu0 %v6229_v14  ;;  %v6261_v9 = vcombine.high %v1422_v3, %v1426_v4  ;;  %v1435_v14 = vld [vmem:[%s9456_s3 + $0x568] sm:$0xff]  ;;  %v1478_v4 = vld [vmem:[%s9456_s3 + $0x6c0] sm:$0xff] }
 0x134   : > { %2963 = vmatprep.subr.bf16.mxu1 %v6231_v18  ;;  %v6271_v18 = vcombine.high %v1431_v13, %v1435_v14 }
 0x1c8   : > { %v1206_v27 = vpop.f32.mrb[0].mxu0 }
 0x1c9   : > { %v1207_v28 = vadd.f32 %v1206_v27, %v1111_v24  ;;  %v1208_v29 = vpop.f32.mrb[1].mxu0  ;;  %v8437_v36 = vpop.f32.mrb[0].mxu1  ;;  %v1442_v24 = vld [vmem:[%s9456_s3 + $0x5a0] sm:$0xff]  ;;  %v1443_v27 = vld [vmem:[%s9456_s3 + $0x5a8] sm:$0xff] }
 0x1ca   : > { %v1209_v31 = vadd.f32 %v1208_v29, %v1115_v26  ;;  %v1210_v32 = vpop.f32.mrb[2].mxu0  ;;  %v1249_v41 = vpop.f32.mrb[1].mxu1  ;;  %v1439_v26 = vld [vmem:[%s9456_s3 + $0x588] sm:$0xff]  ;;  %v6270_v29 = vcombine.low %v1431_v13, %v1435_v14  ;;  %v1490_v13 = vld [vmem:[%s9456_s3 + $0x720] sm:$0xff] }
 0x1cb   : > { %v1254_v33 = vmax.f32 %v1207_v28, 0.0  ;;  %v1211_v34 = vpop.f32.mrb[3].mxu0  ;;  %v1250_v42 = vadd.f32 %v1249_v41, %v1123_v30  ;;  %v1251_v43 = vpop.f32.mrb[2].mxu1  ;;  %v6268_v28 = vcombine.low %v1430_v11, %v1434_v12  ;;  %v6277_v30 = vcombine.high %v1438_v19, %v1442_v24  ;;  %v1446_v32 = vld [vmem:[%s9456_s3 + $0x5c0] sm:$0xff]  ;;  %v1487_v14 = vld [vmem:[%s9456_s3 + $0x708] sm:$0xff] }
 0x1cc   : > { %v1255_v37 = vmax.f32 %v1209_v31, 0.0  ;;  %v1252_v45 = vpop.f32.mrb[3].mxu1  ;;  %v6279_v31 = vcombine.high %v1439_v26, %v1443_v27  ;;  %v1447_v34 = vld [vmem:[%s9456_s3 + $0x5c8] sm:$0xff]  ;;  %v6278_v38 = vcombine.low %v1439_v26, %v1443_v27  ;;  %v1454_v41 = vld [vmem:[%s9456_s3 + $0x600] sm:$0xff] }
 0x1cd   : > { %v8450_v46 = vpack.c.bf16 %v1254_v33, %v1254_v33  ;;  %v1257_v50 = vmax.f32 %v1250_v42, 0.0  ;;  %v1450_v33 = vld [vmem:[%s9456_s3 + $0x5e0] sm:$0xff]  ;;  %v6287_v40 = vcombine.high %v1447_v34, %v1451_v35  ;;  %v1455_v43 = vld [vmem:[%s9456_s3 + $0x608] sm:$0xff] }
 0x1ce   : > { %v8448_v44 = vpack.c.bf16 %v1255_v37, %v1255_v37  ;;  %v6276_v37 = vcombine.low %v1438_v19, %v1442_v24  ;;  %v6285_v39 = vcombine.high %v1446_v32, %v1450_v33  ;;  %v1458_v42 = vld [vmem:[%s9456_s3 + $0x620] sm:$0xff]  ;;  %v1459_v45 = vld [vmem:[%s9456_s3 + $0x628] sm:$0xff] }
 0x1cf   : > { %v8468_v54 = vpack.c.bf16 %v1257_v50, %v1257_v50  ;;  %v6293_v49 = vcombine.high %v1454_v41, %v1458_v42  ;;  %v6295_v50 = vcombine.high %v1455_v43, %v1459_v45  ;;  %v1494_v24 = vld [vmem:[%s9456_s3 + $0x740] sm:$0xff]  ;;  %v1495_v27 = vld [vmem:[%s9456_s3 + $0x748] sm:$0xff] }
 0x1d0   : > { %2872 = vmatprep.mubr.bf16.mxu0 %v8448_v44  ;;  %2954 = vmatprep.mubr.bf16.mxu1 %v8448_v44  ;;  %v1498_v26 = vld [vmem:[%s9456_s3 + $0x760] sm:$0xff] }
 0x1d1   : > { %2873 = vmatmul.mubr.bf16.vlgmr.msra.gmra.mrb[4].mxu0 %v8450_v46  ;;  %2955 = vmatmul.mubr.bf16.vlgmr.msra.gmra.mrb[4].mxu1 %v8450_v46 }
 0x1d2   : > { %2882 = vmatpush1.bf16.msra.mxu0 %v6228_v16  ;;  %2964 = vmatpush1.bf16.msra.mxu1 %v6230_v17  ;;  %v6262_v16 = vcombine.low %v1423_v5, %v1427_v6  ;;  %v6269_v17 = vcombine.high %v1430_v11, %v1434_v12  ;;  %v1482_v5 = vld [vmem:[%s9456_s3 + $0x6e0] sm:$0xff]  ;;  %v1479_v6 = vld [vmem:[%s9456_s3 + $0x6c8] sm:$0xff] }
 0x1d3   : > { %2883 = vmatprep.subr.bf16.mxu0 %v6237_v47  ;;  %2965 = vmatprep.subr.bf16.mxu1 %v6239_v48  ;;  %v6284_v47 = vcombine.low %v1446_v32, %v1450_v33  ;;  %v6286_v48 = vcombine.low %v1447_v34, %v1451_v35  ;;  %v1486_v12 = vld [vmem:[%s9456_s3 + $0x700] sm:$0xff]  ;;  %v6333_v32 = vcombine.high %v1494_v24, %v1498_v26 }
 0x1d4   : > { %2913 = vmatprep.mubr.bf16.mxu0 %v8468_v54  ;;  %2995 = vmatprep.mubr.bf16.mxu1 %v8468_v54  ;;  %v1502_v34 = vld [vmem:[%s9456_s3 + $0x780] sm:$0xff] }
 0x1d5   : > { %v1506_v35 = vld [vmem:[%s9456_s3 + $0x7a0] sm:$0xff] }
 0x1d6   : > { %2884 = vmatpush1.bf16.msra.mxu0 %v6236_v55  ;;  %2966 = vmatpush1.bf16.msra.mxu1 %v6238_v56  ;;  %v1467_v55 = vld [vmem:[%s9456_s3 + $0x668] sm:$0xff]  ;;  %v6292_v56 = vcombine.low %v1454_v41, %v1458_v42  ;;  %v6341_v42 = vcombine.high %v1502_v34, %v1506_v35 }
 0x1d7   : > { %2885 = vmatprep.subr.bf16.mxu0 %v6245_v57  ;;  %2967 = vmatprep.subr.bf16.mxu1 %v6247_v58  ;;  %v6294_v57 = vcombine.low %v1455_v43, %v1459_v45  ;;  %v6301_v58 = vcombine.high %v1462_v51, %v1466_v52  ;;  %v6303_v59 = vcombine.high %v1463_v53, %v1467_v55  ;;  %v1510_v45 = vld [vmem:[%s9456_s3 + $0x7c0] sm:$0xff] }
 0x1da   : > { %2886 = vmatpush1.bf16.msra.mxu0 %v6244_v63  ;;  %2968 = vmatpush1.bf16.msra.mxu1 %v6246_v0  ;;  %v1475_v63 = vld [vmem:[%s9456_s3 + $0x6a8] sm:$0xff]  ;;  %v6300_v0 = vcombine.low %v1462_v51, %v1466_v52 }
 0x1db   : > { %2887 = vmatprep.subr.bf16.mxu0 %v6253_v1  ;;  %2969 = vmatprep.subr.bf16.mxu1 %v6255_v2  ;;  %v6302_v1 = vcombine.low %v1463_v53, %v1467_v55  ;;  %v6309_v2 = vcombine.high %v1470_v60, %v1474_v61  ;;  %v6311_v3 = vcombine.high %v1471_v62, %v1475_v63  ;;  %v1264_v55 = vld [vmem:[%s9456_s3 + $0x10] sm:$0xff] }
 0x1de   : > { %2888 = vmatpush1.bf16.msra.mxu0 %v6252_v7  ;;  %2970 = vmatpush1.bf16.msra.mxu1 %v6254_v8  ;;  %v1483_v7 = vld [vmem:[%s9456_s3 + $0x6e8] sm:$0xff]  ;;  %v6308_v8 = vcombine.low %v1470_v60, %v1474_v61 }
 0x1df   : > { %2889 = vmatprep.subr.bf16.mxu0 %v6261_v9  ;;  %2971 = vmatprep.subr.bf16.mxu1 %v6263_v10  ;;  %v6310_v9 = vcombine.low %v1471_v62, %v1475_v63  ;;  %v6317_v10 = vcombine.high %v1478_v4, %v1482_v5  ;;  %v6319_v11 = vcombine.high %v1479_v6, %v1483_v7  ;;  %v1272_v63 = vld [vmem:[%s9456_s3 + $0x50] sm:$0xff] }
 0x1e2   : > { %2890 = vmatpush1.bf16.msra.mxu0 %v6260_v15  ;;  %2972 = vmatpush1.bf16.msra.mxu1 %v6262_v16  ;;  %v1491_v15 = vld [vmem:[%s9456_s3 + $0x728] sm:$0xff]  ;;  %v6316_v16 = vcombine.low %v1478_v4, %v1482_v5 }
 0x1e3   : > { %2891 = vmatprep.subr.bf16.mxu0 %v6269_v17  ;;  %2973 = vmatprep.subr.bf16.mxu1 %v6271_v18  ;;  %v6318_v17 = vcombine.low %v1479_v6, %v1483_v7  ;;  %v6325_v18 = vcombine.high %v1486_v12, %v1490_v13  ;;  %v6327_v19 = vcombine.high %v1487_v14, %v1491_v15 }
 0x1e6   : > { %2892 = vmatpush1.bf16.msra.mxu0 %v6268_v28  ;;  %2974 = vmatpush1.bf16.msra.mxu1 %v6270_v29  ;;  %v1499_v28 = vld [vmem:[%s9456_s3 + $0x768] sm:$0xff]  ;;  %v6324_v29 = vcombine.low %v1486_v12, %v1490_v13 }
 0x1e7   : > { %2893 = vmatprep.subr.bf16.mxu0 %v6277_v30  ;;  %2975 = vmatprep.subr.bf16.mxu1 %v6279_v31  ;;  %v6326_v30 = vcombine.low %v1487_v14, %v1491_v15  ;;  %v8605_v31 = vsub.s32 2, %v8412_v20  ;;  %v6335_v33 = vcombine.high %v1495_v27, %v1499_v28 }
 0x1e9   : > { %v1119_v41 = vrot.slane %v8420_v22, %v8605_v31  ;;  %v1515_v22 = vld [vmem:[%s9456_s3 + $0x7e8] sm:$0xff] }
 0x1ea   : > { %2894 = vmatpush1.bf16.msra.mxu0 %v6276_v37  ;;  %2976 = vmatpush1.bf16.msra.mxu1 %v6278_v38  ;;  %v1503_v37 = vld [vmem:[%s9456_s3 + $0x788] sm:$0xff] }
 0x1eb   : > { %2895 = vmatprep.subr.bf16.mxu0 %v6285_v39  ;;  %2977 = vmatprep.subr.bf16.mxu1 %v6287_v40  ;;  %v1507_v38 = vld [vmem:[%s9456_s3 + $0x7a8] sm:$0xff]  ;;  %v6332_v39 = vcombine.low %v1494_v24, %v1498_v26  ;;  %v6334_v40 = vcombine.low %v1495_v27, %v1499_v28  ;;  %v1248_v51 = vadd.f32 %v8437_v36, %v1119_v41  ;;  %v1269_v36 = vld [vmem:[%s9456_s3 + $0x38] sm:$0xff]  ;;  %v1296_v28 = vld [vmem:[%s9456_s3 + $0x110] sm:$0xff] }
 0x1ec   : > { %v6343_v43 = vcombine.high %v1503_v37, %v1507_v38  ;;  %v1309_v41 = vld [vmem:[%s9456_s3 + $0x178] sm:$0xff] }
 0x1ed   : > { %v1256_v60 = vmax.f32 %v1248_v51, 0.0 }
 0x1ee   : > { %2896 = vmatpush1.bf16.msra.mxu0 %v6284_v47  ;;  %2978 = vmatpush1.bf16.msra.mxu1 %v6286_v48  ;;  %v1514_v47 = vld [vmem:[%s9456_s3 + $0x7e0] sm:$0xff]  ;;  %v1511_v48 = vld [vmem:[%s9456_s3 + $0x7c8] sm:$0xff] }
 0x1ef   : > { %2897 = vmatprep.subr.bf16.mxu0 %v6293_v49  ;;  %2979 = vmatprep.subr.bf16.mxu1 %v6295_v50  ;;  %v6340_v49 = vcombine.low %v1502_v34, %v1506_v35  ;;  %v6342_v50 = vcombine.low %v1503_v37, %v1507_v38  ;;  %v6349_v52 = vcombine.high %v1510_v45, %v1514_v47  ;;  %v1304_v38 = vld [vmem:[%s9456_s3 + $0x150] sm:$0xff] }
 0x1f0   : > { %v6351_v53 = vcombine.high %v1511_v48, %v1515_v22  ;;  %v8658_v4 = vpack.c.bf16 %v1256_v60, %v1256_v60 }
 0x1f2   : > { %2898 = vmatpush1.bf16.msra.mxu0 %v6292_v56  ;;  %2980 = vmatpush1.bf16.msra.mxu1 %v6294_v57  ;;  %v1268_v56 = vld [vmem:[%s9456_s3 + $0x30] sm:$0xff]  ;;  %v1265_v57 = vld [vmem:[%s9456_s3 + $0x18] sm:$0xff] }
 0x1f3   : > { %2899 = vmatprep.subr.bf16.mxu0 %v6301_v58  ;;  %2981 = vmatprep.subr.bf16.mxu1 %v6303_v59  ;;  %v6348_v58 = vcombine.low %v1510_v45, %v1514_v47  ;;  %v6350_v59 = vcombine.low %v1511_v48, %v1515_v22  ;;  %v6105_v61 = vcombine.high %v1264_v55, %v1268_v56  ;;  %v1312_v48 = vld [vmem:[%s9456_s3 + $0x190] sm:$0xff] }
 0x1f4   : > { %v6107_v62 = vcombine.high %v1265_v57, %v1269_v36  ;;  %v6106_v5 = vcombine.low %v1265_v57, %v1269_v36  ;;  %v1316_v22 = vld [vmem:[%s9456_s3 + $0x1b0] sm:$0xff]  ;;  %v1321_v36 = vld [vmem:[%s9456_s3 + $0x1d8] sm:$0xff] }
 0x1f5   : > { %v1324_v57 = vld [vmem:[%s9456_s3 + $0x1f0] sm:$0xff] }
 0x1f6   : > { %2900 = vmatpush1.bf16.msra.mxu0 %v6300_v0  ;;  %2982 = vmatpush1.bf16.msra.mxu1 %v6302_v1  ;;  %v1276_v0 = vld [vmem:[%s9456_s3 + $0x70] sm:$0xff]  ;;  %v1273_v1 = vld [vmem:[%s9456_s3 + $0x58] sm:$0xff] }
 0x1f7   : > { %2901 = vmatprep.subr.bf16.mxu0 %v6309_v2  ;;  %2983 = vmatprep.subr.bf16.mxu1 %v6311_v3  ;;  %v1277_v2 = vld [vmem:[%s9456_s3 + $0x78] sm:$0xff]  ;;  %v6104_v3 = vcombine.low %v1264_v55, %v1268_v56  ;;  %v6113_v6 = vcombine.high %v1272_v63, %v1276_v0  ;;  %v6112_v12 = vcombine.low %v1272_v63, %v1276_v0  ;;  %v1320_v56 = vld [vmem:[%s9456_s3 + $0x1d0] sm:$0xff] }
 0x1f8   : > { %v6115_v7 = vcombine.high %v1273_v1, %v1277_v2  ;;  %v6114_v13 = vcombine.low %v1273_v1, %v1277_v2  ;;  %v1332_v63 = vld [vmem:[%s9456_s3 + $0x230] sm:$0xff]  ;;  %v1329_v1 = vld [vmem:[%s9456_s3 + $0x218] sm:$0xff] }
 0x1f9   : > { %v1333_v2 = vld [vmem:[%s9456_s3 + $0x238] sm:$0xff] }
 0x1fa   : > { %2902 = vmatpush1.bf16.msra.mxu0 %v6308_v8  ;;  %2984 = vmatpush1.bf16.msra.mxu1 %v6310_v9  ;;  %v1280_v8 = vld [vmem:[%s9456_s3 + $0x90] sm:$0xff] }
 0x1fb   : > { %2903 = vmatprep.subr.bf16.mxu0 %v6317_v10  ;;  %2985 = vmatprep.subr.bf16.mxu1 %v6319_v11  ;;  %v1284_v9 = vld [vmem:[%s9456_s3 + $0xb0] sm:$0xff]  ;;  %v1281_v10 = vld [vmem:[%s9456_s3 + $0x98] sm:$0xff] }
 0x1fc   : > { %v1285_v11 = vld [vmem:[%s9456_s3 + $0xb8] sm:$0xff]  ;;  %v6121_v14 = vcombine.high %v1280_v8, %v1284_v9 }
 0x1fd   : > { %v6123_v15 = vcombine.high %v1281_v10, %v1285_v11  ;;  %v6122_v24 = vcombine.low %v1281_v10, %v1285_v11  ;;  %v6171_v10 = vcombine.high %v1329_v1, %v1333_v2  ;;  %v1341_v11 = vld [vmem:[%s9456_s3 + $0x278] sm:$0xff] }
 0x1fe   : > { %2904 = vmatpush1.bf16.msra.mxu0 %v6316_v16  ;;  %2986 = vmatpush1.bf16.msra.mxu1 %v6318_v17  ;;  %v1288_v16 = vld [vmem:[%s9456_s3 + $0xd0] sm:$0xff] }
 0x1ff   : > { %2905 = vmatprep.subr.bf16.mxu0 %v6325_v18  ;;  %2987 = vmatprep.subr.bf16.mxu1 %v6327_v19  ;;  %v1292_v17 = vld [vmem:[%s9456_s3 + $0xf0] sm:$0xff]  ;;  %v1289_v18 = vld [vmem:[%s9456_s3 + $0xd8] sm:$0xff]  ;;  %v6120_v19 = vcombine.low %v1280_v8, %v1284_v9 }
 0x200   : > { %v6129_v26 = vcombine.high %v1288_v16, %v1292_v17  ;;  %v1340_v8 = vld [vmem:[%s9456_s3 + $0x270] sm:$0xff]  ;;  %v1337_v9 = vld [vmem:[%s9456_s3 + $0x258] sm:$0xff] }
 0x202   : > { %2906 = vmatpush1.bf16.msra.mxu0 %v6324_v29  ;;  %2988 = vmatpush1.bf16.msra.mxu1 %v6326_v30  ;;  %v1300_v29 = vld [vmem:[%s9456_s3 + $0x130] sm:$0xff]  ;;  %v1297_v30 = vld [vmem:[%s9456_s3 + $0x118] sm:$0xff] }
 0x203   : > { %2907 = vmatprep.subr.bf16.mxu0 %v6333_v32  ;;  %2989 = vmatprep.subr.bf16.mxu1 %v6335_v33  ;;  %v1301_v32 = vld [vmem:[%s9456_s3 + $0x138] sm:$0xff]  ;;  %v6128_v33 = vcombine.low %v1288_v16, %v1292_v17  ;;  %v6137_v35 = vcombine.high %v1296_v28, %v1300_v29  ;;  %v1348_v16 = vld [vmem:[%s9456_s3 + $0x2b0] sm:$0xff] }
 0x204   : > { %v6139_v37 = vcombine.high %v1297_v30, %v1301_v32  ;;  %v1345_v17 = vld [vmem:[%s9456_s3 + $0x298] sm:$0xff] }
 0x206   : > { %2908 = vmatpush1.bf16.msra.mxu0 %v6332_v39  ;;  %2990 = vmatpush1.bf16.msra.mxu1 %v6334_v40  ;;  %v1308_v39 = vld [vmem:[%s9456_s3 + $0x170] sm:$0xff]  ;;  %v1305_v40 = vld [vmem:[%s9456_s3 + $0x158] sm:$0xff] }
 0x207   : > { %2909 = vmatprep.subr.bf16.mxu0 %v6341_v42  ;;  %2991 = vmatprep.subr.bf16.mxu1 %v6343_v43  ;;  %v6136_v42 = vcombine.low %v1296_v28, %v1300_v29  ;;  %v6138_v43 = vcombine.low %v1297_v30, %v1301_v32  ;;  %v6145_v45 = vcombine.high %v1304_v38, %v1308_v39  ;;  %v1356_v28 = vld [vmem:[%s9456_s3 + $0x2f0] sm:$0xff]  ;;  %v1353_v29 = vld [vmem:[%s9456_s3 + $0x2d8] sm:$0xff] }
 0x208   : > { %v6147_v47 = vcombine.high %v1305_v40, %v1309_v41  ;;  %v6144_v51 = vcombine.low %v1304_v38, %v1308_v39  ;;  %v1357_v32 = vld [vmem:[%s9456_s3 + $0x2f8] sm:$0xff]  ;;  %v1364_v38 = vld [vmem:[%s9456_s3 + $0x330] sm:$0xff] }
 0x209   : > { %v1361_v39 = vld [vmem:[%s9456_s3 + $0x318] sm:$0xff] }
 0x20a   : > { %2910 = vmatpush1.bf16.msra.mxu0 %v6340_v49  ;;  %2992 = vmatpush1.bf16.msra.mxu1 %v6342_v50  ;;  %v1313_v49 = vld [vmem:[%s9456_s3 + $0x198] sm:$0xff] }
 0x20b   : > { %2911 = vmatprep.subr.bf16.mxu0 %v6349_v52  ;;  %2993 = vmatprep.subr.bf16.mxu1 %v6351_v53  ;;  %v1317_v50 = vld [vmem:[%s9456_s3 + $0x1b8] sm:$0xff]  ;;  %v6146_v52 = vcombine.low %v1305_v40, %v1309_v41  ;;  %v6153_v53 = vcombine.high %v1312_v48, %v1316_v22  ;;  %v6195_v40 = vcombine.high %v1353_v29, %v1357_v32 }
 0x20c   : > { %v6155_v55 = vcombine.high %v1313_v49, %v1317_v50  ;;  %v6154_v60 = vcombine.low %v1313_v49, %v1317_v50  ;;  %v1365_v41 = vld [vmem:[%s9456_s3 + $0x338] sm:$0xff] }
 0x20d   : > { %v6203_v49 = vcombine.high %v1361_v39, %v1365_v41  ;;  %v1373_v50 = vld [vmem:[%s9456_s3 + $0x378] sm:$0xff] }
 0x20e   : > { %2912 = vmatpush1.bf16.msra.mxu0 %v6348_v58  ;;  %2994 = vmatpush1.bf16.msra.mxu1 %v6350_v59  ;;  %v1325_v58 = vld [vmem:[%s9456_s3 + $0x1f8] sm:$0xff]  ;;  %v6152_v59 = vcombine.low %v1312_v48, %v1316_v22  ;;  %v1372_v48 = vld [vmem:[%s9456_s3 + $0x370] sm:$0xff] }
 0x20f   : > { %3004 = vmatprep.subr.bf16.mxu0 %v6105_v61  ;;  %3086 = vmatprep.subr.bf16.mxu1 %v6107_v62  ;;  %v6161_v61 = vcombine.high %v1320_v56, %v1324_v57  ;;  %v1328_v62 = vld [vmem:[%s9456_s3 + $0x210] sm:$0xff]  ;;  %v6163_v0 = vcombine.high %v1321_v36, %v1325_v58  ;;  %v1369_v22 = vld [vmem:[%s9456_s3 + $0x358] sm:$0xff] }
 0x211   : > { %2914 = vmatmul.mubr.bf16.vlgmr.msra.gmra.mrb[4].mxu0 %v8658_v4  ;;  %2996 = vmatmul.mubr.bf16.vlgmr.msra.gmra.mrb[4].mxu1 %v8658_v4 }
 0x212   : > { %3005 = vmatpush1.bf16.msra.mxu0 %v6104_v3  ;;  %3036 = vmatprep.mubr.bf16.mxu0 %v8448_v44  ;;  %v6160_v3 = vcombine.low %v1320_v56, %v1324_v57  ;;  %v1380_v56 = vld [vmem:[%s9456_s3 + $0x3b0] sm:$0xff]  ;;  %v1377_v57 = vld [vmem:[%s9456_s3 + $0x398] sm:$0xff] }
 0x213   : > { %3087 = vmatpush1.bf16.msra.mxu1 %v6106_v5  ;;  %3118 = vmatprep.mubr.bf16.mxu1 %v8448_v44  ;;  %v1293_v44 = vld [vmem:[%s9456_s3 + $0xf8] sm:$0xff]  ;;  %v6162_v5 = vcombine.low %v1321_v36, %v1325_v58  ;;  %v6211_v36 = vcombine.high %v1369_v22, %v1373_v50 }
 0x214   : > { %3006 = vmatprep.subr.bf16.mxu0 %v6113_v6  ;;  %3088 = vmatprep.subr.bf16.mxu1 %v6115_v7  ;;  %v6131_v27 = vcombine.high %v1289_v18, %v1293_v44  ;;  %v6130_v34 = vcombine.low %v1289_v18, %v1293_v44  ;;  %v6169_v6 = vcombine.high %v1328_v62, %v1332_v63  ;;  %v1336_v7 = vld [vmem:[%s9456_s3 + $0x250] sm:$0xff]  ;;  %v1349_v44 = vld [vmem:[%s9456_s3 + $0x2b8] sm:$0xff] }
 0x215   : > { %v6179_v18 = vcombine.high %v1337_v9, %v1341_v11  ;;  %v6187_v30 = vcombine.high %v1345_v17, %v1349_v44  ;;  %v1381_v58 = vld [vmem:[%s9456_s3 + $0x3b8] sm:$0xff] }
 0x216   : > { %3007 = vmatpush1.bf16.msra.mxu0 %v6112_v12  ;;  %v6168_v12 = vcombine.low %v1328_v62, %v1332_v63  ;;  %v1384_v62 = vld [vmem:[%s9456_s3 + $0x3d0] sm:$0xff] }
 0x217   : > { %3089 = vmatpush1.bf16.msra.mxu1 %v6114_v13  ;;  %3008 = vmatprep.subr.bf16.mxu0 %v6121_v14  ;;  %v6170_v13 = vcombine.low %v1329_v1, %v1333_v2  ;;  %v6177_v14 = vcombine.high %v1336_v7, %v1340_v8  ;;  %v1388_v63 = vld [vmem:[%s9456_s3 + $0x3f0] sm:$0xff]  ;;  %v6219_v1 = vcombine.high %v1377_v57, %v1381_v58  ;;  %v1389_v2 = vld [vmem:[%s9456_s3 + $0x3f8] sm:$0xff] }
 0x218   : > { %3090 = vmatprep.subr.bf16.mxu1 %v6123_v15  ;;  %v1344_v15 = vld [vmem:[%s9456_s3 + $0x290] sm:$0xff] }
 0x21a   : > { %3009 = vmatpush1.bf16.msra.mxu0 %v6120_v19  ;;  %v6176_v19 = vcombine.low %v1336_v7, %v1340_v8  ;;  %v6218_v7 = vcombine.low %v1377_v57, %v1381_v58  ;;  %v6225_v8 = vcombine.high %v1384_v62, %v1388_v63  ;;  %v1440_v58 = vld [vmem:[%s9456_s3 + $0x590] sm:$0xff] }
 0x21b   : > { %3091 = vmatpush1.bf16.msra.mxu1 %v6122_v24  ;;  %3010 = vmatprep.subr.bf16.mxu0 %v6129_v26  ;;  %v6178_v24 = vcombine.low %v1337_v9, %v1341_v11  ;;  %v6185_v26 = vcombine.high %v1344_v15, %v1348_v16  ;;  %v1393_v9 = vld [vmem:[%s9456_s3 + $0x418] sm:$0xff] }
 0x21c   : > { %3092 = vmatprep.subr.bf16.mxu1 %v6131_v27  ;;  %v1352_v27 = vld [vmem:[%s9456_s3 + $0x2d0] sm:$0xff] }
 0x21e   : > { %3011 = vmatpush1.bf16.msra.mxu0 %v6128_v33  ;;  %v6184_v33 = vcombine.low %v1344_v15, %v1348_v16  ;;  %v1400_v15 = vld [vmem:[%s9456_s3 + $0x450] sm:$0xff] }
 0x21f   : > { %3093 = vmatpush1.bf16.msra.mxu1 %v6130_v34  ;;  %3012 = vmatprep.subr.bf16.mxu0 %v6137_v35  ;;  %v6186_v34 = vcombine.low %v1345_v17, %v1349_v44  ;;  %v6193_v35 = vcombine.high %v1352_v27, %v1356_v28  ;;  %v1404_v16 = vld [vmem:[%s9456_s3 + $0x470] sm:$0xff]  ;;  %v1405_v44 = vld [vmem:[%s9456_s3 + $0x478] sm:$0xff] }
 0x220   : > { %3094 = vmatprep.subr.bf16.mxu1 %v6139_v37  ;;  %v1360_v37 = vld [vmem:[%s9456_s3 + $0x310] sm:$0xff] }
 0x222   : > { %3013 = vmatpush1.bf16.msra.mxu0 %v6136_v42  ;;  %v6192_v42 = vcombine.low %v1352_v27, %v1356_v28  ;;  %v1409_v28 = vld [vmem:[%s9456_s3 + $0x498] sm:$0xff] }
 0x223   : > { %3095 = vmatpush1.bf16.msra.mxu1 %v6138_v43  ;;  %3014 = vmatprep.subr.bf16.mxu0 %v6145_v45  ;;  %v6194_v43 = vcombine.low %v1353_v29, %v1357_v32  ;;  %v6201_v45 = vcombine.high %v1360_v37, %v1364_v38  ;;  %v1413_v29 = vld [vmem:[%s9456_s3 + $0x4b8] sm:$0xff] }
 0x224   : > { %3096 = vmatprep.subr.bf16.mxu1 %v6147_v47  ;;  %v1368_v47 = vld [vmem:[%s9456_s3 + $0x350] sm:$0xff] }
 0x226   : > { %3015 = vmatpush1.bf16.msra.mxu0 %v6144_v51  ;;  %v6200_v51 = vcombine.low %v1360_v37, %v1364_v38 }
 0x227   : > { %3097 = vmatpush1.bf16.msra.mxu1 %v6146_v52  ;;  %3016 = vmatprep.subr.bf16.mxu0 %v6153_v53  ;;  %v6202_v52 = vcombine.low %v1361_v39, %v1365_v41  ;;  %v6209_v53 = vcombine.high %v1368_v47, %v1372_v48  ;;  %v1417_v39 = vld [vmem:[%s9456_s3 + $0x4d8] sm:$0xff] }
 0x228   : > { %3098 = vmatprep.subr.bf16.mxu1 %v6155_v55  ;;  %v1376_v55 = vld [vmem:[%s9456_s3 + $0x390] sm:$0xff] }
 0x22a   : > { %3017 = vmatpush1.bf16.msra.mxu0 %v6152_v59  ;;  %v6208_v59 = vcombine.low %v1368_v47, %v1372_v48  ;;  %v1429_v48 = vld [vmem:[%s9456_s3 + $0x538] sm:$0xff] }
 0x22b   : > { %3099 = vmatpush1.bf16.msra.mxu1 %v6154_v60  ;;  %3018 = vmatprep.subr.bf16.mxu0 %v6161_v61  ;;  %v6210_v60 = vcombine.low %v1369_v22, %v1373_v50  ;;  %v6217_v61 = vcombine.high %v1376_v55, %v1380_v56  ;;  %v1432_v50 = vld [vmem:[%s9456_s3 + $0x550] sm:$0xff] }
 0x22c   : > { %3100 = vmatprep.subr.bf16.mxu1 %v6163_v0  ;;  %v1385_v0 = vld [vmem:[%s9456_s3 + $0x3d8] sm:$0xff] }
 0x22d   : > { %v6227_v11 = vcombine.high %v1385_v0, %v1389_v2 }
 0x22e   : > { %3019 = vmatpush1.bf16.msra.mxu0 %v6160_v3  ;;  %v6216_v3 = vcombine.low %v1376_v55, %v1380_v56  ;;  %v1433_v55 = vld [vmem:[%s9456_s3 + $0x558] sm:$0xff] }
 0x22f   : > { %3101 = vmatpush1.bf16.msra.mxu1 %v6162_v5  ;;  %3020 = vmatprep.subr.bf16.mxu0 %v6169_v6  ;;  %v1392_v5 = vld [vmem:[%s9456_s3 + $0x410] sm:$0xff]  ;;  %v1437_v56 = vld [vmem:[%s9456_s3 + $0x578] sm:$0xff] }
 0x230   : > { %3102 = vmatprep.subr.bf16.mxu1 %v6171_v10  ;;  %v1396_v6 = vld [vmem:[%s9456_s3 + $0x430] sm:$0xff]  ;;  %v1397_v10 = vld [vmem:[%s9456_s3 + $0x438] sm:$0xff] }
 0x231   : > { %v6235_v17 = vcombine.high %v1393_v9, %v1397_v10  ;;  %v6234_v27 = vcombine.low %v1393_v9, %v1397_v10  ;;  %v1453_v9 = vld [vmem:[%s9456_s3 + $0x5f8] sm:$0xff] }
 0x232   : > { %3021 = vmatpush1.bf16.msra.mxu0 %v6168_v12  ;;  %v6224_v12 = vcombine.low %v1384_v62, %v1388_v63  ;;  %v1441_v62 = vld [vmem:[%s9456_s3 + $0x598] sm:$0xff] }
 0x233   : > { %3103 = vmatpush1.bf16.msra.mxu1 %v6170_v13  ;;  %3022 = vmatprep.subr.bf16.mxu0 %v6177_v14  ;;  %v6226_v13 = vcombine.low %v1385_v0, %v1389_v2  ;;  %v6233_v14 = vcombine.high %v1392_v5, %v1396_v6  ;;  %v1445_v63 = vld [vmem:[%s9456_s3 + $0x5b8] sm:$0xff]  ;;  %v6275_v0 = vcombine.high %v1433_v55, %v1437_v56 }
 0x234   : > { %3104 = vmatprep.subr.bf16.mxu1 %v6179_v18  ;;  %v1401_v18 = vld [vmem:[%s9456_s3 + $0x458] sm:$0xff]  ;;  %v6274_v2 = vcombine.low %v1433_v55, %v1437_v56 }
 0x235   : > { %v6243_v32 = vcombine.high %v1401_v18, %v1405_v44  ;;  %v6242_v37 = vcombine.low %v1401_v18, %v1405_v44 }
 0x236   : > { %3023 = vmatpush1.bf16.msra.mxu0 %v6176_v19  ;;  %v6232_v19 = vcombine.low %v1392_v5, %v1396_v6  ;;  %v6283_v5 = vcombine.high %v1441_v62, %v1445_v63  ;;  %v1448_v6 = vld [vmem:[%s9456_s3 + $0x5d0] sm:$0xff] }
 0x237   : > { %3105 = vmatpush1.bf16.msra.mxu1 %v6178_v24  ;;  %3024 = vmatprep.subr.bf16.mxu0 %v6185_v26  ;;  %v1408_v24 = vld [vmem:[%s9456_s3 + $0x490] sm:$0xff] }
 0x238   : > { %3106 = vmatprep.subr.bf16.mxu1 %v6187_v30  ;;  %v1412_v26 = vld [vmem:[%s9456_s3 + $0x4b0] sm:$0xff]  ;;  %v6241_v30 = vcombine.high %v1400_v15, %v1404_v16 }
 0x239   : > { %v6249_v38 = vcombine.high %v1408_v24, %v1412_v26  ;;  %v6248_v41 = vcombine.low %v1408_v24, %v1412_v26  ;;  %v1464_v26 = vld [vmem:[%s9456_s3 + $0x650] sm:$0xff] }
 0x23a   : > { %3025 = vmatpush1.bf16.msra.mxu0 %v6184_v33  ;;  %v6240_v33 = vcombine.low %v1400_v15, %v1404_v16  ;;  %v1460_v15 = vld [vmem:[%s9456_s3 + $0x630] sm:$0xff]  ;;  %v1457_v16 = vld [vmem:[%s9456_s3 + $0x618] sm:$0xff] }
 0x23b   : > { %3107 = vmatpush1.bf16.msra.mxu1 %v6186_v34  ;;  %3026 = vmatprep.subr.bf16.mxu0 %v6193_v35  ;;  %v1416_v34 = vld [vmem:[%s9456_s3 + $0x4d0] sm:$0xff] }
 0x23c   : > { %3108 = vmatprep.subr.bf16.mxu1 %v6195_v40  ;;  %v1420_v35 = vld [vmem:[%s9456_s3 + $0x4f0] sm:$0xff]  ;;  %v6251_v40 = vcombine.high %v1409_v28, %v1413_v29 }
 0x23d   : > { %v6257_v47 = vcombine.high %v1416_v34, %v1420_v35 }
 0x23e   : > { %3027 = vmatpush1.bf16.msra.mxu0 %v6192_v42  ;;  %v1424_v42 = vld [vmem:[%s9456_s3 + $0x510] sm:$0xff] }
 0x23f   : > { %3109 = vmatpush1.bf16.msra.mxu1 %v6194_v43  ;;  %3028 = vmatprep.subr.bf16.mxu0 %v6201_v45  ;;  %v1428_v43 = vld [vmem:[%s9456_s3 + $0x530] sm:$0xff]  ;;  %v6250_v45 = vcombine.low %v1409_v28, %v1413_v29  ;;  %v1465_v28 = vld [vmem:[%s9456_s3 + $0x658] sm:$0xff] }
 0x240   : > { %3110 = vmatprep.subr.bf16.mxu1 %v6203_v49  ;;  %v6256_v49 = vcombine.low %v1416_v34, %v1420_v35  ;;  %v1469_v29 = vld [vmem:[%s9456_s3 + $0x678] sm:$0xff]  ;;  %v1472_v34 = vld [vmem:[%s9456_s3 + $0x690] sm:$0xff] }
 0x241   : > { %v1476_v35 = vld [vmem:[%s9456_s3 + $0x6b0] sm:$0xff] }
 0x242   : > { %3029 = vmatpush1.bf16.msra.mxu0 %v6200_v51  ;;  %v1436_v51 = vld [vmem:[%s9456_s3 + $0x570] sm:$0xff] }
 0x243   : > { %3111 = vmatpush1.bf16.msra.mxu1 %v6202_v52  ;;  %3030 = vmatprep.subr.bf16.mxu0 %v6209_v53  ;;  %v6265_v53 = vcombine.high %v1424_v42, %v1428_v43 }
 0x244   : > { %3112 = vmatprep.subr.bf16.mxu1 %v6211_v36  ;;  %v6264_v36 = vcombine.low %v1424_v42, %v1428_v43  ;;  %v6306_v42 = vcombine.low %v1465_v28, %v1469_v29  ;;  %v6313_v43 = vcombine.high %v1472_v34, %v1476_v35 }
 0x246   : > { %3031 = vmatpush1.bf16.msra.mxu0 %v6208_v59  ;;  %v1444_v59 = vld [vmem:[%s9456_s3 + $0x5b0] sm:$0xff] }
 0x247   : > { %3113 = vmatpush1.bf16.msra.mxu1 %v6210_v60  ;;  %3032 = vmatprep.subr.bf16.mxu0 %v6217_v61  ;;  %v6273_v61 = vcombine.high %v1432_v50, %v1436_v51  ;;  %v6280_v10 = vcombine.low %v1440_v58, %v1444_v59 }
 0x248   : > { %3114 = vmatprep.subr.bf16.mxu1 %v6219_v1  ;;  %v6272_v1 = vcombine.low %v1432_v50, %v1436_v51 }
 0x24a   : > { %3033 = vmatpush1.bf16.msra.mxu0 %v6216_v3  ;;  %v6281_v3 = vcombine.high %v1440_v58, %v1444_v59 }
 0x24b   : > { %3115 = vmatpush1.bf16.msra.mxu1 %v6218_v7  ;;  %3034 = vmatprep.subr.bf16.mxu0 %v6225_v8  ;;  %v1452_v7 = vld [vmem:[%s9456_s3 + $0x5f0] sm:$0xff]  ;;  %v1449_v8 = vld [vmem:[%s9456_s3 + $0x5d8] sm:$0xff] }
 0x24c   : > { %3116 = vmatprep.subr.bf16.mxu1 %v6227_v11  ;;  %v6282_v11 = vcombine.low %v1441_v62, %v1445_v63  ;;  %v6288_v18 = vcombine.low %v1448_v6, %v1452_v7  ;;  %v6290_v44 = vcombine.low %v1449_v8, %v1453_v9 }
 0x24e   : > { %3035 = vmatpush1.bf16.msra.mxu0 %v6224_v12  ;;  %v6289_v12 = vcombine.high %v1448_v6, %v1452_v7  ;;  %v1509_v6 = vld [vmem:[%s9456_s3 + $0x7b8] sm:$0xff] }
 0x24f   : > { %3117 = vmatpush1.bf16.msra.mxu1 %v6226_v13  ;;  %3045 = vmatprep.subr.bf16.mxu0 %v6233_v14  ;;  %v6291_v13 = vcombine.high %v1449_v8, %v1453_v9  ;;  %v1456_v14 = vld [vmem:[%s9456_s3 + $0x610] sm:$0xff] }
 0x250   : > { %3127 = vmatprep.subr.bf16.mxu1 %v6235_v17  ;;  %v1461_v17 = vld [vmem:[%s9456_s3 + $0x638] sm:$0xff]  ;;  %v1512_v9 = vld [vmem:[%s9456_s3 + $0x7d0] sm:$0xff] }
 0x251   : > { %3037 = vmatmul.mubr.bf16.vlgmr.msra.gmra.mrb[8].mxu0 %v8450_v46  ;;  %v6299_v24 = vcombine.high %v1457_v16, %v1461_v17 }
 0x252   : > { %3119 = vmatmul.mubr.bf16.vlgmr.msra.gmra.mrb[8].mxu1 %v8450_v46  ;;  %3046 = vmatpush1.bf16.msra.mxu0 %v6232_v19  ;;  %v1421_v46 = vld [vmem:[%s9456_s3 + $0x4f8] sm:$0xff]  ;;  %v6297_v19 = vcombine.high %v1456_v14, %v1460_v15 }
 0x253   : > { %3077 = vmatprep.mubr.bf16.mxu0 %v8468_v54  ;;  %3128 = vmatpush1.bf16.msra.mxu1 %v6234_v27  ;;  %v6259_v22 = vcombine.high %v1417_v39, %v1421_v46  ;;  %v6258_v52 = vcombine.low %v1417_v39, %v1421_v46  ;;  %v1468_v27 = vld [vmem:[%s9456_s3 + $0x670] sm:$0xff]  ;;  %v1477_v39 = vld [vmem:[%s9456_s3 + $0x6b8] sm:$0xff] }
 0x254   : > { %3159 = vmatprep.mubr.bf16.mxu1 %v8468_v54  ;;  %3047 = vmatprep.subr.bf16.mxu0 %v6241_v30  ;;  %v1425_v54 = vld [vmem:[%s9456_s3 + $0x518] sm:$0xff]  ;;  %v6296_v30 = vcombine.low %v1456_v14, %v1460_v15  ;;  %v6304_v46 = vcombine.low %v1464_v26, %v1468_v27 }
 0x255   : > { %3129 = vmatprep.subr.bf16.mxu1 %v6243_v32  ;;  %v6267_v57 = vcombine.high %v1425_v54, %v1429_v48  ;;  %v6266_v60 = vcombine.low %v1425_v54, %v1429_v48  ;;  %v6298_v32 = vcombine.low %v1457_v16, %v1461_v17  ;;  %v6312_v48 = vcombine.low %v1472_v34, %v1476_v35  ;;  %v1517_v14 = vld [vmem:[%s9456_s3 + $0x7f8] sm:$0xff]  ;;  %v6867_v34 = vld [vmem:[%s8689_s19 + $0x30] ss:$20 sps:$4 sm:$0xff]   ;;  %v6872_v35 = vld [vmem:[%s8689_s19 + $0x54] ss:$20 sps:$4 sm:$0xff]  }
 0x256   : > { %3048 = vmatpush1.bf16.msra.mxu0 %v6240_v33  ;;  %v6305_v33 = vcombine.high %v1464_v26, %v1468_v27  ;;  %v6860_v26 = vld [vmem:[%s8689_s19 + $0x4] ss:$20 sps:$4 sm:$0xff]   ;;  %v6863_v27 = vld [vmem:[%s8689_s19 + $0xc] ss:$20 sps:$4 sm:$0xff]  }
 0x257   : > { %3130 = vmatpush1.bf16.msra.mxu1 %v6242_v37  ;;  %3049 = vmatprep.subr.bf16.mxu0 %v6249_v38  ;;  %v6307_v37 = vcombine.high %v1465_v28, %v1469_v29  ;;  %v1473_v38 = vld [vmem:[%s9456_s3 + $0x698] sm:$0xff]  ;;  %v6858_v28 = vld [vmem:[%s8689_s19] ss:$20 sps:$4 sm:$0xff]  }
 0x258   : > { %3131 = vmatprep.subr.bf16.mxu1 %v6251_v40  ;;  %v1480_v40 = vld [vmem:[%s9456_s3 + $0x6d0] sm:$0xff]  ;;  %v6315_v54 = vcombine.high %v1473_v38, %v1477_v39  ;;  %v6314_v50 = vcombine.low %v1473_v38, %v1477_v39  ;;  %v6861_v29 = vld [vmem:[%s8689_s19 + $0x8] ss:$20 sps:$4 sm:$0xff]   ;;  %v6873_v39 = vld [vmem:[%s8689_s19 + $0x58] ss:$20 sps:$4 sm:$0xff]  }
 0x259   : > { %v6870_v38 = vld [vmem:[%s8689_s19 + $0x50] ss:$20 sps:$4 sm:$0xff]  }
 0x25a   : > { %3050 = vmatpush1.bf16.msra.mxu0 %v6248_v41  ;;  %v1484_v41 = vld [vmem:[%s9456_s3 + $0x6f0] sm:$0xff] }
 0x25b   : > { %3132 = vmatpush1.bf16.msra.mxu1 %v6250_v45  ;;  %3051 = vmatprep.subr.bf16.mxu0 %v6257_v47  ;;  %v1481_v45 = vld [vmem:[%s9456_s3 + $0x6d8] sm:$0xff]  ;;  %v6321_v51 = vcombine.high %v1480_v40, %v1484_v41  ;;  %v6320_v56 = vcombine.low %v1480_v40, %v1484_v41  ;;  %v6879_v41 = vld [vmem:[%s8689_s19 + $0x80] ss:$20 sps:$4 sm:$0xff]  }
 0x25c   : > { %3133 = vmatprep.subr.bf16.mxu1 %v6259_v22  ;;  %v1485_v47 = vld [vmem:[%s9456_s3 + $0x6f8] sm:$0xff]  ;;  %v1488_v22 = vld [vmem:[%s9456_s3 + $0x710] sm:$0xff] }
 0x25d   : > { %v6323_v55 = vcombine.high %v1481_v45, %v1485_v47  ;;  %v6322_v58 = vcombine.low %v1481_v45, %v1485_v47  ;;  %v6876_v40 = vld [vmem:[%s8689_s19 + $0x78] ss:$20 sps:$4 sm:$0xff]   ;;  %v6882_v45 = vld [vmem:[%s8689_s19 + $0xa0] ss:$20 sps:$4 sm:$0xff]   ;;  %v6885_v47 = vld [vmem:[%s8689_s19 + $0xa8] ss:$20 sps:$4 sm:$0xff]  }
 0x25e   : > { %3052 = vmatpush1.bf16.msra.mxu0 %v6256_v49  ;;  %v1492_v49 = vld [vmem:[%s9456_s3 + $0x730] sm:$0xff] }
 0x25f   : > { %3134 = vmatpush1.bf16.msra.mxu1 %v6258_v52  ;;  %3053 = vmatprep.subr.bf16.mxu0 %v6265_v53  ;;  %v1489_v52 = vld [vmem:[%s9456_s3 + $0x718] sm:$0xff]  ;;  %v6329_v59 = vcombine.high %v1488_v22, %v1492_v49  ;;  %v6328_v63 = vcombine.low %v1488_v22, %v1492_v49  ;;  %v6891_v49 = vld [vmem:[%s8689_s19 + $0xd0] ss:$20 sps:$4 sm:$0xff]  }
 0x260   : > { %3135 = vmatprep.subr.bf16.mxu1 %v6267_v57  ;;  %v1493_v53 = vld [vmem:[%s9456_s3 + $0x738] sm:$0xff]  ;;  %v1496_v57 = vld [vmem:[%s9456_s3 + $0x750] sm:$0xff] }
 0x261   : > { %v6331_v62 = vcombine.high %v1489_v52, %v1493_v53  ;;  %v6888_v22 = vld [vmem:[%s8689_s19 + $0xc8] ss:$20 sps:$4 sm:$0xff]  }
 0x262   : > { %3054 = vmatpush1.bf16.msra.mxu0 %v6264_v36  ;;  %v1500_v36 = vld [vmem:[%s9456_s3 + $0x770] sm:$0xff] }
 0x263   : > { %3136 = vmatpush1.bf16.msra.mxu1 %v6266_v60  ;;  %3055 = vmatprep.subr.bf16.mxu0 %v6273_v61  ;;  %v1497_v60 = vld [vmem:[%s9456_s3 + $0x758] sm:$0xff]  ;;  %v6336_v8 = vcombine.low %v1496_v57, %v1500_v36 }
 0x264   : > { %3137 = vmatprep.subr.bf16.mxu1 %v6275_v0  ;;  %v1501_v61 = vld [vmem:[%s9456_s3 + $0x778] sm:$0xff]  ;;  %v1504_v0 = vld [vmem:[%s9456_s3 + $0x790] sm:$0xff] }
 0x265   : > { %v6339_v7 = vcombine.high %v1497_v60, %v1501_v61 }
 0x266   : > { %3056 = vmatpush1.bf16.msra.mxu0 %v6272_v1  ;;  %v1508_v1 = vld [vmem:[%s9456_s3 + $0x7b0] sm:$0xff] }
 0x267   : > { %3138 = vmatpush1.bf16.msra.mxu1 %v6274_v2  ;;  %3057 = vmatprep.subr.bf16.mxu0 %v6281_v3  ;;  %v6330_v2 = vcombine.low %v1489_v52, %v1493_v53  ;;  %v6337_v3 = vcombine.high %v1496_v57, %v1500_v36  ;;  %v6344_v16 = vcombine.low %v1504_v0, %v1508_v1  ;;  %v6894_v52 = vld [vmem:[%s8689_s19 + $0xf0] ss:$20 sps:$4 sm:$0xff]   ;;  %v6897_v53 = vld [vmem:[%s8689_s19 + $0xf8] ss:$20 sps:$4 sm:$0xff]   ;;  %v6903_v36 = vld [vmem:[%s8689_s19 + $0x120] ss:$20 sps:$4 sm:$0xff]  }
 0x268   : > { %3139 = vmatprep.subr.bf16.mxu1 %v6283_v5  ;;  %v1505_v5 = vld [vmem:[%s9456_s3 + $0x798] sm:$0xff] }
 0x269   : > { %v6347_v15 = vcombine.high %v1505_v5, %v1509_v6  ;;  %v6346_v17 = vcombine.low %v1505_v5, %v1509_v6  ;;  %v6900_v57 = vld [vmem:[%s8689_s19 + $0x118] ss:$20 sps:$4 sm:$0xff]   ;;  %v6918_v5 = vld [vmem:[%s8689_s19 + $0x190] ss:$20 sps:$4 sm:$0xff]  }
 0x26a   : > { %3058 = vmatpush1.bf16.msra.mxu0 %v6280_v10  ;;  %v1516_v10 = vld [vmem:[%s9456_s3 + $0x7f0] sm:$0xff]  ;;  %v6921_v6 = vld [vmem:[%s8689_s19 + $0x198] ss:$20 sps:$4 sm:$0xff]  }
 0x26b   : > { %3140 = vmatpush1.bf16.msra.mxu1 %v6282_v11  ;;  %3059 = vmatprep.subr.bf16.mxu0 %v6289_v12  ;;  %v6338_v11 = vcombine.low %v1497_v60, %v1501_v61  ;;  %v6345_v12 = vcombine.high %v1504_v0, %v1508_v1  ;;  %v6906_v60 = vld [vmem:[%s8689_s19 + $0x140] ss:$20 sps:$4 sm:$0xff]   ;;  %v6909_v61 = vld [vmem:[%s8689_s19 + $0x148] ss:$20 sps:$4 sm:$0xff]   ;;  %v6915_v1 = vld [vmem:[%s8689_s19 + $0x170] ss:$20 sps:$4 sm:$0xff]  }
 0x26c   : > { %3141 = vmatprep.subr.bf16.mxu1 %v6291_v13  ;;  %v1513_v13 = vld [vmem:[%s9456_s3 + $0x7d8] sm:$0xff] }
 0x26d   : > { %v6912_v0 = vld [vmem:[%s8689_s19 + $0x168] ss:$20 sps:$4 sm:$0xff]  }
 0x26e   : > { %3060 = vmatpush1.bf16.msra.mxu0 %v6288_v18  ;;  %v6353_v18 = vcombine.high %v1512_v9, %v1516_v10 }
 0x26f   : > { %3142 = vmatpush1.bf16.msra.mxu1 %v6290_v44  ;;  %3061 = vmatprep.subr.bf16.mxu0 %v6297_v19  ;;  %v6355_v44 = vcombine.high %v1513_v13, %v1517_v14  ;;  %v6352_v19 = vcombine.low %v1512_v9, %v1516_v10  ;;  %v6924_v9 = vld [vmem:[%s8689_s19 + $0x1b8] ss:$20 sps:$4 sm:$0xff]   ;;  %v6927_v10 = vld [vmem:[%s8689_s19 + $0x1c0] ss:$20 sps:$4 sm:$0xff]  }
 0x270   : > { %3143 = vmatprep.subr.bf16.mxu1 %v6299_v24  ;;  %v6354_v24 = vcombine.low %v1513_v13, %v1517_v14  ;;  %v6930_v13 = vld [vmem:[%s8689_s19 + $0x1e0] ss:$20 sps:$4 sm:$0xff]   ;;  %v6933_v14 = vld [vmem:[%s8689_s19 + $0x1e8] ss:$20 sps:$4 sm:$0xff]  }
 0x272   : > { %3062 = vmatpush1.bf16.msra.mxu0 %v6296_v30  ;;  %v6866_v30 = vld [vmem:[%s8689_s19 + $0x2c] ss:$20 sps:$4 sm:$0xff]  }
 0x273   : > { %3144 = vmatpush1.bf16.msra.mxu1 %v6298_v32  ;;  %3063 = vmatprep.subr.bf16.mxu0 %v6305_v33  ;;  %v6869_v32 = vld [vmem:[%s8689_s19 + $0x34] ss:$20 sps:$4 sm:$0xff]  }
 0x274   : > { %3145 = vmatprep.subr.bf16.mxu1 %v6307_v37  ;;  %v6864_v33 = vld [vmem:[%s8689_s19 + $0x28] ss:$20 sps:$4 sm:$0xff]  }
 0x275   : > { %v6875_v37 = vld [vmem:[%s8689_s19 + $0x5c] ss:$20 sps:$4 sm:$0xff]  }
 0x276   : > { %3064 = vmatpush1.bf16.msra.mxu0 %v6304_v46  ;;  %v6881_v46 = vld [vmem:[%s8689_s19 + $0x84] ss:$20 sps:$4 sm:$0xff]  }
 0x277   : > { %3146 = vmatpush1.bf16.msra.mxu1 %v6306_v42  ;;  %3065 = vmatprep.subr.bf16.mxu0 %v6313_v43  ;;  %v6884_v42 = vld [vmem:[%s8689_s19 + $0xa4] ss:$20 sps:$4 sm:$0xff]   ;;  %v6887_v43 = vld [vmem:[%s8689_s19 + $0xac] ss:$20 sps:$4 sm:$0xff]  }
 0x278   : > { %3147 = vmatprep.subr.bf16.mxu1 %v6315_v54  ;;  %v6890_v54 = vld [vmem:[%s8689_s19 + $0xcc] ss:$20 sps:$4 sm:$0xff]  }
 0x27a   : > { %3066 = vmatpush1.bf16.msra.mxu0 %v6312_v48  ;;  %v6893_v48 = vld [vmem:[%s8689_s19 + $0xd4] ss:$20 sps:$4 sm:$0xff]  }
 0x27b   : > { %3148 = vmatpush1.bf16.msra.mxu1 %v6314_v50  ;;  %3067 = vmatprep.subr.bf16.mxu0 %v6321_v51  ;;  %v6896_v50 = vld [vmem:[%s8689_s19 + $0xf4] ss:$20 sps:$4 sm:$0xff]   ;;  %v6899_v51 = vld [vmem:[%s8689_s19 + $0xfc] ss:$20 sps:$4 sm:$0xff]  }
 0x27c   : > { %3149 = vmatprep.subr.bf16.mxu1 %v6323_v55  ;;  %v6902_v55 = vld [vmem:[%s8689_s19 + $0x11c] ss:$20 sps:$4 sm:$0xff]  }
 0x27e   : > { %3068 = vmatpush1.bf16.msra.mxu0 %v6320_v56  ;;  %v6905_v56 = vld [vmem:[%s8689_s19 + $0x124] ss:$20 sps:$4 sm:$0xff]  }
 0x27f   : > { %3150 = vmatpush1.bf16.msra.mxu1 %v6322_v58  ;;  %3069 = vmatprep.subr.bf16.mxu0 %v6329_v59  ;;  %v6908_v58 = vld [vmem:[%s8689_s19 + $0x144] ss:$20 sps:$4 sm:$0xff]   ;;  %v6911_v59 = vld [vmem:[%s8689_s19 + $0x14c] ss:$20 sps:$4 sm:$0xff]  }
 0x280   : > { %3151 = vmatprep.subr.bf16.mxu1 %v6331_v62  ;;  %v6914_v62 = vld [vmem:[%s8689_s19 + $0x16c] ss:$20 sps:$4 sm:$0xff]  }
 0x282   : > { %3070 = vmatpush1.bf16.msra.mxu0 %v6328_v63  ;;  %v6917_v63 = vld [vmem:[%s8689_s19 + $0x174] ss:$20 sps:$4 sm:$0xff]  }
 0x283   : > { %3152 = vmatpush1.bf16.msra.mxu1 %v6330_v2  ;;  %3071 = vmatprep.subr.bf16.mxu0 %v6337_v3  ;;  %v6920_v2 = vld [vmem:[%s8689_s19 + $0x194] ss:$20 sps:$4 sm:$0xff]   ;;  %v6923_v3 = vld [vmem:[%s8689_s19 + $0x19c] ss:$20 sps:$4 sm:$0xff]  }
 0x284   : > { %3153 = vmatprep.subr.bf16.mxu1 %v6339_v7  ;;  %v6926_v7 = vld [vmem:[%s8689_s19 + $0x1bc] ss:$20 sps:$4 sm:$0xff]  }
 0x286   : > { %3072 = vmatpush1.bf16.msra.mxu0 %v6336_v8  ;;  %v6929_v8 = vld [vmem:[%s8689_s19 + $0x1c4] ss:$20 sps:$4 sm:$0xff]  }
 0x287   : > { %3154 = vmatpush1.bf16.msra.mxu1 %v6338_v11  ;;  %3073 = vmatprep.subr.bf16.mxu0 %v6345_v12  ;;  %v6932_v11 = vld [vmem:[%s8689_s19 + $0x1e4] ss:$20 sps:$4 sm:$0xff]   ;;  %v6935_v12 = vld [vmem:[%s8689_s19 + $0x1ec] ss:$20 sps:$4 sm:$0xff]  }
 0x288   : > { %3155 = vmatprep.subr.bf16.mxu1 %v6347_v15  ;;  %v6938_v15 = vld [vmem:[%s8689_s19 + $0x20c] ss:$20 sps:$4 sm:$0xff]  }
 0x28a   : > { %3074 = vmatpush1.bf16.msra.mxu0 %v6344_v16  ;;  %v6941_v16 = vld [vmem:[%s8689_s19 + $0x214] ss:$20 sps:$4 sm:$0xff]  }
 0x28b   : > { %3156 = vmatpush1.bf16.msra.mxu1 %v6346_v17  ;;  %3075 = vmatprep.subr.bf16.mxu0 %v6353_v18  ;;  %v6936_v17 = vld [vmem:[%s8689_s19 + $0x208] ss:$20 sps:$4 sm:$0xff]   ;;  %v6939_v18 = vld [vmem:[%s8689_s19 + $0x210] ss:$20 sps:$4 sm:$0xff]  }
 0x28c   : > { %3157 = vmatprep.subr.bf16.mxu1 %v6355_v44  ;;  %v6944_v44 = vld [vmem:[%s8689_s19 + $0x234] ss:$20 sps:$4 sm:$0xff]  }
 0x28e   : > { %3076 = vmatpush1.bf16.msra.mxu0 %v6352_v19  ;;  %v6947_v19 = vld [vmem:[%s8689_s19 + $0x23c] ss:$20 sps:$4 sm:$0xff]  }
 0x28f   : > { %3158 = vmatpush1.bf16.msra.mxu1 %v6354_v24  ;;  %5259 = vmatprep.subr.bf16.mxu0 %v6860_v26  ;;  %v6942_v24 = vld [vmem:[%s8689_s19 + $0x230] ss:$20 sps:$4 sm:$0xff]   ;;  %v6945_v26 = vld [vmem:[%s8689_s19 + $0x238] ss:$20 sps:$4 sm:$0xff]  }
 0x290   : > { %5423 = vmatprep.subr.bf16.mxu1 %v6863_v27  ;;  %v6950_v27 = vld [vmem:[%s8689_s19 + $0x25c] ss:$20 sps:$4 sm:$0xff]  }
 0x291   : > { %3078 = vmatmul.mubr.bf16.vlgmr.msra.gmra.mrb[8].mxu0 %v8658_v4 }
 0x292   : > { %3160 = vmatmul.mubr.bf16.vlgmr.msra.gmra.mrb[8].mxu1 %v8658_v4  ;;  %5260 = vmatpush1.bf16.msra.mxu0 %v6858_v28  ;;  %v6878_v4 = vld [vmem:[%s8689_s19 + $0x7c] ss:$20 sps:$4 sm:$0xff]   ;;  %v6953_v28 = vld [vmem:[%s8689_s19 + $0x264] ss:$20 sps:$4 sm:$0xff]  }
 0x293   : > { %5424 = vmatpush1.bf16.msra.mxu1 %v6861_v29  ;;  %5261 = vmatprep.subr.bf16.mxu0 %v6866_v30  ;;  %v6948_v29 = vld [vmem:[%s8689_s19 + $0x258] ss:$20 sps:$4 sm:$0xff]   ;;  %v6951_v30 = vld [vmem:[%s8689_s19 + $0x260] ss:$20 sps:$4 sm:$0xff]  }
 0x294   : > { %5425 = vmatprep.subr.bf16.mxu1 %v6869_v32  ;;  %v6956_v32 = vld [vmem:[%s8689_s19 + $0x284] ss:$20 sps:$4 sm:$0xff]  }
 0x296   : > { %5262 = vmatpush1.bf16.msra.mxu0 %v6864_v33  ;;  %v6959_v33 = vld [vmem:[%s8689_s19 + $0x28c] ss:$20 sps:$4 sm:$0xff]  }
 0x297   : > { %5426 = vmatpush1.bf16.msra.mxu1 %v6867_v34  ;;  %5263 = vmatprep.subr.bf16.mxu0 %v6872_v35  ;;  %v9102_v34 = vld [vmem:[%s9457_s4] sm:$0xff] }
 0x298   : > { %5427 = vmatprep.subr.bf16.mxu1 %v6875_v37  ;;  %v1523_v35 = vrot.slane %v9102_v34, %v8415_v21  ;;  %v1527_v37 = vrot.slane %v9102_v34, %v8423_v23 }
 0x29a   : > { %5264 = vmatpush1.bf16.msra.mxu0 %v6870_v38  ;;  %v1535_v38 = vrot.slane %v9102_v34, %v8428_v25 }
 0x29b   : > { %5428 = vmatpush1.bf16.msra.mxu1 %v6873_v39  ;;  %5265 = vmatprep.subr.bf16.mxu0 %v6878_v4 }
 0x29c   : > { %5429 = vmatprep.subr.bf16.mxu1 %v6881_v46 }
 0x29e   : > { %5266 = vmatpush1.bf16.msra.mxu0 %v6876_v40 }
 0x29f   : > { %5430 = vmatpush1.bf16.msra.mxu1 %v6879_v41  ;;  %5267 = vmatprep.subr.bf16.mxu0 %v6884_v42 }
 0x2a0   : > { %5431 = vmatprep.subr.bf16.mxu1 %v6887_v43 }
 0x2a2   : > { %5268 = vmatpush1.bf16.msra.mxu0 %v6882_v45 }
 0x2a3   : > { %5432 = vmatpush1.bf16.msra.mxu1 %v6885_v47  ;;  %5269 = vmatprep.subr.bf16.mxu0 %v6890_v54 }
 0x2a4   : > { %5433 = vmatprep.subr.bf16.mxu1 %v6893_v48 }
 0x2a6   : > { %5270 = vmatpush1.bf16.msra.mxu0 %v6888_v22 }
 0x2a7   : > { %5434 = vmatpush1.bf16.msra.mxu1 %v6891_v49  ;;  %5271 = vmatprep.subr.bf16.mxu0 %v6896_v50 }
 0x2a8   : > { %5435 = vmatprep.subr.bf16.mxu1 %v6899_v51 }
 0x2aa   : > { %5272 = vmatpush1.bf16.msra.mxu0 %v6894_v52  ;;  %v6954_v52 = vld [vmem:[%s8689_s19 + $0x280] ss:$20 sps:$4 sm:$0xff]  }
 0x2ab   : > { %5436 = vmatpush1.bf16.msra.mxu1 %v6897_v53  ;;  %5273 = vmatprep.subr.bf16.mxu0 %v6902_v55  ;;  %v6957_v53 = vld [vmem:[%s8689_s19 + $0x288] ss:$20 sps:$4 sm:$0xff]  }
 0x2ac   : > { %5437 = vmatprep.subr.bf16.mxu1 %v6905_v56  ;;  %v6962_v56 = vld [vmem:[%s8689_s19 + $0x2ac] ss:$20 sps:$4 sm:$0xff]  }
 0x2ae   : > { %5274 = vmatpush1.bf16.msra.mxu0 %v6900_v57  ;;  %v6965_v57 = vld [vmem:[%s8689_s19 + $0x2b4] ss:$20 sps:$4 sm:$0xff]  }
 0x2af   : > { %5438 = vmatpush1.bf16.msra.mxu1 %v6903_v36  ;;  %5275 = vmatprep.subr.bf16.mxu0 %v6908_v58  ;;  %v6960_v58 = vld [vmem:[%s8689_s19 + $0x2a8] ss:$20 sps:$4 sm:$0xff]  }
 0x2b0   : > { %5439 = vmatprep.subr.bf16.mxu1 %v6911_v59  ;;  %v6963_v59 = vld [vmem:[%s8689_s19 + $0x2b0] ss:$20 sps:$4 sm:$0xff]  }
 0x2b2   : > { %5276 = vmatpush1.bf16.msra.mxu0 %v6906_v60  ;;  %v6968_v60 = vld [vmem:[%s8689_s19 + $0x2d4] ss:$20 sps:$4 sm:$0xff]  }
 0x2b3   : > { %5440 = vmatpush1.bf16.msra.mxu1 %v6909_v61  ;;  %5277 = vmatprep.subr.bf16.mxu0 %v6914_v62  ;;  %v6971_v61 = vld [vmem:[%s8689_s19 + $0x2dc] ss:$20 sps:$4 sm:$0xff]  }
 0x2b4   : > { %5441 = vmatprep.subr.bf16.mxu1 %v6917_v63  ;;  %v6966_v62 = vld [vmem:[%s8689_s19 + $0x2d0] ss:$20 sps:$4 sm:$0xff]   ;;  %v6969_v63 = vld [vmem:[%s8689_s19 + $0x2d8] ss:$20 sps:$4 sm:$0xff]  }
 0x2b6   : > { %5278 = vmatpush1.bf16.msra.mxu0 %v6912_v0  ;;  %v6974_v0 = vld [vmem:[%s8689_s19 + $0x2fc] ss:$20 sps:$4 sm:$0xff]  }
 0x2b7   : > { %5442 = vmatpush1.bf16.msra.mxu1 %v6915_v1  ;;  %5279 = vmatprep.subr.bf16.mxu0 %v6920_v2  ;;  %v6977_v1 = vld [vmem:[%s8689_s19 + $0x304] ss:$20 sps:$4 sm:$0xff]  }
 0x2b8   : > { %5443 = vmatprep.subr.bf16.mxu1 %v6923_v3  ;;  %v6972_v2 = vld [vmem:[%s8689_s19 + $0x2f8] ss:$20 sps:$4 sm:$0xff]   ;;  %v6975_v3 = vld [vmem:[%s8689_s19 + $0x300] ss:$20 sps:$4 sm:$0xff]  }
 0x2ba   : > { %5280 = vmatpush1.bf16.msra.mxu0 %v6918_v5  ;;  %v6980_v5 = vld [vmem:[%s8689_s19 + $0x324] ss:$20 sps:$4 sm:$0xff]  }
 0x2bb   : > { %5444 = vmatpush1.bf16.msra.mxu1 %v6921_v6  ;;  %5281 = vmatprep.subr.bf16.mxu0 %v6926_v7  ;;  %v6983_v6 = vld [vmem:[%s8689_s19 + $0x32c] ss:$20 sps:$4 sm:$0xff]  }
 0x2bc   : > { %5445 = vmatprep.subr.bf16.mxu1 %v6929_v8  ;;  %v6978_v7 = vld [vmem:[%s8689_s19 + $0x320] ss:$20 sps:$4 sm:$0xff]   ;;  %v6981_v8 = vld [vmem:[%s8689_s19 + $0x328] ss:$20 sps:$4 sm:$0xff]  }
 0x2be   : > { %5282 = vmatpush1.bf16.msra.mxu0 %v6924_v9  ;;  %v6986_v9 = vld [vmem:[%s8689_s19 + $0x34c] ss:$20 sps:$4 sm:$0xff]  }
 0x2bf   : > { %5446 = vmatpush1.bf16.msra.mxu1 %v6927_v10  ;;  %5283 = vmatprep.subr.bf16.mxu0 %v6932_v11  ;;  %v6989_v10 = vld [vmem:[%s8689_s19 + $0x354] ss:$20 sps:$4 sm:$0xff]  }
 0x2c0   : > { %5447 = vmatprep.subr.bf16.mxu1 %v6935_v12  ;;  %v6984_v11 = vld [vmem:[%s8689_s19 + $0x348] ss:$20 sps:$4 sm:$0xff]   ;;  %v6987_v12 = vld [vmem:[%s8689_s19 + $0x350] ss:$20 sps:$4 sm:$0xff]  }
 0x2c2   : > { %5284 = vmatpush1.bf16.msra.mxu0 %v6930_v13  ;;  %v6992_v13 = vld [vmem:[%s8689_s19 + $0x374] ss:$20 sps:$4 sm:$0xff]  }
 0x2c3   : > { %5448 = vmatpush1.bf16.msra.mxu1 %v6933_v14  ;;  %5285 = vmatprep.subr.bf16.mxu0 %v6938_v15  ;;  %v6995_v14 = vld [vmem:[%s8689_s19 + $0x37c] ss:$20 sps:$4 sm:$0xff]  }
 0x2c4   : > { %5449 = vmatprep.subr.bf16.mxu1 %v6941_v16  ;;  %v6990_v15 = vld [vmem:[%s8689_s19 + $0x370] ss:$20 sps:$4 sm:$0xff]   ;;  %v6993_v16 = vld [vmem:[%s8689_s19 + $0x378] ss:$20 sps:$4 sm:$0xff]  }
 0x2c6   : > { %5286 = vmatpush1.bf16.msra.mxu0 %v6936_v17  ;;  %v6998_v17 = vld [vmem:[%s8689_s19 + $0x39c] ss:$20 sps:$4 sm:$0xff]  }
 0x2c7   : > { %5450 = vmatpush1.bf16.msra.mxu1 %v6939_v18  ;;  %5287 = vmatprep.subr.bf16.mxu0 %v6944_v44  ;;  %v7001_v18 = vld [vmem:[%s8689_s19 + $0x3a4] ss:$20 sps:$4 sm:$0xff]  }
 0x2c8   : > { %5451 = vmatprep.subr.bf16.mxu1 %v6947_v19  ;;  %v6996_v44 = vld [vmem:[%s8689_s19 + $0x398] ss:$20 sps:$4 sm:$0xff]   ;;  %v6999_v19 = vld [vmem:[%s8689_s19 + $0x3a0] ss:$20 sps:$4 sm:$0xff]  }
 0x2ca   : > { %5288 = vmatpush1.bf16.msra.mxu0 %v6942_v24  ;;  %v7004_v24 = vld [vmem:[%s8689_s19 + $0x3c4] ss:$20 sps:$4 sm:$0xff]  }
 0x2cb   : > { %5452 = vmatpush1.bf16.msra.mxu1 %v6945_v26  ;;  %5289 = vmatprep.subr.bf16.mxu0 %v6950_v27  ;;  %v7007_v26 = vld [vmem:[%s8689_s19 + $0x3cc] ss:$20 sps:$4 sm:$0xff]  }
 0x2cc   : > { %5453 = vmatprep.subr.bf16.mxu1 %v6953_v28  ;;  %v7002_v27 = vld [vmem:[%s8689_s19 + $0x3c0] ss:$20 sps:$4 sm:$0xff]   ;;  %v7005_v28 = vld [vmem:[%s8689_s19 + $0x3c8] ss:$20 sps:$4 sm:$0xff]  }
 0x2ce   : > { %5290 = vmatpush1.bf16.msra.mxu0 %v6948_v29  ;;  %v7010_v29 = vld [vmem:[%s8689_s19 + $0x3ec] ss:$20 sps:$4 sm:$0xff]  }
 0x2cf   : > { %5454 = vmatpush1.bf16.msra.mxu1 %v6951_v30  ;;  %5300 = vmatprep.subr.bf16.mxu0 %v6956_v32  ;;  %v7013_v30 = vld [vmem:[%s8689_s19 + $0x3f4] ss:$20 sps:$4 sm:$0xff]  }
 0x2d0   : > { %5464 = vmatprep.subr.bf16.mxu1 %v6959_v33  ;;  %v7008_v32 = vld [vmem:[%s8689_s19 + $0x3e8] ss:$20 sps:$4 sm:$0xff]   ;;  %v7011_v33 = vld [vmem:[%s8689_s19 + $0x3f0] ss:$20 sps:$4 sm:$0xff]  }
 0x2e4   : > { %v2915_v39 = vpop.f32.mrb[4].mxu0  ;;  %v9110_v4 = vpop.f32.mrb[4].mxu1 }
 0x2e5   : > { %v6767_v46 = vadd.f32 %v2915_v39, %v1523_v35  ;;  %v2917_v40 = vpop.f32.mrb[5].mxu0  ;;  %v2999_v41 = vpop.f32.mrb[5].mxu1  ;;  %v7016_v35 = vld [vmem:[%s8689_s19 + $0x414] ss:$20 sps:$4 sm:$0xff]   ;;  %v7017_v39 = vld [vmem:[%s8689_s19 + $0x418] ss:$20 sps:$4 sm:$0xff]  }
 0x2e6   : > { %v6768_v42 = vadd.f32 %v2917_v40, %v1527_v37  ;;  %v6770_v43 = vadd.f32 %v2999_v41, %v1535_v38  ;;  %v2919_v45 = vpop.f32.mrb[6].mxu0  ;;  %v3001_v47 = vpop.f32.mrb[6].mxu1  ;;  %v7019_v37 = vld [vmem:[%s8689_s19 + $0x41c] ss:$20 sps:$4 sm:$0xff]   ;;  %v7025_v40 = vld [vmem:[%s8689_s19 + $0x444] ss:$20 sps:$4 sm:$0xff]  }
 0x2e7   : > { %v3168_v54 = vmax.f32 %v6767_v46, 0.0  ;;  %v2920_v48 = vpop.f32.mrb[7].mxu0  ;;  %v3002_v22 = vpop.f32.mrb[7].mxu1  ;;  %v7014_v38 = vld [vmem:[%s8689_s19 + $0x410] ss:$20 sps:$4 sm:$0xff]  }
 0x2e8   : > { %v3169_v49 = vmax.f32 %v6768_v42, 0.0  ;;  %v3171_v50 = vmax.f32 %v6770_v43, 0.0  ;;  %v7022_v46 = vld [vmem:[%s8689_s19 + $0x43c] ss:$20 sps:$4 sm:$0xff]   ;;  %v7020_v41 = vld [vmem:[%s8689_s19 + $0x438] ss:$20 sps:$4 sm:$0xff]  }
 0x2e9   : > { %v9116_v55 = vpack.c.bf16 %v3168_v54, %v3168_v54  ;;  %v7023_v42 = vld [vmem:[%s8689_s19 + $0x440] ss:$20 sps:$4 sm:$0xff]   ;;  %v7028_v43 = vld [vmem:[%s8689_s19 + $0x464] ss:$20 sps:$4 sm:$0xff]   ;;  %v7029_v54 = vld [vmem:[%s8689_s19 + $0x468] ss:$20 sps:$4 sm:$0xff]  }
 0x2ea   : > { %v9112_v51 = vpack.c.bf16 %v3169_v49, %v3169_v49  ;;  %v9122_v36 = vpack.c.bf16 %v3171_v50, %v3171_v50  ;;  %v7031_v45 = vld [vmem:[%s8689_s19 + $0x46c] ss:$20 sps:$4 sm:$0xff]   ;;  %v7037_v22 = vld [vmem:[%s8689_s19 + $0x494] ss:$20 sps:$4 sm:$0xff]   ;;  %v7035_v50 = vld [vmem:[%s8689_s19 + $0x490] ss:$20 sps:$4 sm:$0xff]  }
 0x2eb   : > { %v7026_v47 = vld [vmem:[%s8689_s19 + $0x460] ss:$20 sps:$4 sm:$0xff]   ;;  %v7032_v49 = vld [vmem:[%s8689_s19 + $0x488] ss:$20 sps:$4 sm:$0xff]  }
 0x2ec   : > { %5291 = vmatprep.mubr.bf16.mxu0 %v9112_v51  ;;  %5455 = vmatprep.mubr.bf16.mxu1 %v9112_v51  ;;  %v7034_v48 = vld [vmem:[%s8689_s19 + $0x48c] ss:$20 sps:$4 sm:$0xff]  }
 0x2ed   : > { %5292 = vmatmul.mubr.bf16.vlgmr.msra.gmra.mrb[12].mxu0 %v9116_v55  ;;  %5456 = vmatmul.mubr.bf16.vlgmr.msra.gmra.mrb[12].mxu1 %v9116_v55 }
 0x2ee   : > { %5301 = vmatpush1.bf16.msra.mxu0 %v6954_v52  ;;  %5465 = vmatpush1.bf16.msra.mxu1 %v6957_v53  ;;  %v1531_v52 = vrot.slane %v9102_v34, %v8605_v31  ;;  %v7040_v53 = vld [vmem:[%s8689_s19 + $0x4b4] ss:$20 sps:$4 sm:$0xff]  }
 0x2ef   : > { %5332 = vmatprep.mubr.bf16.mxu0 %v9122_v36  ;;  %5496 = vmatprep.mubr.bf16.mxu1 %v9122_v36 }
 0x2f0   : > { %5302 = vmatprep.subr.bf16.mxu0 %v6962_v56  ;;  %5466 = vmatprep.subr.bf16.mxu1 %v6965_v57  ;;  %v7043_v56 = vld [vmem:[%s8689_s19 + $0x4bc] ss:$20 sps:$4 sm:$0xff]  }
 0x2f1   : > { %v7038_v57 = vld [vmem:[%s8689_s19 + $0x4b0] ss:$20 sps:$4 sm:$0xff]  }
 0x2f2   : > { %5303 = vmatpush1.bf16.msra.mxu0 %v6960_v58  ;;  %5467 = vmatpush1.bf16.msra.mxu1 %v6963_v59  ;;  %v7041_v58 = vld [vmem:[%s8689_s19 + $0x4b8] ss:$20 sps:$4 sm:$0xff]   ;;  %v6769_v59 = vadd.f32 %v9110_v4, %v1531_v52  ;;  %v7050_v4 = vld [vmem:[%s8689_s19 + $0x500] ss:$20 sps:$4 sm:$0xff]  }
 0x2f3   : > { %5304 = vmatprep.subr.bf16.mxu0 %v6968_v60  ;;  %5468 = vmatprep.subr.bf16.mxu1 %v6971_v61  ;;  %v7046_v60 = vld [vmem:[%s8689_s19 + $0x4dc] ss:$20 sps:$4 sm:$0xff]   ;;  %v7049_v61 = vld [vmem:[%s8689_s19 + $0x4e4] ss:$20 sps:$4 sm:$0xff]  }
 0x2f4   : > { %v7113_v52 = vld [vmem:[%s8689_s19 + $0x698] ss:$20 sps:$4 sm:$0xff]  }
 0x2f6   : > { %5305 = vmatpush1.bf16.msra.mxu0 %v6966_v62  ;;  %5469 = vmatpush1.bf16.msra.mxu1 %v6969_v63  ;;  %v7044_v62 = vld [vmem:[%s8689_s19 + $0x4d8] ss:$20 sps:$4 sm:$0xff]   ;;  %v7047_v63 = vld [vmem:[%s8689_s19 + $0x4e0] ss:$20 sps:$4 sm:$0xff]  }
 0x2f7   : > { %5306 = vmatprep.subr.bf16.mxu0 %v6974_v0  ;;  %5470 = vmatprep.subr.bf16.mxu1 %v6977_v1  ;;  %v3170_v0 = vmax.f32 %v6769_v59, 0.0  ;;  %v7052_v1 = vld [vmem:[%s8689_s19 + $0x504] ss:$20 sps:$4 sm:$0xff]  }
 0x2f8   : > { %v7124_v59 = vld [vmem:[%s8689_s19 + $0x6e4] ss:$20 sps:$4 sm:$0xff]  }
 0x2fa   : > { %5307 = vmatpush1.bf16.msra.mxu0 %v6972_v2  ;;  %5471 = vmatpush1.bf16.msra.mxu1 %v6975_v3  ;;  %v7055_v2 = vld [vmem:[%s8689_s19 + $0x50c] ss:$20 sps:$4 sm:$0xff]   ;;  %v7053_v3 = vld [vmem:[%s8689_s19 + $0x508] ss:$20 sps:$4 sm:$0xff]  }
 0x2fb   : > { %5308 = vmatprep.subr.bf16.mxu0 %v6980_v5  ;;  %5472 = vmatprep.subr.bf16.mxu1 %v6983_v6  ;;  %v9193_v5 = vpack.c.bf16 %v3170_v0, %v3170_v0  ;;  %v7058_v6 = vld [vmem:[%s8689_s19 + $0x52c] ss:$20 sps:$4 sm:$0xff]   ;;  %v7133_v0 = vld [vmem:[%s8689_s19 + $0x714] ss:$20 sps:$4 sm:$0xff]  }
 0x2fe   : > { %5309 = vmatpush1.bf16.msra.mxu0 %v6978_v7  ;;  %5473 = vmatpush1.bf16.msra.mxu1 %v6981_v8  ;;  %v7061_v7 = vld [vmem:[%s8689_s19 + $0x534] ss:$20 sps:$4 sm:$0xff]  }
 0x2ff   : > { %5310 = vmatprep.subr.bf16.mxu0 %v6986_v9  ;;  %5474 = vmatprep.subr.bf16.mxu1 %v6989_v10  ;;  %v7056_v8 = vld [vmem:[%s8689_s19 + $0x528] ss:$20 sps:$4 sm:$0xff]   ;;  %v7059_v9 = vld [vmem:[%s8689_s19 + $0x530] ss:$20 sps:$4 sm:$0xff]  }
 0x300   : > { %v7064_v10 = vld [vmem:[%s8689_s19 + $0x554] ss:$20 sps:$4 sm:$0xff]  }
 0x302   : > { %5311 = vmatpush1.bf16.msra.mxu0 %v6984_v11  ;;  %5475 = vmatpush1.bf16.msra.mxu1 %v6987_v12  ;;  %v7067_v11 = vld [vmem:[%s8689_s19 + $0x55c] ss:$20 sps:$4 sm:$0xff]  }
 0x303   : > { %5312 = vmatprep.subr.bf16.mxu0 %v6992_v13  ;;  %5476 = vmatprep.subr.bf16.mxu1 %v6995_v14  ;;  %v7062_v12 = vld [vmem:[%s8689_s19 + $0x550] ss:$20 sps:$4 sm:$0xff]   ;;  %v7065_v13 = vld [vmem:[%s8689_s19 + $0x558] ss:$20 sps:$4 sm:$0xff]  }
 0x304   : > { %v7070_v14 = vld [vmem:[%s8689_s19 + $0x57c] ss:$20 sps:$4 sm:$0xff]  }
 0x306   : > { %5313 = vmatpush1.bf16.msra.mxu0 %v6990_v15  ;;  %5477 = vmatpush1.bf16.msra.mxu1 %v6993_v16  ;;  %v7073_v15 = vld [vmem:[%s8689_s19 + $0x584] ss:$20 sps:$4 sm:$0xff]  }
 0x307   : > { %5314 = vmatprep.subr.bf16.mxu0 %v6998_v17  ;;  %5478 = vmatprep.subr.bf16.mxu1 %v7001_v18  ;;  %v7068_v16 = vld [vmem:[%s8689_s19 + $0x578] ss:$20 sps:$4 sm:$0xff]   ;;  %v7071_v17 = vld [vmem:[%s8689_s19 + $0x580] ss:$20 sps:$4 sm:$0xff]  }
 0x308   : > { %v7076_v18 = vld [vmem:[%s8689_s19 + $0x5a4] ss:$20 sps:$4 sm:$0xff]  }
 0x30a   : > { %5315 = vmatpush1.bf16.msra.mxu0 %v6996_v44  ;;  %5479 = vmatpush1.bf16.msra.mxu1 %v6999_v19  ;;  %v7079_v44 = vld [vmem:[%s8689_s19 + $0x5ac] ss:$20 sps:$4 sm:$0xff]  }
 0x30b   : > { %5316 = vmatprep.subr.bf16.mxu0 %v7004_v24  ;;  %5480 = vmatprep.subr.bf16.mxu1 %v7007_v26  ;;  %v7074_v19 = vld [vmem:[%s8689_s19 + $0x5a0] ss:$20 sps:$4 sm:$0xff]   ;;  %v7077_v24 = vld [vmem:[%s8689_s19 + $0x5a8] ss:$20 sps:$4 sm:$0xff]  }
 0x30c   : > { %v7082_v26 = vld [vmem:[%s8689_s19 + $0x5cc] ss:$20 sps:$4 sm:$0xff]  }
 0x30e   : > { %5317 = vmatpush1.bf16.msra.mxu0 %v7002_v27  ;;  %5481 = vmatpush1.bf16.msra.mxu1 %v7005_v28  ;;  %v7085_v27 = vld [vmem:[%s8689_s19 + $0x5d4] ss:$20 sps:$4 sm:$0xff]  }
 0x30f   : > { %5318 = vmatprep.subr.bf16.mxu0 %v7010_v29  ;;  %5482 = vmatprep.subr.bf16.mxu1 %v7013_v30  ;;  %v7080_v28 = vld [vmem:[%s8689_s19 + $0x5c8] ss:$20 sps:$4 sm:$0xff]   ;;  %v7083_v29 = vld [vmem:[%s8689_s19 + $0x5d0] ss:$20 sps:$4 sm:$0xff]  }
 0x310   : > { %v7088_v30 = vld [vmem:[%s8689_s19 + $0x5f4] ss:$20 sps:$4 sm:$0xff]  }
 0x312   : > { %5319 = vmatpush1.bf16.msra.mxu0 %v7008_v32  ;;  %5483 = vmatpush1.bf16.msra.mxu1 %v7011_v33  ;;  %v7091_v32 = vld [vmem:[%s8689_s19 + $0x5fc] ss:$20 sps:$4 sm:$0xff]  }
 0x313   : > { %5320 = vmatprep.subr.bf16.mxu0 %v7016_v35  ;;  %5484 = vmatprep.subr.bf16.mxu1 %v7019_v37  ;;  %v7086_v33 = vld [vmem:[%s8689_s19 + $0x5f0] ss:$20 sps:$4 sm:$0xff]   ;;  %v7089_v35 = vld [vmem:[%s8689_s19 + $0x5f8] ss:$20 sps:$4 sm:$0xff]  }
 0x314   : > { %v7094_v37 = vld [vmem:[%s8689_s19 + $0x61c] ss:$20 sps:$4 sm:$0xff]  }
 0x316   : > { %5321 = vmatpush1.bf16.msra.mxu0 %v7014_v38  ;;  %5485 = vmatpush1.bf16.msra.mxu1 %v7017_v39  ;;  %v7097_v38 = vld [vmem:[%s8689_s19 + $0x624] ss:$20 sps:$4 sm:$0xff]  }
 0x317   : > { %5322 = vmatprep.subr.bf16.mxu0 %v7022_v46  ;;  %5486 = vmatprep.subr.bf16.mxu1 %v7025_v40  ;;  %v7092_v39 = vld [vmem:[%s8689_s19 + $0x618] ss:$20 sps:$4 sm:$0xff]   ;;  %v7095_v46 = vld [vmem:[%s8689_s19 + $0x620] ss:$20 sps:$4 sm:$0xff]  }
 0x318   : > { %v7100_v40 = vld [vmem:[%s8689_s19 + $0x644] ss:$20 sps:$4 sm:$0xff]  }
 0x31a   : > { %5323 = vmatpush1.bf16.msra.mxu0 %v7020_v41  ;;  %5487 = vmatpush1.bf16.msra.mxu1 %v7023_v42  ;;  %v7103_v41 = vld [vmem:[%s8689_s19 + $0x64c] ss:$20 sps:$4 sm:$0xff]  }
 0x31b   : > { %5324 = vmatprep.subr.bf16.mxu0 %v7028_v43  ;;  %5488 = vmatprep.subr.bf16.mxu1 %v7031_v45  ;;  %v7098_v42 = vld [vmem:[%s8689_s19 + $0x640] ss:$20 sps:$4 sm:$0xff]   ;;  %v7101_v43 = vld [vmem:[%s8689_s19 + $0x648] ss:$20 sps:$4 sm:$0xff]  }
 0x31c   : > { %v7106_v45 = vld [vmem:[%s8689_s19 + $0x66c] ss:$20 sps:$4 sm:$0xff]  }
 0x31e   : > { %5325 = vmatpush1.bf16.msra.mxu0 %v7026_v47  ;;  %5489 = vmatpush1.bf16.msra.mxu1 %v7029_v54  ;;  %v7109_v47 = vld [vmem:[%s8689_s19 + $0x674] ss:$20 sps:$4 sm:$0xff]  }
 0x31f   : > { %5326 = vmatprep.subr.bf16.mxu0 %v7034_v48  ;;  %5490 = vmatprep.subr.bf16.mxu1 %v7037_v22  ;;  %v7104_v54 = vld [vmem:[%s8689_s19 + $0x668] ss:$20 sps:$4 sm:$0xff]   ;;  %v7107_v48 = vld [vmem:[%s8689_s19 + $0x670] ss:$20 sps:$4 sm:$0xff]  }
 0x320   : > { %v7112_v22 = vld [vmem:[%s8689_s19 + $0x694] ss:$20 sps:$4 sm:$0xff]  }
 0x322   : > { %5327 = vmatpush1.bf16.msra.mxu0 %v7032_v49  ;;  %5491 = vmatpush1.bf16.msra.mxu1 %v7035_v50  ;;  %v7115_v49 = vld [vmem:[%s8689_s19 + $0x69c] ss:$20 sps:$4 sm:$0xff]  }
 0x323   : > { %5328 = vmatprep.subr.bf16.mxu0 %v7040_v53  ;;  %5492 = vmatprep.subr.bf16.mxu1 %v7043_v56  ;;  %v7110_v50 = vld [vmem:[%s8689_s19 + $0x690] ss:$20 sps:$4 sm:$0xff]  }
 0x324   : > { %v7118_v53 = vld [vmem:[%s8689_s19 + $0x6bc] ss:$20 sps:$4 sm:$0xff]   ;;  %v7121_v56 = vld [vmem:[%s8689_s19 + $0x6c4] ss:$20 sps:$4 sm:$0xff]  }
 0x326   : > { %5329 = vmatpush1.bf16.msra.mxu0 %v7038_v57  ;;  %5493 = vmatpush1.bf16.msra.mxu1 %v7041_v58  ;;  %v7116_v57 = vld [vmem:[%s8689_s19 + $0x6b8] ss:$20 sps:$4 sm:$0xff]   ;;  %v7119_v58 = vld [vmem:[%s8689_s19 + $0x6c0] ss:$20 sps:$4 sm:$0xff]  }
 0x327   : > { %5330 = vmatprep.subr.bf16.mxu0 %v7046_v60  ;;  %5494 = vmatprep.subr.bf16.mxu1 %v7049_v61  ;;  %v7127_v60 = vld [vmem:[%s8689_s19 + $0x6ec] ss:$20 sps:$4 sm:$0xff]  }
 0x328   : > { %v7122_v61 = vld [vmem:[%s8689_s19 + $0x6e0] ss:$20 sps:$4 sm:$0xff]  }
 0x32a   : > { %5331 = vmatpush1.bf16.msra.mxu0 %v7044_v62  ;;  %5495 = vmatpush1.bf16.msra.mxu1 %v7047_v63  ;;  %v7125_v62 = vld [vmem:[%s8689_s19 + $0x6e8] ss:$20 sps:$4 sm:$0xff]   ;;  %v7130_v63 = vld [vmem:[%s8689_s19 + $0x70c] ss:$20 sps:$4 sm:$0xff]  }
 0x32b   : > { %5341 = vmatprep.subr.bf16.mxu0 %v7052_v1  ;;  %5505 = vmatprep.subr.bf16.mxu1 %v7055_v2  ;;  %v1538_v1 = vsub.s32 4, %v8412_v20  ;;  %v7128_v2 = vld [vmem:[%s8689_s19 + $0x708] ss:$20 sps:$4 sm:$0xff]  }
 0x32d   : > { %5333 = vmatmul.mubr.bf16.vlgmr.msra.gmra.mrb[12].mxu0 %v9193_v5  ;;  %5497 = vmatmul.mubr.bf16.vlgmr.msra.gmra.mrb[12].mxu1 %v9193_v5 }
 0x32e   : > { %5342 = vmatpush1.bf16.msra.mxu0 %v7050_v4  ;;  %5506 = vmatpush1.bf16.msra.mxu1 %v7053_v3  ;;  %v7131_v4 = vld [vmem:[%s8689_s19 + $0x710] ss:$20 sps:$4 sm:$0xff]   ;;  %v1542_v3 = vsub.s32 5, %v8412_v20 }
 0x32f   : > { %5343 = vmatprep.subr.bf16.mxu0 %v7058_v6  ;;  %5507 = vmatprep.subr.bf16.mxu1 %v7061_v7  ;;  %v7136_v6 = vld [vmem:[%s8689_s19 + $0x734] ss:$20 sps:$4 sm:$0xff]   ;;  %v7139_v7 = vld [vmem:[%s8689_s19 + $0x73c] ss:$20 sps:$4 sm:$0xff]  }
 0x332   : > { %5344 = vmatpush1.bf16.msra.mxu0 %v7056_v8  ;;  %5508 = vmatpush1.bf16.msra.mxu1 %v7059_v9  ;;  %v1550_v8 = vsub.s32 7, %v8412_v20  ;;  %v1539_v9 = vrot.slane %v9102_v34, %v1538_v1 }
 0x333   : > { %5345 = vmatprep.subr.bf16.mxu0 %v7064_v10  ;;  %5509 = vmatprep.subr.bf16.mxu1 %v7067_v11  ;;  %v7134_v10 = vld [vmem:[%s8689_s19 + $0x730] ss:$20 sps:$4 sm:$0xff]   ;;  %v7137_v11 = vld [vmem:[%s8689_s19 + $0x738] ss:$20 sps:$4 sm:$0xff]  }
 0x336   : > { %5346 = vmatpush1.bf16.msra.mxu0 %v7062_v12  ;;  %5510 = vmatpush1.bf16.msra.mxu1 %v7065_v13  ;;  %v1543_v12 = vrot.slane %v9102_v34, %v1542_v3  ;;  %v1551_v13 = vrot.slane %v9102_v34, %v1550_v8  ;;  %v7179_v3 = vld [vmem:[%s8689_s19 + $0x850] ss:$20 sps:$4 sm:$0xff]  }
 0x337   : > { %5347 = vmatprep.subr.bf16.mxu0 %v7070_v14  ;;  %5511 = vmatprep.subr.bf16.mxu1 %v7073_v15  ;;  %v7142_v14 = vld [vmem:[%s8689_s19 + $0x75c] ss:$20 sps:$4 sm:$0xff]   ;;  %v7145_v15 = vld [vmem:[%s8689_s19 + $0x764] ss:$20 sps:$4 sm:$0xff]  }
 0x338   : > { %v7182_v8 = vld [vmem:[%s8689_s19 + $0x870] ss:$20 sps:$4 sm:$0xff]  }
 0x33a   : > { %5348 = vmatpush1.bf16.msra.mxu0 %v7068_v16  ;;  %5512 = vmatpush1.bf16.msra.mxu1 %v7071_v17 }
 0x33b   : > { %5349 = vmatprep.subr.bf16.mxu0 %v7076_v18  ;;  %5513 = vmatprep.subr.bf16.mxu1 %v7079_v44 }
 0x33e   : > { %5350 = vmatpush1.bf16.msra.mxu0 %v7074_v19  ;;  %5514 = vmatpush1.bf16.msra.mxu1 %v7077_v24  ;;  %v7140_v19 = vld [vmem:[%s8689_s19 + $0x758] ss:$20 sps:$4 sm:$0xff]  }
 0x33f   : > { %5351 = vmatprep.subr.bf16.mxu0 %v7082_v26  ;;  %5515 = vmatprep.subr.bf16.mxu1 %v7085_v27 }
 0x342   : > { %5352 = vmatpush1.bf16.msra.mxu0 %v7080_v28  ;;  %5516 = vmatpush1.bf16.msra.mxu1 %v7083_v29  ;;  %v7143_v28 = vld [vmem:[%s8689_s19 + $0x760] ss:$20 sps:$4 sm:$0xff]   ;;  %v7148_v29 = vld [vmem:[%s8689_s19 + $0x784] ss:$20 sps:$4 sm:$0xff]  }
 0x343   : > { %5353 = vmatprep.subr.bf16.mxu0 %v7088_v30  ;;  %5517 = vmatprep.subr.bf16.mxu1 %v7091_v32 }
 0x346   : > { %5354 = vmatpush1.bf16.msra.mxu0 %v7086_v33  ;;  %5518 = vmatpush1.bf16.msra.mxu1 %v7089_v35 }
 0x347   : > { %5355 = vmatprep.subr.bf16.mxu0 %v7094_v37  ;;  %5519 = vmatprep.subr.bf16.mxu1 %v7097_v38  ;;  %v7151_v37 = vld [vmem:[%s8689_s19 + $0x78c] ss:$20 sps:$4 sm:$0xff]  }
 0x34a   : > { %5356 = vmatpush1.bf16.msra.mxu0 %v7092_v39  ;;  %5520 = vmatpush1.bf16.msra.mxu1 %v7095_v46 }
 0x34b   : > { %5357 = vmatprep.subr.bf16.mxu0 %v7100_v40  ;;  %5521 = vmatprep.subr.bf16.mxu1 %v7103_v41  ;;  %v7146_v41 = vld [vmem:[%s8689_s19 + $0x780] ss:$20 sps:$4 sm:$0xff]  }
 0x34e   : > { %5358 = vmatpush1.bf16.msra.mxu0 %v7098_v42  ;;  %5522 = vmatpush1.bf16.msra.mxu1 %v7101_v43  ;;  %v7149_v42 = vld [vmem:[%s8689_s19 + $0x788] ss:$20 sps:$4 sm:$0xff]  }
 0x34f   : > { %5359 = vmatprep.subr.bf16.mxu0 %v7106_v45  ;;  %5523 = vmatprep.subr.bf16.mxu1 %v7109_v47  ;;  %v7154_v45 = vld [vmem:[%s8689_s19 + $0x7ac] ss:$20 sps:$4 sm:$0xff]   ;;  %v7157_v47 = vld [vmem:[%s8689_s19 + $0x7b4] ss:$20 sps:$4 sm:$0xff]  }
 0x352   : > { %5360 = vmatpush1.bf16.msra.mxu0 %v7104_v54  ;;  %5524 = vmatpush1.bf16.msra.mxu1 %v7107_v48  ;;  %v7152_v48 = vld [vmem:[%s8689_s19 + $0x7a8] ss:$20 sps:$4 sm:$0xff]  }
 0x353   : > { %5361 = vmatprep.subr.bf16.mxu0 %v7112_v22  ;;  %5525 = vmatprep.subr.bf16.mxu1 %v7115_v49  ;;  %v7155_v22 = vld [vmem:[%s8689_s19 + $0x7b0] ss:$20 sps:$4 sm:$0xff]   ;;  %v7160_v49 = vld [vmem:[%s8689_s19 + $0x7d4] ss:$20 sps:$4 sm:$0xff]  }
 0x356   : > { %5362 = vmatpush1.bf16.msra.mxu0 %v7110_v50  ;;  %5526 = vmatpush1.bf16.msra.mxu1 %v7113_v52  ;;  %v7163_v50 = vld [vmem:[%s8689_s19 + $0x7dc] ss:$20 sps:$4 sm:$0xff]  }
 0x357   : > { %5363 = vmatprep.subr.bf16.mxu0 %v7118_v53  ;;  %5527 = vmatprep.subr.bf16.mxu1 %v7121_v56  ;;  %v7158_v52 = vld [vmem:[%s8689_s19 + $0x7d0] ss:$20 sps:$4 sm:$0xff]   ;;  %v7161_v53 = vld [vmem:[%s8689_s19 + $0x7d8] ss:$20 sps:$4 sm:$0xff]  }
 0x358   : > { %v7166_v56 = vld [vmem:[%s8689_s19 + $0x7fc] ss:$20 sps:$4 sm:$0xff]  }
 0x35a   : > { %5364 = vmatpush1.bf16.msra.mxu0 %v7116_v57  ;;  %5528 = vmatpush1.bf16.msra.mxu1 %v7119_v58  ;;  %v7169_v57 = vld [vmem:[%s8689_s19 + $0x804] ss:$20 sps:$4 sm:$0xff]  }
 0x35b   : > { %5365 = vmatprep.subr.bf16.mxu0 %v7124_v59  ;;  %5529 = vmatprep.subr.bf16.mxu1 %v7127_v60  ;;  %v7164_v58 = vld [vmem:[%s8689_s19 + $0x7f8] ss:$20 sps:$4 sm:$0xff]   ;;  %v7167_v59 = vld [vmem:[%s8689_s19 + $0x800] ss:$20 sps:$4 sm:$0xff]  }
 0x35c   : > { %v7172_v60 = vld [vmem:[%s8689_s19 + $0x824] ss:$20 sps:$4 sm:$0xff]  }
 0x35e   : > { %5366 = vmatpush1.bf16.msra.mxu0 %v7122_v61  ;;  %5530 = vmatpush1.bf16.msra.mxu1 %v7125_v62  ;;  %v7175_v61 = vld [vmem:[%s8689_s19 + $0x82c] ss:$20 sps:$4 sm:$0xff]  }
 0x35f   : > { %5367 = vmatprep.subr.bf16.mxu0 %v7130_v63  ;;  %5531 = vmatprep.subr.bf16.mxu1 %v7133_v0  ;;  %v7170_v62 = vld [vmem:[%s8689_s19 + $0x820] ss:$20 sps:$4 sm:$0xff]   ;;  %v7173_v63 = vld [vmem:[%s8689_s19 + $0x828] ss:$20 sps:$4 sm:$0xff]  }
 0x360   : > { %v7178_v0 = vld [vmem:[%s8689_s19 + $0x84c] ss:$20 sps:$4 sm:$0xff]  }
 0x362   : > { %5368 = vmatpush1.bf16.msra.mxu0 %v7128_v2  ;;  %5532 = vmatpush1.bf16.msra.mxu1 %v7131_v4  ;;  %v7181_v2 = vld [vmem:[%s8689_s19 + $0x854] ss:$20 sps:$4 sm:$0xff]  }
 0x363   : > { %5369 = vmatprep.subr.bf16.mxu0 %v7136_v6  ;;  %5533 = vmatprep.subr.bf16.mxu1 %v7139_v7  ;;  %v7176_v4 = vld [vmem:[%s8689_s19 + $0x848] ss:$20 sps:$4 sm:$0xff]  }
 0x364   : > { %v3079_v16 = vpop.f32.mrb[8].mxu0  ;;  %v7184_v6 = vld [vmem:[%s8689_s19 + $0x874] ss:$20 sps:$4 sm:$0xff]   ;;  %v7187_v7 = vld [vmem:[%s8689_s19 + $0x87c] ss:$20 sps:$4 sm:$0xff]  }
 0x365   : > { %v6771_v17 = vadd.f32 %v3079_v16, %v1539_v9  ;;  %v9263_v18 = vpop.f32.mrb[8].mxu1  ;;  %v3081_v44 = vpop.f32.mrb[9].mxu0  ;;  %v7185_v9 = vld [vmem:[%s8689_s19 + $0x878] ss:$20 sps:$4 sm:$0xff]   ;;  %v7194_v16 = vld [vmem:[%s8689_s19 + $0x8c0] ss:$20 sps:$4 sm:$0xff]  }
 0x366   : > { %v6772_v24 = vadd.f32 %v3081_v44, %v1543_v12  ;;  %v3163_v26 = vpop.f32.mrb[9].mxu1  ;;  %5370 = vmatpush1.bf16.msra.mxu0 %v7134_v10  ;;  %5534 = vmatpush1.bf16.msra.mxu1 %v7137_v11  ;;  %v3083_v27 = vpop.f32.mrb[10].mxu0  ;;  %v7190_v10 = vld [vmem:[%s8689_s19 + $0x89c] ss:$20 sps:$4 sm:$0xff]   ;;  %v7193_v11 = vld [vmem:[%s8689_s19 + $0x8a4] ss:$20 sps:$4 sm:$0xff]  }
 0x367   : > { %v3172_v30 = vmax.f32 %v6771_v17, 0.0  ;;  %v6774_v32 = vadd.f32 %v3163_v26, %v1551_v13  ;;  %v3165_v33 = vpop.f32.mrb[10].mxu1  ;;  %v3084_v35 = vpop.f32.mrb[11].mxu0  ;;  %5371 = vmatprep.subr.bf16.mxu0 %v7142_v14  ;;  %5535 = vmatprep.subr.bf16.mxu1 %v7145_v15  ;;  %v7188_v12 = vld [vmem:[%s8689_s19 + $0x898] ss:$20 sps:$4 sm:$0xff]  }
 0x368   : > { %v3173_v38 = vmax.f32 %v6772_v24, 0.0  ;;  %v3166_v39 = vpop.f32.mrb[11].mxu1  ;;  %v7191_v13 = vld [vmem:[%s8689_s19 + $0x8a0] ss:$20 sps:$4 sm:$0xff]   ;;  %v7196_v14 = vld [vmem:[%s8689_s19 + $0x8c4] ss:$20 sps:$4 sm:$0xff]  }
 0x369   : > { %v3175_v46 = vmax.f32 %v6774_v32, 0.0  ;;  %v9273_v43 = vpack.c.bf16 %v3172_v30, %v3172_v30  ;;  %v7199_v15 = vld [vmem:[%s8689_s19 + $0x8cc] ss:$20 sps:$4 sm:$0xff]   ;;  %v7197_v17 = vld [vmem:[%s8689_s19 + $0x8c8] ss:$20 sps:$4 sm:$0xff]  }
 0x36a   : > { %v9269_v40 = vpack.c.bf16 %v3173_v38, %v3173_v38  ;;  %5372 = vmatpush1.bf16.msra.mxu0 %v7140_v19  ;;  %5536 = vmatpush1.bf16.msra.mxu1 %v7143_v28  ;;  %v7202_v44 = vld [vmem:[%s8689_s19 + $0x8ec] ss:$20 sps:$4 sm:$0xff]   ;;  %v7205_v19 = vld [vmem:[%s8689_s19 + $0x8f4] ss:$20 sps:$4 sm:$0xff]   ;;  %v7203_v26 = vld [vmem:[%s8689_s19 + $0x8f0] ss:$20 sps:$4 sm:$0xff]  }
 0x36b   : > { %5382 = vmatprep.subr.bf16.mxu0 %v7148_v29  ;;  %5546 = vmatprep.subr.bf16.mxu1 %v7151_v37  ;;  %v9279_v54 = vpack.c.bf16 %v3175_v46, %v3175_v46  ;;  %v7200_v24 = vld [vmem:[%s8689_s19 + $0x8e8] ss:$20 sps:$4 sm:$0xff]   ;;  %v7206_v29 = vld [vmem:[%s8689_s19 + $0x910] ss:$20 sps:$4 sm:$0xff]   ;;  %v7209_v30 = vld [vmem:[%s8689_s19 + $0x918] ss:$20 sps:$4 sm:$0xff]  }
 0x36c   : > { %5373 = vmatprep.mubr.bf16.mxu0 %v9269_v40  ;;  %5537 = vmatprep.mubr.bf16.mxu1 %v9269_v40  ;;  %v7208_v27 = vld [vmem:[%s8689_s19 + $0x914] ss:$20 sps:$4 sm:$0xff]   ;;  %v7211_v28 = vld [vmem:[%s8689_s19 + $0x91c] ss:$20 sps:$4 sm:$0xff]   ;;  %v7217_v33 = vld [vmem:[%s8689_s19 + $0x944] ss:$20 sps:$4 sm:$0xff]  }
 0x36d   : > { %5374 = vmatmul.mubr.bf16.vlgmr.msra.gmra.mrb[12].mxu0 %v9273_v43  ;;  %5538 = vmatmul.mubr.bf16.vlgmr.msra.gmra.mrb[12].mxu1 %v9273_v43  ;;  %v7214_v32 = vld [vmem:[%s8689_s19 + $0x93c] ss:$20 sps:$4 sm:$0xff]   ;;  %v7212_v35 = vld [vmem:[%s8689_s19 + $0x938] ss:$20 sps:$4 sm:$0xff]   ;;  %v7215_v37 = vld [vmem:[%s8689_s19 + $0x940] ss:$20 sps:$4 sm:$0xff]  }
 0x36e   : > { %5383 = vmatpush1.bf16.msra.mxu0 %v7146_v41  ;;  %5547 = vmatpush1.bf16.msra.mxu1 %v7149_v42  ;;  %v7220_v38 = vld [vmem:[%s8689_s19 + $0x964] ss:$20 sps:$4 sm:$0xff]   ;;  %v7223_v39 = vld [vmem:[%s8689_s19 + $0x96c] ss:$20 sps:$4 sm:$0xff]   ;;  %v7221_v41 = vld [vmem:[%s8689_s19 + $0x968] ss:$20 sps:$4 sm:$0xff]  }
 0x36f   : > { %5414 = vmatprep.mubr.bf16.mxu0 %v9279_v54  ;;  %5578 = vmatprep.mubr.bf16.mxu1 %v9279_v54  ;;  %v7218_v46 = vld [vmem:[%s8689_s19 + $0x960] ss:$20 sps:$4 sm:$0xff]   ;;  %v1546_v42 = vsub.s32 6, %v8412_v20 }
 0x370   : > { %5384 = vmatprep.subr.bf16.mxu0 %v7154_v45  ;;  %5548 = vmatprep.subr.bf16.mxu1 %v7157_v47  ;;  %v7226_v45 = vld [vmem:[%s8689_s19 + $0x98c] ss:$20 sps:$4 sm:$0xff]   ;;  %v7229_v47 = vld [vmem:[%s8689_s19 + $0x994] ss:$20 sps:$4 sm:$0xff]  }
 0x372   : > { %5385 = vmatpush1.bf16.msra.mxu0 %v7152_v48  ;;  %5549 = vmatpush1.bf16.msra.mxu1 %v7155_v22  ;;  %v7224_v48 = vld [vmem:[%s8689_s19 + $0x988] ss:$20 sps:$4 sm:$0xff]   ;;  %v7227_v22 = vld [vmem:[%s8689_s19 + $0x990] ss:$20 sps:$4 sm:$0xff]  }
 0x373   : > { %5386 = vmatprep.subr.bf16.mxu0 %v7160_v49  ;;  %5550 = vmatprep.subr.bf16.mxu1 %v7163_v50  ;;  %v1547_v49 = vrot.slane %v9102_v34, %v1546_v42  ;;  %v7232_v50 = vld [vmem:[%s8689_s19 + $0x9b4] ss:$20 sps:$4 sm:$0xff]   ;;  %v7236_v34 = vld [vmem:[%s8689_s19 + $0x9d8] ss:$20 sps:$4 sm:$0xff]  }
 0x374   : > { %v7278_v42 = vld [vmem:[%s8689_s19 + $0x678] ss:$20 sps:$4 sm:$0xff]  }
 0x376   : > { %5387 = vmatpush1.bf16.msra.mxu0 %v7158_v52  ;;  %5551 = vmatpush1.bf16.msra.mxu1 %v7161_v53  ;;  %v7235_v52 = vld [vmem:[%s8689_s19 + $0x9bc] ss:$20 sps:$4 sm:$0xff]  }
 0x377   : > { %5388 = vmatprep.subr.bf16.mxu0 %v7166_v56  ;;  %5552 = vmatprep.subr.bf16.mxu1 %v7169_v57  ;;  %v7230_v53 = vld [vmem:[%s8689_s19 + $0x9b0] ss:$20 sps:$4 sm:$0xff]   ;;  %v7233_v56 = vld [vmem:[%s8689_s19 + $0x9b8] ss:$20 sps:$4 sm:$0xff]   ;;  %v6773_v57 = vadd.f32 %v9263_v18, %v1547_v49  ;;  %v7285_v49 = vld [vmem:[%s8689_s19 + $0x7e0] ss:$20 sps:$4 sm:$0xff]  }
 0x378   : > { %v7244_v18 = vld [vmem:[%s8689_s19 + $0x10] ss:$20 sps:$4 sm:$0xff]  }
 0x37a   : > { %5389 = vmatpush1.bf16.msra.mxu0 %v7164_v58  ;;  %5553 = vmatpush1.bf16.msra.mxu1 %v7167_v59  ;;  %v7238_v58 = vld [vmem:[%s8689_s19 + $0x9dc] ss:$20 sps:$4 sm:$0xff]   ;;  %v7241_v59 = vld [vmem:[%s8689_s19 + $0x9e4] ss:$20 sps:$4 sm:$0xff]  }
 0x37b   : > { %5390 = vmatprep.subr.bf16.mxu0 %v7172_v60  ;;  %5554 = vmatprep.subr.bf16.mxu1 %v7175_v61  ;;  %v7239_v60 = vld [vmem:[%s8689_s19 + $0x9e0] ss:$20 sps:$4 sm:$0xff]   ;;  %v3174_v61 = vmax.f32 %v6773_v57, 0.0  ;;  %v7292_v57 = vld [vmem:[%s8689_s19 + $0x5b0] ss:$20 sps:$4 sm:$0xff]  }
 0x37e   : > { %5391 = vmatpush1.bf16.msra.mxu0 %v7170_v62  ;;  %5555 = vmatpush1.bf16.msra.mxu1 %v7173_v63  ;;  %v7242_v62 = vld [vmem:[%s8689_s19 + $0x150] ss:$20 sps:$4 sm:$0xff]  }
 0x37f   : > { %5392 = vmatprep.subr.bf16.mxu0 %v7178_v0  ;;  %5556 = vmatprep.subr.bf16.mxu1 %v7181_v2  ;;  %v7243_v63 = vld [vmem:[%s8689_s19 + $0x3d0] ss:$20 sps:$4 sm:$0xff]   ;;  %v9349_v0 = vpack.c.bf16 %v3174_v61, %v3174_v61  ;;  %v7297_v61 = vld [vmem:[%s8689_s19 + $0x858] ss:$20 sps:$4 sm:$0xff]  }
 0x380   : > { %v7245_v2 = vld [vmem:[%s8689_s19 + $0x290] ss:$20 sps:$4 sm:$0xff]  }
 0x382   : > { %5393 = vmatpush1.bf16.msra.mxu0 %v7176_v4  ;;  %5557 = vmatpush1.bf16.msra.mxu1 %v7179_v3  ;;  %v7246_v4 = vld [vmem:[%s8689_s19 + $0x178] ss:$20 sps:$4 sm:$0xff]  }
 0x383   : > { %5394 = vmatprep.subr.bf16.mxu0 %v7184_v6  ;;  %5558 = vmatprep.subr.bf16.mxu1 %v7187_v7  ;;  %v7247_v3 = vld [vmem:[%s8689_s19 + $0x3f8] ss:$20 sps:$4 sm:$0xff]  }
 0x384   : > { %v7248_v6 = vld [vmem:[%s8689_s19 + $0x38] ss:$20 sps:$4 sm:$0xff]  }
 0x385   : > { %v7249_v7 = vld [vmem:[%s8689_s19 + $0x2b8] ss:$20 sps:$4 sm:$0xff]  }
 0x386   : > { %5395 = vmatpush1.bf16.msra.mxu0 %v7182_v8  ;;  %5559 = vmatpush1.bf16.msra.mxu1 %v7185_v9  ;;  %v7250_v8 = vld [vmem:[%s8689_s19 + $0x1a0] ss:$20 sps:$4 sm:$0xff]  }
 0x387   : > { %5396 = vmatprep.subr.bf16.mxu0 %v7190_v10  ;;  %5560 = vmatprep.subr.bf16.mxu1 %v7193_v11  ;;  %v7251_v9 = vld [vmem:[%s8689_s19 + $0x420] ss:$20 sps:$4 sm:$0xff]   ;;  %v7254_v11 = vld [vmem:[%s8689_s19 + $0x1c8] ss:$20 sps:$4 sm:$0xff]  }
 0x388   : > { %v7252_v10 = vld [vmem:[%s8689_s19 + $0x60] ss:$20 sps:$4 sm:$0xff]  }
 0x38a   : > { %5397 = vmatpush1.bf16.msra.mxu0 %v7188_v12  ;;  %5561 = vmatpush1.bf16.msra.mxu1 %v7191_v13  ;;  %v7255_v12 = vld [vmem:[%s8689_s19 + $0x448] ss:$20 sps:$4 sm:$0xff]  }
 0x38b   : > { %5398 = vmatprep.subr.bf16.mxu0 %v7196_v14  ;;  %5562 = vmatprep.subr.bf16.mxu1 %v7199_v15  ;;  %v7257_v13 = vld [vmem:[%s8689_s19 + $0x308] ss:$20 sps:$4 sm:$0xff]   ;;  %v7258_v14 = vld [vmem:[%s8689_s19 + $0x1f0] ss:$20 sps:$4 sm:$0xff]  }
 0x38c   : > { %v7259_v15 = vld [vmem:[%s8689_s19 + $0x470] ss:$20 sps:$4 sm:$0xff]  }
 0x38e   : > { %5399 = vmatpush1.bf16.msra.mxu0 %v7194_v16  ;;  %5563 = vmatpush1.bf16.msra.mxu1 %v7197_v17  ;;  %v7260_v16 = vld [vmem:[%s8689_s19 + $0xb0] ss:$20 sps:$4 sm:$0xff]  }
 0x38f   : > { %5400 = vmatprep.subr.bf16.mxu0 %v7202_v44  ;;  %5564 = vmatprep.subr.bf16.mxu1 %v7205_v19  ;;  %v7261_v17 = vld [vmem:[%s8689_s19 + $0x330] ss:$20 sps:$4 sm:$0xff]   ;;  %v7262_v44 = vld [vmem:[%s8689_s19 + $0x218] ss:$20 sps:$4 sm:$0xff]  }
 0x390   : > { %v7263_v19 = vld [vmem:[%s8689_s19 + $0x498] ss:$20 sps:$4 sm:$0xff]  }
 0x392   : > { %5401 = vmatpush1.bf16.msra.mxu0 %v7200_v24  ;;  %5565 = vmatpush1.bf16.msra.mxu1 %v7203_v26  ;;  %v7264_v24 = vld [vmem:[%s8689_s19 + $0xd8] ss:$20 sps:$4 sm:$0xff]  }
 0x393   : > { %5402 = vmatprep.subr.bf16.mxu0 %v7208_v27  ;;  %5566 = vmatprep.subr.bf16.mxu1 %v7211_v28  ;;  %v7265_v26 = vld [vmem:[%s8689_s19 + $0x358] ss:$20 sps:$4 sm:$0xff]   ;;  %v7266_v27 = vld [vmem:[%s8689_s19 + $0x240] ss:$20 sps:$4 sm:$0xff]  }
 0x394   : > { %v7267_v28 = vld [vmem:[%s8689_s19 + $0x4c0] ss:$20 sps:$4 sm:$0xff]  }
 0x396   : > { %5403 = vmatpush1.bf16.msra.mxu0 %v7206_v29  ;;  %5567 = vmatpush1.bf16.msra.mxu1 %v7209_v30  ;;  %v7268_v29 = vld [vmem:[%s8689_s19 + $0x100] ss:$20 sps:$4 sm:$0xff]  }
 0x397   : > { %5404 = vmatprep.subr.bf16.mxu0 %v7214_v32  ;;  %5568 = vmatprep.subr.bf16.mxu1 %v7217_v33  ;;  %v7269_v30 = vld [vmem:[%s8689_s19 + $0x380] ss:$20 sps:$4 sm:$0xff]   ;;  %v7270_v32 = vld [vmem:[%s8689_s19 + $0x268] ss:$20 sps:$4 sm:$0xff]  }
 0x398   : > { %v7271_v33 = vld [vmem:[%s8689_s19 + $0x4e8] ss:$20 sps:$4 sm:$0xff]  }
 0x39a   : > { %5405 = vmatpush1.bf16.msra.mxu0 %v7212_v35  ;;  %5569 = vmatpush1.bf16.msra.mxu1 %v7215_v37  ;;  %v7272_v35 = vld [vmem:[%s8689_s19 + $0x128] ss:$20 sps:$4 sm:$0xff]  }
 0x39b   : > { %5406 = vmatprep.subr.bf16.mxu0 %v7220_v38  ;;  %5570 = vmatprep.subr.bf16.mxu1 %v7223_v39  ;;  %v7273_v37 = vld [vmem:[%s8689_s19 + $0x3a8] ss:$20 sps:$4 sm:$0xff]   ;;  %v7274_v38 = vld [vmem:[%s8689_s19 + $0x650] ss:$20 sps:$4 sm:$0xff]  }
 0x39c   : > { %v7275_v39 = vld [vmem:[%s8689_s19 + $0x8d0] ss:$20 sps:$4 sm:$0xff]  }
 0x39e   : > { %5407 = vmatpush1.bf16.msra.mxu0 %v7218_v46  ;;  %5571 = vmatpush1.bf16.msra.mxu1 %v7221_v41  ;;  %v7276_v46 = vld [vmem:[%s8689_s19 + $0x510] ss:$20 sps:$4 sm:$0xff]  }
 0x39f   : > { %5408 = vmatprep.subr.bf16.mxu0 %v7226_v45  ;;  %5572 = vmatprep.subr.bf16.mxu1 %v7229_v47  ;;  %v7277_v41 = vld [vmem:[%s8689_s19 + $0x790] ss:$20 sps:$4 sm:$0xff]   ;;  %v7279_v45 = vld [vmem:[%s8689_s19 + $0x8f8] ss:$20 sps:$4 sm:$0xff]  }
 0x3a0   : > { %v7280_v47 = vld [vmem:[%s8689_s19 + $0x538] ss:$20 sps:$4 sm:$0xff]  }
 0x3a2   : > { %5409 = vmatpush1.bf16.msra.mxu0 %v7224_v48  ;;  %5573 = vmatpush1.bf16.msra.mxu1 %v7227_v22  ;;  %v7281_v48 = vld [vmem:[%s8689_s19 + $0x7b8] ss:$20 sps:$4 sm:$0xff]   ;;  %v7282_v22 = vld [vmem:[%s8689_s19 + $0x6a0] ss:$20 sps:$4 sm:$0xff]  }
 0x3a3   : > { %5410 = vmatprep.subr.bf16.mxu0 %v7232_v50  ;;  %5574 = vmatprep.subr.bf16.mxu1 %v7235_v52  ;;  %v7287_v50 = vld [vmem:[%s8689_s19 + $0x948] ss:$20 sps:$4 sm:$0xff]  }
 0x3a4   : > { %v7289_v52 = vld [vmem:[%s8689_s19 + $0x808] ss:$20 sps:$4 sm:$0xff]  }
 0x3a6   : > { %5411 = vmatpush1.bf16.msra.mxu0 %v7230_v53  ;;  %5575 = vmatpush1.bf16.msra.mxu1 %v7233_v56  ;;  %v7290_v53 = vld [vmem:[%s8689_s19 + $0x6f0] ss:$20 sps:$4 sm:$0xff]  }
 0x3a7   : > { %5412 = vmatprep.subr.bf16.mxu0 %v7238_v58  ;;  %5576 = vmatprep.subr.bf16.mxu1 %v7241_v59  ;;  %v7291_v56 = vld [vmem:[%s8689_s19 + $0x970] ss:$20 sps:$4 sm:$0xff]   ;;  %v7294_v59 = vld [vmem:[%s8689_s19 + $0x718] ss:$20 sps:$4 sm:$0xff]  }
 0x3a8   : > { %v7293_v58 = vld [vmem:[%s8689_s19 + $0x830] ss:$20 sps:$4 sm:$0xff]  }
 0x3aa   : > { %5413 = vmatpush1.bf16.msra.mxu0 %v7236_v34  ;;  %5577 = vmatpush1.bf16.msra.mxu1 %v7239_v60  ;;  %v7295_v34 = vld [vmem:[%s8689_s19 + $0x998] ss:$20 sps:$4 sm:$0xff]  }
 0x3ab   : > { %6679 = vmatprep.subr.bf16.mxu0 %v7242_v62  ;;  %6701 = vmatprep.subr.bf16.mxu1 %v7243_v63  ;;  %v7296_v60 = vld [vmem:[%s8689_s19 + $0x5d8] ss:$20 sps:$4 sm:$0xff]   ;;  %v7298_v62 = vld [vmem:[%s8689_s19 + $0x740] ss:$20 sps:$4 sm:$0xff]  }
 0x3ac   : > { %v7299_v63 = vld [vmem:[%s8689_s19 + $0x9c0] ss:$20 sps:$4 sm:$0xff]  }
 0x3ad   : > { %5415 = vmatmul.mubr.bf16.vlgmr.msra.gmra.mrb[12].mxu0 %v9349_v0  ;;  %5579 = vmatmul.mubr.bf16.vlgmr.msra.gmra.mrb[12].mxu1 %v9349_v0 }
 0x3ae   : > { %6680 = vmatpush3.bf16.msra.mxu0 %v7244_v18  ;;  %5619 = vmatprep.mubr.bf16.mxu0 %v9112_v51  ;;  %v7253_v51 = vld [vmem:[%s8689_s19 + $0x2e0] ss:$20 sps:$4 sm:$0xff]  }
 0x3af   : > { %6702 = vmatpush3.bf16.msra.mxu1 %v7245_v2  ;;  %5659 = vmatprep.mubr.bf16.mxu1 %v9122_v36  ;;  %v7256_v36 = vld [vmem:[%s8689_s19 + $0x88] ss:$20 sps:$4 sm:$0xff]   ;;  %v7300_v18 = vld [vmem:[%s8689_s19 + $0x600] ss:$20 sps:$4 sm:$0xff]  }
 0x3b0   : > { %6681 = vmatprep.subr.bf16.mxu0 %v7246_v4  ;;  %6703 = vmatprep.subr.bf16.mxu1 %v7247_v3  ;;  %v7301_v2 = vld [vmem:[%s8689_s19 + $0x880] ss:$20 sps:$4 sm:$0xff]   ;;  %v7302_v4 = vld [vmem:[%s8689_s19 + $0x768] ss:$20 sps:$4 sm:$0xff]  }
 0x3b1   : > { %v7303_v3 = vld [vmem:[%s8689_s19 + $0x9e8] ss:$20 sps:$4 sm:$0xff]  }
 0x3b2   : > { %6682 = vmatpush3.bf16.msra.mxu0 %v7248_v6  ;;  %v7304_v6 = vld [vmem:[%s8689_s19 + $0x628] ss:$20 sps:$4 sm:$0xff]  }
 0x3b3   : > { %6704 = vmatpush3.bf16.msra.mxu1 %v7249_v7  ;;  %6683 = vmatprep.subr.bf16.mxu0 %v7250_v8  ;;  %v7305_v7 = vld [vmem:[%s8689_s19 + $0x8a8] ss:$20 sps:$4 sm:$0xff]   ;;  %v3568_v8 = vld [vmem:[%s1087_s11] sm:$0x1f] }
 0x3b4   : > { %6705 = vmatprep.subr.bf16.mxu1 %v7251_v9  ;;  %v3573_v9 = vrot.slane %v3568_v8, %v8415_v21 }
 0x3b6   : > { %6684 = vmatpush3.bf16.msra.mxu0 %v7252_v10  ;;  %v3581_v10 = vrot.slane %v3568_v8, %v8605_v31 }
 0x3b7   : > { %6706 = vmatpush3.bf16.msra.mxu1 %v7253_v51  ;;  %6685 = vmatprep.subr.bf16.mxu0 %v7254_v11  ;;  %v3577_v51 = vrot.slane %v3568_v8, %v8423_v23 }
 0x3b8   : > { %6707 = vmatprep.subr.bf16.mxu1 %v7255_v12 }
 0x3ba   : > { %6686 = vmatpush3.bf16.msra.mxu0 %v7256_v36 }
 0x3bb   : > { %6708 = vmatpush3.bf16.msra.mxu1 %v7257_v13  ;;  %6687 = vmatprep.subr.bf16.mxu0 %v7258_v14 }
 0x3bc   : > { %6709 = vmatprep.subr.bf16.mxu1 %v7259_v15 }
 0x3be   : > { %6688 = vmatpush3.bf16.msra.mxu0 %v7260_v16 }
 0x3bf   : > { %6710 = vmatpush3.bf16.msra.mxu1 %v7261_v17  ;;  %6689 = vmatprep.subr.bf16.mxu0 %v7262_v44  ;;  %v3589_v44 = vrot.slane %v3568_v8, %v1538_v1 }
 0x3c0   : > { %6711 = vmatprep.subr.bf16.mxu1 %v7263_v19 }
 0x3c2   : > { %6690 = vmatpush3.bf16.msra.mxu0 %v7264_v24 }
 0x3c3   : > { %6712 = vmatpush3.bf16.msra.mxu1 %v7265_v26  ;;  %6691 = vmatprep.subr.bf16.mxu0 %v7266_v27 }
 0x3c4   : > { %6713 = vmatprep.subr.bf16.mxu1 %v7267_v28 }
 0x3c6   : > { %6692 = vmatpush3.bf16.msra.mxu0 %v7268_v29 }
 0x3c7   : > { %6714 = vmatpush3.bf16.msra.mxu1 %v7269_v30  ;;  %6693 = vmatprep.subr.bf16.mxu0 %v7270_v32 }
 0x3c8   : > { %6715 = vmatprep.subr.bf16.mxu1 %v7271_v33 }
 0x3ca   : > { %6694 = vmatpush3.bf16.msra.mxu0 %v7272_v35 }
 0x3cb   : > { %6716 = vmatpush3.bf16.msra.mxu1 %v7273_v37  ;;  %6723 = vmatprep.subr.bf16.mxu0 %v7274_v38 }
 0x3cc   : > { %6745 = vmatprep.subr.bf16.mxu1 %v7275_v39 }
 0x3cd   : > { %5620 = vmatmul.mubr.bf16.vlgmr.msra.gmra.mrb[16].mxu0 %v9116_v55  ;;  %v7283_v55 = vld [vmem:[%s8689_s19 + $0x920] ss:$20 sps:$4 sm:$0xff]  }
 0x3ce   : > { %5660 = vmatmul.mubr.bf16.vlgmr.msra.gmra.mrb[16].mxu1 %v9193_v5  ;;  %6724 = vmatpush3.bf16.msra.mxu0 %v7276_v46  ;;  %v7284_v5 = vld [vmem:[%s8689_s19 + $0x560] ss:$20 sps:$4 sm:$0xff]  }
 0x3cf   : > { %5699 = vmatprep.mubr.bf16.mxu0 %v9269_v40  ;;  %6746 = vmatpush3.bf16.msra.mxu1 %v7277_v41  ;;  %v7286_v40 = vld [vmem:[%s8689_s19 + $0x6c8] ss:$20 sps:$4 sm:$0xff]  }
 0x3d0   : > { %5739 = vmatprep.mubr.bf16.mxu1 %v9279_v54  ;;  %6725 = vmatprep.subr.bf16.mxu0 %v7278_v42  ;;  %v7288_v54 = vld [vmem:[%s8689_s19 + $0x588] ss:$20 sps:$4 sm:$0xff]  }
 0x3d1   : > { %6747 = vmatprep.subr.bf16.mxu1 %v7279_v45 }
 0x3d2   : > { %6726 = vmatpush3.bf16.msra.mxu0 %v7280_v47 }
 0x3d3   : > { %6748 = vmatpush3.bf16.msra.mxu1 %v7281_v48  ;;  %6727 = vmatprep.subr.bf16.mxu0 %v7282_v22 }
 0x3d4   : > { %6749 = vmatprep.subr.bf16.mxu1 %v7283_v55 }
 0x3d6   : > { %6728 = vmatpush3.bf16.msra.mxu0 %v7284_v5 }
 0x3d7   : > { %6750 = vmatpush3.bf16.msra.mxu1 %v7285_v49  ;;  %6729 = vmatprep.subr.bf16.mxu0 %v7286_v40 }
 0x3d8   : > { %6751 = vmatprep.subr.bf16.mxu1 %v7287_v50 }
 0x3da   : > { %6730 = vmatpush3.bf16.msra.mxu0 %v7288_v54 }
 0x3db   : > { %6752 = vmatpush3.bf16.msra.mxu1 %v7289_v52  ;;  %6731 = vmatprep.subr.bf16.mxu0 %v7290_v53 }
 0x3dc   : > { %6753 = vmatprep.subr.bf16.mxu1 %v7291_v56 }
 0x3de   : > { %6732 = vmatpush3.bf16.msra.mxu0 %v7292_v57 }
 0x3df   : > { %6754 = vmatpush3.bf16.msra.mxu1 %v7293_v58  ;;  %6733 = vmatprep.subr.bf16.mxu0 %v7294_v59 }
 0x3e0   : > { %6755 = vmatprep.subr.bf16.mxu1 %v7295_v34 }
 0x3e2   : > { %6734 = vmatpush3.bf16.msra.mxu0 %v7296_v60 }
 0x3e3   : > { %6756 = vmatpush3.bf16.msra.mxu1 %v7297_v61  ;;  %6735 = vmatprep.subr.bf16.mxu0 %v7298_v62 }
 0x3e4   : > { %6757 = vmatprep.subr.bf16.mxu1 %v7299_v63 }
 0x3e6   : > { %6736 = vmatpush3.bf16.msra.mxu0 %v7300_v18 }
 0x3e7   : > { %6758 = vmatpush3.bf16.msra.mxu1 %v7301_v2  ;;  %6737 = vmatprep.subr.bf16.mxu0 %v7302_v4 }
 0x3e8   : > { %6759 = vmatprep.subr.bf16.mxu1 %v7303_v3 }
 0x3ea   : > { %6738 = vmatpush3.bf16.msra.mxu0 %v7304_v6 }
 0x3eb   : > { %6760 = vmatpush3.bf16.msra.mxu1 %v7305_v7 }
 0x3ed   : > { %5700 = vmatmul.mubr.bf16.vlgmr.msra.gmra.mrb[20].mxu0 %v9273_v43  ;;  %v3585_v43 = vrot.slane %v3568_v8, %v8428_v25 }
 0x3ee   : > { %5740 = vmatmul.mubr.bf16.vlgmr.msra.gmra.mrb[20].mxu1 %v9349_v0 }
 0x480   : > { %v5416_v0 = vpop.f32.mrb[12].mxu0  ;;  %v5580_v11 = vpop.f32.mrb[12].mxu1 }
 0x481   : > { %v6775_v12 = vadd.f32 %v5416_v0, %v3573_v9  ;;  %v6777_v36 = vadd.f32 %v5580_v11, %v3581_v10  ;;  %v5418_v21 = vpop.f32.mrb[13].mxu0  ;;  %v5582_v13 = vpop.f32.mrb[13].mxu1 }
 0x482   : > { %v6776_v31 = vadd.f32 %v5418_v21, %v3577_v51  ;;  %v6778_v14 = vadd.f32 %v5582_v13, %v3585_v43  ;;  %v5420_v23 = vpop.f32.mrb[14].mxu0  ;;  %v5584_v15 = vpop.f32.mrb[14].mxu1 }
 0x483   : > { %5747 = vst [vmem:[%s9434_s26] sm:$0xff] %v6775_v12  ;;  %5749 = vst [vmem:[%s9434_s26 + $0x10] sm:$0xff] %v6777_v36  ;;  %v5421_v25 = vpop.f32.mrb[15].mxu0  ;;  %v5585_v16 = vpop.f32.mrb[15].mxu1 }
 0x484   : > { %5748 = vst [vmem:[%s9434_s26 + $0x8] sm:$0xff] %v6776_v31  ;;  %5750 = vst [vmem:[%s9434_s26 + $0x18] sm:$0xff] %v6778_v14 }
 0x4a0   : > { %v6695_v17 = vpop.f32.mrb[16].mxu0 }
 0x4a1   : > { %v6717_v19 = vpop.f32.mrb[16].mxu1  ;;  %v6696_v24 = vpop.f32.mrb[17].mxu0 }
 0x4a2   : > { %v6697_v26 = vadd.f32 %v6696_v24, %v6695_v17  ;;  %v6718_v27 = vpop.f32.mrb[17].mxu1  ;;  %v6698_v28 = vpop.f32.mrb[18].mxu0 }
 0x4a3   : > { %v6719_v29 = vadd.f32 %v6718_v27, %v6717_v19  ;;  %v6720_v30 = vpop.f32.mrb[18].mxu1  ;;  %v6699_v32 = vpop.f32.mrb[19].mxu0 }
 0x4a4   : > { %v5622_v33 = vadd.f32 %v6697_v26, %v3589_v44  ;;  %v6721_v35 = vpop.f32.mrb[19].mxu1 }
 0x4a6   : > { %v5662_v37 = vadd.f32 %v6719_v29, %v5622_v33 }
 0x4c0   : > { %v6739_v38 = vpop.f32.mrb[20].mxu0 }
 0x4c1   : > { %v6761_v39 = vpop.f32.mrb[20].mxu1  ;;  %v6740_v46 = vpop.f32.mrb[21].mxu0 }
 0x4c2   : > { %v6741_v41 = vadd.f32 %v6740_v46, %v6739_v38  ;;  %v6762_v42 = vpop.f32.mrb[21].mxu1  ;;  %v6742_v45 = vpop.f32.mrb[22].mxu0 }
 0x4c3   : > { %v6763_v20 = vadd.f32 %v6762_v42, %v6761_v39  ;;  %v6764_v1 = vpop.f32.mrb[22].mxu1  ;;  %v6743_v47 = vpop.f32.mrb[23].mxu0 }
 0x4c4   : > { %v5702_v48 = vadd.f32 %v6741_v41, %v5662_v37  ;;  %v6765_v22 = vpop.f32.mrb[23].mxu1 }
 0x4c6   : > { %v5742_v55 = vadd.f32 %v6763_v20, %v5702_v48 }
 0x4c8   : > { %5751 = vst [vmem:[%s9434_s26 + $0x20] sm:$0xff] %v5742_v55 }
 0x4c9 PF: > { %p14_p9 = scmp.ge.s32.totalorder %s7388_s28, 5   ;;  %s9461_s24 = smov %s7324_s25 }
 0x4ca   : > { %s9462_s25 = smov %s7397_s8  ;;  %s9463_s26 = smov %s7388_s28 }
 0x4cb   :  { %16 = sbr.rel (!%p14_p9) target bundleno = 2 (0x2), region = 118 }

</bundles_post_ra>
